<compile_context>
chip_gen: v5e
topology: v5e:2x2
jax: 0.10.0
libtpu: 0.0.40
codegen_flags: <defaults>
</compile_context>

<pallas_src>
import functools

import jax
import jax.numpy as jnp
from jax.experimental import pallas as pl
from jax.experimental.pallas import tpu as pltpu


def ln_linear_kernel(x_ref, w_ref, b_ref, o_ref, *, eps):
    # x_ref: (Rp, C) f32 (resident across the OUT grid)
    # w_ref: (C, TN) bf16 (affine-folded weights, sliced per grid step)
    # b_ref: (1, TN) f32  (affine-folded bias, sliced per grid step)
    # o_ref: (Rp, TN)
    x = x_ref[...]                                           # f32
    mean = jnp.mean(x, axis=-1, keepdims=True)
    mean_sq = jnp.mean(x * x, axis=-1, keepdims=True)
    var = mean_sq - mean * mean                              # single-pass variance
    inv = jax.lax.rsqrt(var + eps)
    xn = (x - mean) * inv                                    # f32 LN (no affine: folded)
    out = jnp.dot(xn.astype(jnp.bfloat16), w_ref[...],
                  preferred_element_type=jnp.float32)        # bf16 MXU, f32 acc
    o_ref[...] = (out + b_ref[...]).astype(o_ref.dtype)


def layernorm_linear(x_nhwc, gamma, beta, w, b, *, eps=1e-6):
    """x_nhwc: (N, H, W, C); gamma/beta: (C,); w: (C, OUT); b: (OUT,)."""
    N, H, W, C = x_nhwc.shape
    OUT = w.shape[1]
    rows = N * H * W

    # Fold the LayerNorm affine into the matmul (one-time O(C*OUT) on params).
    gamma32 = gamma.astype(jnp.float32)
    beta32 = beta.astype(jnp.float32)
    w32 = w.astype(jnp.float32)
    w_eff = (gamma32[:, None] * w32).astype(jnp.bfloat16)          # (C, OUT) bf16
    b_eff = (beta32 @ w32 + b.astype(jnp.float32)).reshape(1, OUT)  # (1, OUT) f32

    # Pad rows to a multiple of 256: unmasked vld/vst and full MXU M-tiles.
    rows_pad = pl.cdiv(rows, 256) * 256
    x2d = x_nhwc.reshape(rows, C)
    if rows_pad != rows:
        x2d = jnp.pad(x2d, ((0, rows_pad - rows), (0, 0)))

    # OUT tile: pick the largest friendly divisor of OUT.
    tn = OUT
    for cand in (512, 384, 256, 128):
        if OUT % cand == 0:
            tn = cand
            break

    # TODO(synk): row-tile the grid as well if rows grows large, to keep the
    # resident (rows_pad, C) + (rows_pad, OUT) blocks within scoped VMEM
    # (especially on v7x's 64 MiB VMEM).
    out2d = pl.pallas_call(
        functools.partial(ln_linear_kernel, eps=eps),
        out_shape=jax.ShapeDtypeStruct((rows_pad, OUT), x_nhwc.dtype),
        grid=(OUT // tn,),
        in_specs=[
            pl.BlockSpec((rows_pad, C), lambda j: (0, 0)),   # x resident
            pl.BlockSpec((C, tn), lambda j: (0, j)),         # weight slice
            pl.BlockSpec((1, tn), lambda j: (0, j)),         # bias slice
        ],
        out_specs=pl.BlockSpec((rows_pad, tn), lambda j: (0, j)),
        compiler_params=pltpu.CompilerParams(
            dimension_semantics=("parallel",)),
    )(x2d, w_eff, b_eff)

    return out2d[:rows].reshape(N, H, W, OUT)


if __name__ == "__main__":
    key = jax.random.PRNGKey(0)
    k_x, k_g, k_b, k_w, k_bias = jax.random.split(key, 5)

    N, H, W, C, OUT = 1, 14, 14, 384, 1536

    x = jax.random.normal(k_x, (N, H, W, C), dtype=jnp.float32)
    # LayerNorm((384,), eps=1e-6, elementwise_affine=True) params
    gamma = 1.0 + 0.01 * jax.random.normal(k_g, (C,), dtype=jnp.float32)
    beta = 0.01 * jax.random.normal(k_b, (C,), dtype=jnp.float32)
    # Linear(384, 1536): PyTorch weight is (out, in); we use transposed (in, out)
    w = 0.02 * jax.random.normal(k_w, (C, OUT), dtype=jnp.float32)
    bias = 0.01 * jax.random.normal(k_bias, (OUT,), dtype=jnp.float32)

    out = layernorm_linear(x, gamma, beta, w, bias)
    jax.block_until_ready(out)

    # reference check (pure JAX, f32); tolerance loosened for bf16 MXU operands
    mean = jnp.mean(x, axis=-1, keepdims=True)
    var = jnp.mean((x - mean) ** 2, axis=-1, keepdims=True)
    xn = (x - mean) * jax.lax.rsqrt(var + 1e-6)
    ref = jnp.einsum("nhwc,co->nhwo", xn * gamma + beta, w) + bias
    assert out.shape == (N, H, W, OUT)
    assert jnp.allclose(out, ref, atol=3e-2, rtol=3e-2), (
        float(jnp.max(jnp.abs(out - ref))))

    print("KERNEL_OK")
</pallas_src>

<mosaic_0001>
module attributes {stable_mosaic.version = 11 : i64} {
  func.func @ln_linear_kernel(%arg0: i32, %arg1: memref<256x384xf32, #tpu.memory_space<vmem>>, %arg2: memref<384x512xbf16, #tpu.memory_space<vmem>>, %arg3: memref<1x512xf32, #tpu.memory_space<vmem>>, %arg4: memref<256x512xf32, #tpu.memory_space<vmem>>) attributes {dimension_semantics = [#tpu.dimension_semantics<parallel>], iteration_bounds = array<i64: 3>, scalar_prefetch = 0 : i64, scratch_operands = 0 : i64, tpu.core_type = #tpu.core_type<tc>, window_params = [{pipeline_mode = #tpu.pipeline_mode<synchronous>, transform_indices = @transform_0, window_bounds = array<i64: 256, 384>}, {transform_indices = @transform_1, window_bounds = array<i64: 384, 512>}, {transform_indices = @transform_2, window_bounds = array<i64: 1, 512>}, {transform_indices = @transform_3, window_bounds = array<i64: 256, 512>}]} {
    %c0 = arith.constant 0 : index
    %c0_0 = arith.constant 0 : index
    %0 = vector.load %arg1[%c0, %c0_0] : memref<256x384xf32, #tpu.memory_space<vmem>>, vector<256x384xf32>
    %cst = arith.constant dense<0.000000e+00> : vector<256xf32>
    %1 = vector.multi_reduction <add>, %0, %cst [1] : vector<256x384xf32> to vector<256xf32>
    %2 = vector.shape_cast %1 : vector<256xf32> to vector<256x1xf32>
    %cst_1 = arith.constant 3.840000e+02 : f32
    %3 = vector.broadcast %cst_1 : f32 to vector<256x1xf32>
    %4 = arith.divf %2, %3 : vector<256x1xf32>
    %5 = arith.mulf %0, %0 : vector<256x384xf32>
    %cst_2 = arith.constant dense<0.000000e+00> : vector<256xf32>
    %6 = vector.multi_reduction <add>, %5, %cst_2 [1] : vector<256x384xf32> to vector<256xf32>
    %7 = vector.shape_cast %6 : vector<256xf32> to vector<256x1xf32>
    %cst_3 = arith.constant 3.840000e+02 : f32
    %8 = vector.broadcast %cst_3 : f32 to vector<256x1xf32>
    %9 = arith.divf %7, %8 : vector<256x1xf32>
    %10 = arith.mulf %4, %4 : vector<256x1xf32>
    %11 = arith.subf %9, %10 : vector<256x1xf32>
    %cst_4 = arith.constant 9.99999997E-7 : f32
    %12 = vector.broadcast %cst_4 : f32 to vector<256x1xf32>
    %13 = arith.addf %11, %12 : vector<256x1xf32>
    %14 = math.rsqrt %13 : vector<256x1xf32>
    %15 = vector.broadcast %4 : vector<256x1xf32> to vector<256x384xf32>
    %16 = arith.subf %0, %15 : vector<256x384xf32>
    %17 = vector.broadcast %14 : vector<256x1xf32> to vector<256x384xf32>
    %18 = arith.mulf %16, %17 : vector<256x384xf32>
    %19 = arith.truncf %18 : vector<256x384xf32> to vector<256x384xbf16>
    %c0_5 = arith.constant 0 : index
    %c0_6 = arith.constant 0 : index
    %20 = vector.load %arg2[%c0_5, %c0_6] : memref<384x512xbf16, #tpu.memory_space<vmem>>, vector<384x512xbf16>
    %cst_7 = arith.constant dense<0.000000e+00> : vector<256x512xf32>
    %21 = tpu.matmul %19, %20, %cst_7 {dimension_numbers = #tpu.dot_dimension_numbers<[1], [0], [0], [1], [0, 0, 1, 1], [], []>} : vector<256x384xbf16>, vector<384x512xbf16>, vector<256x512xf32> -> vector<256x512xf32>
    %c0_8 = arith.constant 0 : index
    %c0_9 = arith.constant 0 : index
    %22 = vector.load %arg3[%c0_8, %c0_9] : memref<1x512xf32, #tpu.memory_space<vmem>>, vector<1x512xf32>
    %23 = vector.broadcast %22 : vector<1x512xf32> to vector<256x512xf32>
    %24 = arith.addf %21, %23 : vector<256x512xf32>
    %c0_10 = arith.constant 0 : index
    %c0_11 = arith.constant 0 : index
    %25 = vector.load %arg4[%c0_10, %c0_11] : memref<256x512xf32, #tpu.memory_space<vmem>>, vector<256x512xf32>
    tpu.vector_store %arg4[%c0_10, %c0_11], %24 {strides = array<i32>} : memref<256x512xf32, #tpu.memory_space<vmem>>, vector<256x512xf32>,
    return
  }
  func.func @transform_0(%arg0: i32) -> (i32, i32) {
    %c0_i32 = arith.constant 0 : i32
    %c0_i32_0 = arith.constant 0 : i32
    %c0_i32_1 = arith.constant 0 : i32
    return %c0_i32, %c0_i32_0 : i32, i32
  }
  func.func @transform_1(%arg0: i32) -> (i32, i32) {
    %c0_i32 = arith.constant 0 : i32
    %c0_i32_0 = arith.constant 0 : i32
    return %c0_i32, %arg0 : i32, i32
  }
  func.func @transform_2(%arg0: i32) -> (i32, i32) {
    %c0_i32 = arith.constant 0 : i32
    %c0_i32_0 = arith.constant 0 : i32
    return %c0_i32, %arg0 : i32, i32
  }
  func.func @transform_3(%arg0: i32) -> (i32, i32) {
    %c0_i32 = arith.constant 0 : i32
    %c0_i32_0 = arith.constant 0 : i32
    return %c0_i32, %arg0 : i32, i32
  }
}

</mosaic_0001>

<bundles_post_ra>
// kernel: tpu_custom_call.1
= control target key start
LH: loop header
LB: loop body
LE: loop exit
PB: predicated region body
PF: predicated region fallthrough
CT: control target
= control target key end

     0   :  { %s6351_s0 = inlined_call_operand.hbm [shape: f32[256,384], index: 0, kind: input, shape index: {}]   ;;  %s6352_s1 = inlined_call_operand.hbm [shape: bf16[384,1536], index: 1, kind: input, shape index: {}]   ;;  %s6353_s2 = inlined_call_operand.hbm [shape: f32[1,1536], index: 2, kind: input, shape index: {}]   ;;  %s6354_s3 = inlined_call_operand.hbm [shape: f32[256,1536], index: 3, kind: output, shape index: {}]  }
   0x1   :  { %6407 = sst [smem:[#allocation52_spill]] %s6351_s0 }
   0x2   :  { %6408 = sst [smem:[#allocation53_spill]] %s6352_s1 }
   0x3   :  { %8 = vsyncpa [#allocation3], 0 }
   0x4   :  { %9 = vsyncpa [#allocation6], 0 }
   0x5   :  { %11 = vsyncpa [#allocation6 + $0x1], 0 }
   0x6   :  { %12 = vsyncpa [#allocation4], 0 }
   0x7   :  { %14 = vsyncpa [#allocation4 + $0x1], 0  ;;  %s4248_s12 = smov 0   ;;  %s4250_s13 = smov 0  }
   0x8   :  { %s4252_s14 = smov 0   ;;  %s4254_s15 = smov 0  }
   0x9 LB: > { %s4269_s16 = sadd.s32 1, %s4216_s15   ;;  %s48_s17 = sadd.s32 1, %s4212_s14  ;;  %s4216_s15 = sphi %s4254_s15, %s6573_s15   ;;  %s4212_s14 = sphi %s4252_s14, %s6572_s14   ;;  %s4208_s13 = sphi %s4250_s13, %s6571_s13   ;;  %s4204_s12 = sphi %s4248_s12, %s6570_s12  }
   0xa   : > { %s45_s18 = ssub.s32 %s4216_s15, %s4269_s16  ;;  %p55_p0 = scmp.ne.s32.totalorder %s4212_s14, %s4208_s13 }
   0xb   : > { %p46_p1 = scmp.eq.s32.totalorder %s45_s18, 0  ;;  %p56_p2 = scmp.eq.s32.totalorder %s4216_s15, 0 }
   0xc   : > { %p3852_p3 = scmp.lt.s32.totalorder %s4216_s15, 3  ;;  %s151_s20 = sand.u32 1, %s4216_s15  }
   0xd   : > { %s4279_s19 = scalar_select %p46_p1, %s4212_s14, %s48_s17  }
   0xe   : > { %p57_p4 = por %p56_p2, %p55_p0  ;;  %s153_s21 = sand.u32 1, %s4212_s14  }
   0xf   : > { %s3824_s22 = smul.u32 768, %s153_s21  ;;  %s3726_s23 = sshll.u32 %s4216_s15, 4 }
  0x10   : > { %s6409_s1 = sld [smem:[#allocation53_spill]]  ;;  %p4292_p5 = pnand %p3852_p3, %p57_p4 }
  0x11   : > { %s155_s29 = scalar_lea.vmem [#allocation5], %s3824_s22  ;;  %s4296_s4 = scalar_lea.sflag [#allocation6], %s151_s20 }
  0x12   : > { %s163_s30 = sshll.u32 %s155_s29, 4  ;;  %p4060_p7 = pneg %p4292_p5  ;;  %s164_s30 = int_to_ptr.vmem [resolvable:$true] %s163_s30 }
  0x16   : > { %s160_s26 = scalar_lea.hbm %s6409_s1, %s3726_s23  ;;  %s4063_s9 = scalar_lea.hbm %s6409_s1, 2304 }
  0x17   : > { %s161_s28 = sshll.u32 %s160_s26, 4  ;;  %s162_s28 = int_to_ptr.hbm [resolvable:$true] %s161_s28 }
  0x18   : > { %s4056_s5 = sshra.s32 %s162_s28, 4  ;;  %s4057_s5 = int_to_ptr.hbm [resolvable:$true] %s4056_s5 }
  0x19   : > { %s4058_s6 = scalar_lea.hbm %s4057_s5, 768  ;;  %p4064_p10 = scmp.lt.s32.totalorder %s4057_s5, %s6409_s1 }
  0x1a   : > { %p4059_p6 = scmp.ne.s32.totalorder %s4057_s5, %s4058_s6  ;;  %p4065_p11 = scmp.lt.s32.totalorder %s4063_s9, %s4058_s6 }
  0x1c   : > { %p4061_p8 = pnand %p4060_p7, %p4059_p6  ;;  %p4066_p12 = por %p4065_p11, %p4064_p10 }
  0x1e   : > { %p4062_p9 = pneg %p4061_p8 }
  0x20   : > { %p4067_p13 = pnand %p4066_p12, %p4062_p9 }
  0x22   : > { %4070 = shalt.err (!%p4067_p13)
}
  0x23   : > { %s4218_s17 = smov 768   ;;  %s4219_s18 = smov 256  }
  0x24   : > { %s4220_s20 = smov 16   ;;  %s4313_s22 = sadd.s32 4294967295, %s4216_s15  }
  0x25   : > { %3843 = dma.hbm_to_vmem [thread:$0]  (!%p4292_p5), %s162_s28, 12288, %s164_s30, %s4296_s4, %s4218_s17, %s4219_s18, %s4220_s20  }
  0x26   : > { %s3325_s23 = sadd.s32 4294967294, %s4216_s15   ;;  %p61_p1 = scmp.ne.s32.totalorder %s4208_s13, %s4204_s12 }
  0x27   : > { %p62_p2 = scmp.eq.s32.totalorder %s4313_s22, 0  ;;  %p111_p3 = scmp.eq.s32.totalorder %s4313_s22, 2 }
  0x28   : > { %p117_p4 = scmp.eq.s32.totalorder %s3325_s23, 2  ;;  %p3326_p6 = scmp.ge.s32.totalorder %s4216_s15, 1 }
  0x29   : > { %p4323_p8 = por %p62_p2, %p61_p1  ;;  %p4330_p9 = por %p111_p3, %p55_p0 }
  0x2a   : > { %p4334_p10 = por %p117_p4, %p61_p1  ;;  %p124_p11 = scmp.lt.s32.totalorder %s4216_s15, 4 }
  0x2b   : > { %s6414_s0 = sld [smem:[#allocation52_spill]]  ;;  %s4221_s6 = smov [#allocation2]  }
  0x2c   : > { %p4342_p12 = pnand %p3326_p6, %p124_p11  ;;  %s137_s7 = sshll.u32 %s4221_s6, 4  ;;  %s138_s7 = int_to_ptr.vmem [resolvable:$true] %s137_s7 }
  0x2d   : > { %s3331_s8 = sshll.u32 %s153_s21, 2  ;;  %s3332_s9 = sshll.u32 %s4216_s15, 2 }
  0x2e   : > { %p3836_p0 = pneg %p4342_p12  ;;  %s181_s17 = scalar_lea.hbm %s6353_s2, %s3332_s9 }
  0x2f   : > { %s4222_s18 = smov 384   ;;  %s4223_s20 = smov 24  }
  0x30   : > { %p3837_p13 = pnand %p3836_p0, %p62_p2  ;;  %s183_s23 = sshll.u32 %s181_s17, 4  ;;  %s184_s23 = int_to_ptr.hbm [resolvable:$true] %s183_s23 }
  0x31   : > { %s135_s30 = sshll.u32 %s6414_s0, 4  ;;  %s177_s28 = scalar_lea.vmem [#allocation7], %s3331_s8  ;;  %s136_s30 = int_to_ptr.hbm [resolvable:$true] %s135_s30 }
  0x32   : > { %3839 = dma.hbm_to_vmem [thread:$0]  (!%p3837_p13), %s136_s30, 12288, %s138_s7, [#allocation3], %s4222_s18, %s4222_s18, %s4223_s20  }
  0x33   : > { %s185_s29 = sshll.u32 %s177_s28, 4  ;;  %s4116_s6 = sshra.s32 %s184_s23, 4  ;;  %s186_s29 = int_to_ptr.vmem [resolvable:$true] %s185_s29  ;;  %s4117_s6 = int_to_ptr.hbm [resolvable:$true] %s4116_s6 }
  0x34   : > { %s4118_s0 = scalar_lea.hbm %s4117_s6, 4  ;;  %s4123_s9 = scalar_lea.hbm %s6353_s2, 12 }
  0x35   : > { %p4119_p1 = scmp.ne.s32.totalorder %s4117_s6, %s4118_s0  ;;  %p4124_p6 = scmp.lt.s32.totalorder %s4117_s6, %s6353_s2 }
  0x36   : > { %p4125_p11 = scmp.lt.s32.totalorder %s4123_s9, %s4118_s0 }
  0x37   : > { %p4121_p3 = pnand %p4119_p1, %p4060_p7 }
  0x38   : > { %p4126_p0 = por %p4125_p11, %p4124_p6 }
  0x39   : > { %p4122_p4 = pneg %p4121_p3 }
  0x3b   : > { %p4127_p13 = pnand %p4126_p0, %p4122_p4 }
  0x3d   : > { %4130 = shalt.err (!%p4127_p13)
}
  0x3e   : > { %3846 = dma.hbm_to_vmem [thread:$0]  (!%p4292_p5), %s184_s23, 64, %s186_s29, %s4296_s4  }
  0x3f   : > { %194 = sbr.rel (%p4342_p12) target bundleno = 1135 (0x46f), region = 32 }
  0x44   : > { %4191 = dma.done.wait (%p62_p2), [#allocation3], 12288  }
  0x45   : > { %4193 = vsyncadd (%p62_p2), [#allocation3], 4294955008  ;;  %s201_s0 = sand.u32 1, %s4313_s22   ;;  %s4376_s1 = sand.u32 1, %s4208_s13  }
  0x46   : > { %s3825_s30 = smul.u32 768, %s4376_s1  ;;  %s202_s27 = scalar_lea.sflag [#allocation6], %s201_s0 }
  0x48   : > { %s4379_s7 = scalar_lea.vmem [#allocation5], %s3825_s30 }
  0x49   : > { %4195 = dma.done.wait (%p4323_p8), %s202_s27, 12352  }
  0x4a   : > { %4197 = vsyncadd (%p4323_p8), %s202_s27, 4294954944  ;;  %v4385_v0 = vld [vmem:[#allocation2] sm:$0xff]  ;;  %v248_v1 = vld [vmem:[#allocation2 + $0x8] sm:$0xff]  ;;  %s3335_s4 = sshll.u32 %s4376_s1, 2  ;;  %s3336_s5 = sshll.u32 %s4376_s1, 10 }
  0x4b   : > { %v249_v2 = vld [vmem:[#allocation2 + $0x10] sm:$0xff]  ;;  %v343_v3 = vadd.f32 %v248_v1, %v4385_v0  ;;  %v254_v5 = vld [vmem:[#allocation2 + $0x38] sm:$0xff]  ;;  %v255_v6 = vld [vmem:[#allocation2 + $0x40] sm:$0xff]  ;;  %v510_v7 = vmul.f32 %v4385_v0, %v4385_v0  ;;  %v511_v8 = vmul.f32 %v248_v1, %v248_v1  ;;  %s5208_s24 = scalar_lea.vmem [#allocation7], %s3335_s4  ;;  %s5285_s8 = scalar_lea.vmem [#allocation8], %s3336_s5 }
  0x4c   : > { %v253_v4 = vld [vmem:[#allocation2 + $0x30] sm:$0xff]  ;;  %v512_v9 = vmul.f32 %v249_v2, %v249_v2  ;;  %v4390_v11 = vld [vmem:[#allocation2 + $0x18] sm:$0xff]  ;;  %v4392_v12 = vld [vmem:[#allocation2 + $0x20] sm:$0xff]  ;;  %v517_v29 = vmul.f32 %v254_v5, %v254_v5  ;;  %v518_v36 = vmul.f32 %v255_v6, %v255_v6  ;;  %s3823_s17 = sshll.u32 %s4313_s22, 5  ;;  %s3217_s28 = sshll.u32 %s5285_s8, 4  ;;  %s3218_s28 = int_to_ptr.vmem [resolvable:$true] %s3217_s28 }
  0x4d   : > { %v351_v10 = vadd.f32 %v254_v5, %v253_v4  ;;  %v344_v13 = vadd.f32 %v343_v3, %v249_v2  ;;  %v606_v14 = vadd.f32 %v511_v8, %v510_v7  ;;  %v256_v15 = vld [vmem:[#allocation2 + $0x48] sm:$0xff]  ;;  %v257_v16 = vld [vmem:[#allocation2 + $0x50] sm:$0xff]  ;;  %v513_v17 = vmul.f32 %v4390_v11, %v4390_v11  ;;  %v258_v24 = vld [vmem:[#allocation2 + $0x58] sm:$0xff]  ;;  %s3216_s23 = scalar_lea.hbm %s6354_s3, %s3823_s17  ;;  %s3205_s22 = scalar_lea.sflag [#allocation4], %s4376_s1 }
  0x4e   : > { %v4396_v19 = vld [vmem:[#allocation2 + $0x28] sm:$0xff]  ;;  %v514_v20 = vmul.f32 %v4392_v12, %v4392_v12  ;;  %v347_v22 = vadd.f32 %v4392_v12, %v4390_v11  ;;  %v355_v23 = vadd.f32 %v257_v16, %v256_v15  ;;  %v516_v28 = vmul.f32 %v253_v4, %v253_v4  ;;  %v259_v32 = vld [vmem:[#allocation2 + $0x60] sm:$0xff]  ;;  %v261_v39 = vld [vmem:[#allocation2 + $0x70] sm:$0xff]  ;;  %s3219_s29 = sshll.u32 %s3216_s23, 4  ;;  %s4166_s11 = scalar_lea.hbm %s6354_s3, 3072  ;;  %s3220_s29 = int_to_ptr.hbm [resolvable:$true] %s3219_s29 }
  0x4f   : > { %v352_v18 = vadd.f32 %v351_v10, %v255_v6  ;;  %345 = vadd.xlane.f32.xlu0 %v344_v13  ;;  %v607_v21 = vadd.f32 %v606_v14, %v512_v9  ;;  %v515_v25 = vmul.f32 %v4396_v19, %v4396_v19  ;;  %v260_v33 = vld [vmem:[#allocation2 + $0x68] sm:$0xff]  ;;  %v519_v34 = vmul.f32 %v256_v15, %v256_v15  ;;  %v262_v42 = vld [vmem:[#allocation2 + $0x78] sm:$0xff]  ;;  %v263_v43 = vld [vmem:[#allocation2 + $0x80] sm:$0xff]  ;;  %s4160_s6 = sshra.s32 %s3220_s29, 4  ;;  %s4161_s6 = int_to_ptr.hbm [resolvable:$true] %s4160_s6 }
  0x50   : > { %v610_v26 = vadd.f32 %v514_v20, %v513_v17  ;;  %v348_v27 = vadd.f32 %v347_v22, %v4396_v19  ;;  %v356_v30 = vadd.f32 %v355_v23, %v258_v24  ;;  %v520_v35 = vmul.f32 %v257_v16, %v257_v16  ;;  %v264_v49 = vld [vmem:[#allocation2 + $0x88] sm:$0xff]  ;;  %v265_v57 = vld [vmem:[#allocation2 + $0x90] sm:$0xff]  ;;  %v266_v58 = vld [vmem:[#allocation2 + $0x98] sm:$0xff]  ;;  %s4162_s21 = scalar_lea.hbm %s4161_s6, 1024  ;;  %p4167_p8 = scmp.lt.s32.totalorder %s4161_s6, %s6354_s3 }
  0x51   : > { %353 = vadd.xlane.f32.xlu2 %v352_v18  ;;  %608 = vadd.xlane.f32.xlu1 %v607_v21  ;;  %v614_v37 = vadd.f32 %v517_v29, %v516_v28  ;;  %v359_v38 = vadd.f32 %v260_v33, %v259_v32  ;;  %v521_v40 = vmul.f32 %v258_v24, %v258_v24  ;;  %v267_v1 = vld [vmem:[#allocation2 + $0xa0] sm:$0xff]  ;;  %v268_v2 = vld [vmem:[#allocation2 + $0xa8] sm:$0xff]  ;;  %v269_v3 = vld [vmem:[#allocation2 + $0xb0] sm:$0xff]  ;;  %p4163_p5 = scmp.ne.s32.totalorder %s4161_s6, %s4162_s21  ;;  %p4168_p12 = scmp.lt.s32.totalorder %s4166_s11, %s4162_s21 }
  0x52   : > { %v611_v31 = vadd.f32 %v610_v26, %v515_v25  ;;  %v618_v41 = vadd.f32 %v520_v35, %v519_v34  ;;  %v525_v46 = vmul.f32 %v262_v42, %v262_v42  ;;  %v526_v47 = vmul.f32 %v263_v43, %v263_v43  ;;  %v270_v8 = vld [vmem:[#allocation2 + $0xb8] sm:$0xff]  ;;  %v275_v17 = vld [vmem:[#allocation2 + $0xe0] sm:$0xff]  ;;  %v272_v20 = vld [vmem:[#allocation2 + $0xc8] sm:$0xff] }
  0x53   : > { %v615_v44 = vadd.f32 %v614_v37, %v518_v36  ;;  %v360_v45 = vadd.f32 %v359_v38, %v261_v39  ;;  %v522_v50 = vmul.f32 %v259_v32, %v259_v32  ;;  %v523_v51 = vmul.f32 %v260_v33, %v260_v33  ;;  %v274_v16 = vld [vmem:[#allocation2 + $0xd8] sm:$0xff]  ;;  %v271_v18 = vld [vmem:[#allocation2 + $0xc0] sm:$0xff]  ;;  %v276_v25 = vld [vmem:[#allocation2 + $0xe8] sm:$0xff]  ;;  %p4164_p7 = pnand %p4163_p5, %p4330_p9  ;;  %p4169_p1 = por %p4168_p12, %p4167_p8 }
  0x54   : > { %v619_v48 = vadd.f32 %v618_v41, %v521_v40  ;;  %v363_v52 = vadd.f32 %v263_v43, %v262_v42  ;;  %v527_v53 = vmul.f32 %v264_v49, %v264_v49  ;;  %v626_v54 = vadd.f32 %v526_v47, %v525_v46  ;;  %v273_v26 = vld [vmem:[#allocation2 + $0xd0] sm:$0xff]  ;;  %v278_v35 = vld [vmem:[#allocation2 + $0xf8] sm:$0xff]  ;;  %v279_v41 = vld [vmem:[#allocation2 + $0x100] sm:$0xff] }
  0x55   : > { %v524_v55 = vmul.f32 %v261_v39, %v261_v39  ;;  %v622_v56 = vadd.f32 %v523_v51, %v522_v50  ;;  %v528_v61 = vmul.f32 %v265_v57, %v265_v57  ;;  %v529_v62 = vmul.f32 %v266_v58, %v266_v58  ;;  %v277_v34 = vld [vmem:[#allocation2 + $0xf0] sm:$0xff]  ;;  %v280_v42 = vld [vmem:[#allocation2 + $0x108] sm:$0xff]  ;;  %p4165_p2 = pneg %p4164_p7 }
  0x56   : > { %v364_v59 = vadd.f32 %v363_v52, %v264_v49  ;;  %v627_v60 = vadd.f32 %v626_v54, %v527_v53  ;;  %v367_v4 = vadd.f32 %v266_v58, %v265_v57  ;;  %v530_v5 = vmul.f32 %v267_v1, %v267_v1  ;;  %v281_v43 = vld [vmem:[#allocation2 + $0x110] sm:$0xff]  ;;  %v282_v49 = vld [vmem:[#allocation2 + $0x118] sm:$0xff]  ;;  %v283_v58 = vld [vmem:[#allocation2 + $0x120] sm:$0xff] }
  0x57   : > { %349 = vadd.xlane.f32.xlu0 %v348_v27  ;;  %v623_v63 = vadd.f32 %v622_v56, %v524_v55  ;;  %v630_v6 = vadd.f32 %v529_v62, %v528_v61  ;;  %v371_v7 = vadd.f32 %v269_v3, %v268_v2  ;;  %v531_v10 = vmul.f32 %v268_v2, %v268_v2  ;;  %v287_v2 = vld [vmem:[#allocation2 + $0x140] sm:$0xff]  ;;  %p4170_p3 = pnand %p4169_p1, %p4165_p2 }
  0x58   : > { %v368_v9 = vadd.f32 %v367_v4, %v267_v1  ;;  %v532_v13 = vmul.f32 %v269_v3, %v269_v3  ;;  %v533_v21 = vmul.f32 %v270_v8, %v270_v8  ;;  %v379_v23 = vadd.f32 %v275_v17, %v274_v16  ;;  %v286_v1 = vld [vmem:[#allocation2 + $0x138] sm:$0xff]  ;;  %v285_v3 = vld [vmem:[#allocation2 + $0x130] sm:$0xff] }
  0x59   : > { %357 = vadd.xlane.f32.xlu2 %v356_v30  ;;  %612 = vadd.xlane.f32.xlu1 %v611_v31  ;;  %v631_v14 = vadd.f32 %v630_v6, %v530_v5  ;;  %v372_v15 = vadd.f32 %v371_v7, %v270_v8  ;;  %v375_v24 = vadd.f32 %v272_v20, %v271_v18  ;;  %v288_v8 = vld [vmem:[#allocation2 + $0x148] sm:$0xff] }
  0x5a   : > { %v634_v22 = vadd.f32 %v532_v13, %v531_v10  ;;  %v534_v28 = vmul.f32 %v271_v18, %v271_v18  ;;  %v535_v29 = vmul.f32 %v272_v20, %v272_v20  ;;  %v380_v30 = vadd.f32 %v379_v23, %v276_v25  ;;  %v289_v18 = vld [vmem:[#allocation2 + $0x150] sm:$0xff]  ;;  %v290_v20 = vld [vmem:[#allocation2 + $0x158] sm:$0xff] }
  0x5b   : > { %v376_v31 = vadd.f32 %v375_v24, %v273_v26  ;;  %v537_v32 = vmul.f32 %v274_v16, %v274_v16  ;;  %v538_v33 = vmul.f32 %v275_v17, %v275_v17  ;;  %v536_v36 = vmul.f32 %v273_v26, %v273_v26  ;;  %v292_v16 = vld [vmem:[#allocation2 + $0x168] sm:$0xff]  ;;  %v293_v17 = vld [vmem:[#allocation2 + $0x170] sm:$0xff]  ;;  %v291_v26 = vld [vmem:[#allocation2 + $0x160] sm:$0xff] }
  0x5c   : > { %v635_v27 = vadd.f32 %v634_v22, %v533_v21  ;;  %v638_v37 = vadd.f32 %v535_v29, %v534_v28  ;;  %v383_v38 = vadd.f32 %v278_v35, %v277_v34  ;;  %v539_v39 = vmul.f32 %v276_v25, %v276_v25  ;;  %v294_v25 = vld [vmem:[#allocation2 + $0x178] sm:$0xff] }
  0x5d   : > { %v642_v40 = vadd.f32 %v538_v33, %v537_v32  ;;  %v543_v46 = vmul.f32 %v280_v42, %v280_v42  ;;  %v544_v47 = vmul.f32 %v281_v43, %v281_v43  ;;  %v540_v50 = vmul.f32 %v277_v34, %v277_v34  ;;  %v295_v34 = vld [vmem:[#allocation2 + $0x180] sm:$0xff] }
  0x5e   : > { %v541_v51 = vmul.f32 %v278_v35, %v278_v35  ;;  %v387_v52 = vadd.f32 %v281_v43, %v280_v42  ;;  %v545_v53 = vmul.f32 %v282_v49, %v282_v49  ;;  %v542_v55 = vmul.f32 %v279_v41, %v279_v41  ;;  %v296_v35 = vld [vmem:[#allocation2 + $0x188] sm:$0xff]  ;;  %v298_v42 = vld [vmem:[#allocation2 + $0x198] sm:$0xff]  ;;  %v299_v43 = vld [vmem:[#allocation2 + $0x1a0] sm:$0xff] }
  0x5f   : > { %616 = vadd.xlane.f32.xlu0 %v615_v44  ;;  %v639_v44 = vadd.f32 %v638_v37, %v536_v36  ;;  %v650_v54 = vadd.f32 %v544_v47, %v543_v46  ;;  %v546_v61 = vmul.f32 %v283_v58, %v283_v58  ;;  %v548_v5 = vmul.f32 %v285_v3, %v285_v3 }
  0x60   : > { %v646_v56 = vadd.f32 %v541_v51, %v540_v50  ;;  %v388_v57 = vadd.f32 %v387_v52, %v282_v49  ;;  %v395_v7 = vadd.f32 %v287_v2, %v286_v1  ;;  %v549_v10 = vmul.f32 %v286_v1, %v286_v1  ;;  %v300_v49 = vld [vmem:[#allocation2 + $0x1a8] sm:$0xff] }
  0x61   : > { %361 = vadd.xlane.f32.xlu2 %v360_v45  ;;  %620 = vadd.xlane.f32.xlu1 %v619_v48  ;;  %v384_v45 = vadd.f32 %v383_v38, %v279_v41  ;;  %v643_v48 = vadd.f32 %v642_v40, %v539_v39  ;;  %v550_v13 = vmul.f32 %v287_v2, %v287_v2  ;;  %v297_v41 = vld [vmem:[#allocation2 + $0x190] sm:$0xff]  ;;  %v304_v2 = vld [vmem:[#allocation2 + $0x1c8] sm:$0xff] }
  0x62   : > { %v551_v21 = vmul.f32 %v288_v8, %v288_v8  ;;  %v403_v23 = vadd.f32 %v293_v17, %v292_v16  ;;  %v399_v24 = vadd.f32 %v290_v20, %v289_v18  ;;  %v552_v28 = vmul.f32 %v289_v18, %v289_v18  ;;  %v3755_v18 = vld [vmem:[%s4379_s7 + $0xe4] sm:$0xf] }
  0x63   : > { %v658_v22 = vadd.f32 %v550_v13, %v549_v10  ;;  %v553_v29 = vmul.f32 %v290_v20, %v290_v20  ;;  %v555_v32 = vmul.f32 %v292_v16, %v292_v16  ;;  %v556_v33 = vmul.f32 %v293_v17, %v293_v17  ;;  %v3789_v10 = vld [vmem:[%s4379_s7 + $0x1ec] sm:$0xf0]  ;;  %v3707_v13 = vld [vmem:[%s4379_s7 + $0x2e0] sm:$0xf]  ;;  %v3453_v20 = vld [vmem:[%s4379_s7 + $0xf0] sm:$0xf0] }
  0x64   : > { %v554_v36 = vmul.f32 %v291_v26, %v291_v26  ;;  %v407_v38 = vadd.f32 %v296_v35, %v295_v34  ;;  %v557_v39 = vmul.f32 %v294_v25, %v294_v25  ;;  %v561_v46 = vmul.f32 %v298_v42, %v298_v42 }
  0x65   : > { %v662_v37 = vadd.f32 %v553_v29, %v552_v28  ;;  %v666_v40 = vadd.f32 %v556_v33, %v555_v32  ;;  %v562_v47 = vmul.f32 %v299_v43, %v299_v43  ;;  %v558_v50 = vmul.f32 %v295_v34, %v295_v34  ;;  %v3563_v32 = vld [vmem:[%s4379_s7 + $0x1c0] sm:$0xf] }
  0x66   : > { %v559_v51 = vmul.f32 %v296_v35, %v296_v35  ;;  %v411_v52 = vadd.f32 %v299_v43, %v298_v42  ;;  %v3785_v35 = vld [vmem:[%s4379_s7 + $0x1cc] sm:$0xf0] }
  0x67   : > { %365 = vadd.xlane.f32.xlu0 %v364_v59  ;;  %v284_v59 = vld [vmem:[#allocation2 + $0x128] sm:$0xff] }
  0x68   : > { %v547_v62 = vmul.f32 %v284_v59, %v284_v59  ;;  %v391_v4 = vadd.f32 %v284_v59, %v283_v58  ;;  %v301_v59 = vld [vmem:[#allocation2 + $0x1b0] sm:$0xff] }
  0x69   : > { %628 = vadd.xlane.f32.xlu2 %v627_v60  ;;  %624 = vadd.xlane.f32.xlu1 %v623_v63  ;;  %v651_v60 = vadd.f32 %v650_v54, %v545_v53  ;;  %v647_v63 = vadd.f32 %v646_v56, %v542_v55  ;;  %v563_v53 = vmul.f32 %v300_v49, %v300_v49 }
  0x6a   : > { %v654_v6 = vadd.f32 %v547_v62, %v546_v61  ;;  %v674_v54 = vadd.f32 %v562_v47, %v561_v46  ;;  %v560_v55 = vmul.f32 %v297_v41, %v297_v41  ;;  %v670_v56 = vadd.f32 %v559_v51, %v558_v50  ;;  %v3419_v46 = vld [vmem:[%s4379_s7 + $0xa0] sm:$0xf]  ;;  %v3749_v47 = vld [vmem:[%s4379_s7 + $0xac] sm:$0xf0] }
  0x6b   : > { %v4224_v62 = vmov 384.0   ;;  %v3781_v50 = vld [vmem:[%s4379_s7 + $0x1ac] sm:$0xf0]  ;;  %v3675_v51 = vld [vmem:[%s4379_s7 + $0x2a0] sm:$0xf] }
  0x6c   : > { %v675_v58 = vadd.f32 %v674_v54, %v563_v53  ;;  %v671_v61 = vadd.f32 %v670_v56, %v560_v55  ;;  %3897 = vrcp.f32 %v4224_v62  ;;  %v3747_v55 = vld [vmem:[%s4379_s7 + $0xa4] sm:$0xf]  ;;  %v3421_v56 = vld [vmem:[%s4379_s7 + $0xb0] sm:$0xf0] }
  0x6d   : > { %v309_v62 = vld [vmem:[#allocation2 + $0x1f0] sm:$0xff] }
  0x6f   : > { %369 = vadd.xlane.f32.xlu0 %v368_v9  ;;  %v392_v9 = vadd.f32 %v391_v4, %v285_v3  ;;  %v305_v3 = vld [vmem:[#allocation2 + $0x1d0] sm:$0xff]  ;;  %v3451_v4 = vld [vmem:[%s4379_s7 + $0xe0] sm:$0xf] }
  0x71   : > { %632 = vadd.xlane.f32.xlu2 %v631_v14  ;;  %373 = vadd.xlane.f32.xlu1 %v372_v15  ;;  %v655_v14 = vadd.f32 %v654_v6, %v548_v5  ;;  %v396_v15 = vadd.f32 %v395_v7, %v288_v8  ;;  %v3757_v5 = vld [vmem:[%s4379_s7 + $0xec] sm:$0xf0]  ;;  %v3579_v6 = vld [vmem:[%s4379_s7 + $0x1e0] sm:$0xf]  ;;  %v564_v7 = vmul.f32 %v301_v59, %v301_v59 }
  0x72   : > { %v3580_v16 = vor.u32 %v3789_v10, %v3579_v6  ;;  %v4413_v28 = vpop.eup %3897  ;;  %v3659_v6 = vld [vmem:[%s4379_s7 + $0x280] sm:$0xf] }
  0x73   : > { %v472_v42 = vmul.f32 384.0, %v4413_v28  ;;  %vm476_vm0 = vweird.f32 %v4413_v28 }
  0x74   : > { %2097 = vmatpush.bf16.msra.mxu1 %v3580_v16 }
  0x77   : > { %636 = vadd.xlane.f32.xlu0 %v635_v27  ;;  %v659_v27 = vadd.f32 %v658_v22, %v551_v21  ;;  %v306_v21 = vld [vmem:[#allocation2 + $0x1d8] sm:$0xff] }
  0x78   : > { %v569_v43 = vmul.f32 %v306_v21, %v306_v21 }
  0x79   : > { %381 = vadd.xlane.f32.xlu2 %v380_v30  ;;  %377 = vadd.xlane.f32.xlu1 %v376_v31  ;;  %v404_v30 = vadd.f32 %v403_v23, %v294_v25  ;;  %v400_v31 = vadd.f32 %v399_v24, %v291_v26  ;;  %v3456_v25 = vor.u32 %v3755_v18, %v3453_v20  ;;  %v311_v18 = vld [vmem:[#allocation2 + $0x200] sm:$0xff] }
  0x7a   : > { %v567_v26 = vmul.f32 %v304_v2, %v304_v2  ;;  %v3387_v20 = vld [vmem:[%s4379_s7 + $0x60] sm:$0xf] }
  0x7b   : > { %2275 = vmatpush.bf16.msra.mxu3 %v3456_v25  ;;  %v574_v25 = vmul.f32 %v311_v18, %v311_v18 }
  0x7f   : > { %640 = vadd.xlane.f32.xlu0 %v639_v44  ;;  %v663_v44 = vadd.f32 %v662_v37, %v554_v36  ;;  %v3691_v36 = vld [vmem:[%s4379_s7 + $0x2c0] sm:$0xf]  ;;  %v3817_v37 = vld [vmem:[%s4379_s7 + $0x2cc] sm:$0xf0] }
  0x81   : > { %385 = vadd.xlane.f32.xlu2 %v384_v45  ;;  %644 = vadd.xlane.f32.xlu1 %v643_v48  ;;  %v408_v45 = vadd.f32 %v407_v38, %v297_v41  ;;  %v667_v48 = vadd.f32 %v666_v40, %v557_v39  ;;  %v3564_v38 = vor.u32 %v3785_v35, %v3563_v32  ;;  %v3751_v40 = vld [vmem:[%s4379_s7 + $0xc4] sm:$0xf]  ;;  %v3437_v41 = vld [vmem:[%s4379_s7 + $0xd0] sm:$0xf0] }
  0x82   : > { %v3692_v39 = vor.u32 %v3817_v37, %v3691_v36  ;;  %v3739_v35 = vld [vmem:[%s4379_s7 + $0x64] sm:$0xf]  ;;  %v3389_v36 = vld [vmem:[%s4379_s7 + $0x70] sm:$0xf0]  ;;  %v312_v37 = vld [vmem:[#allocation2 + $0x208] sm:$0xff] }
  0x83   : > { %2098 = vmatpush.bf16.msra.mxu1 %v3564_v38 }
  0x87   : > { %389 = vadd.xlane.f32.xlu0 %v388_v57  ;;  %v412_v57 = vadd.f32 %v411_v52, %v300_v49  ;;  %v3420_v49 = vor.u32 %v3749_v47, %v3419_v46  ;;  %v3813_v52 = vld [vmem:[%s4379_s7 + $0x2ac] sm:$0xf0]  ;;  %v3499_v47 = vld [vmem:[%s4379_s7 + $0x140] sm:$0xf] }
  0x88   : > { %v3676_v54 = vor.u32 %v3813_v52, %v3675_v51  ;;  %v3737_v46 = vld [vmem:[%s4379_s7 + $0x4c] sm:$0xf0]  ;;  %v3627_v52 = vld [vmem:[%s4379_s7 + $0x240] sm:$0xf] }
  0x89   : > { %652 = vadd.xlane.f32.xlu2 %v651_v60  ;;  %648 = vadd.xlane.f32.xlu1 %v647_v63  ;;  %v302_v60 = vld [vmem:[#allocation2 + $0x1b8] sm:$0xff]  ;;  %v303_v63 = vld [vmem:[#allocation2 + $0x1c0] sm:$0xff]  ;;  %v3769_v51 = vld [vmem:[%s4379_s7 + $0x14c] sm:$0xf0] }
  0x8a   : > { %v415_v1 = vadd.f32 %v302_v60, %v301_v59  ;;  %v565_v8 = vmul.f32 %v302_v60, %v302_v60  ;;  %v566_v22 = vmul.f32 %v303_v63, %v303_v63  ;;  %v3424_v60 = vor.u32 %v3747_v55, %v3421_v56  ;;  %v3735_v56 = vld [vmem:[%s4379_s7 + $0x44] sm:$0xf] }
  0x8c   : > { %v678_v23 = vadd.f32 %v565_v8, %v564_v7  ;;  %v416_v24 = vadd.f32 %v415_v1, %v303_v63  ;;  %v3403_v1 = vld [vmem:[%s4379_s7 + $0x80] sm:$0xf]  ;;  %v3809_v7 = vld [vmem:[%s4379_s7 + $0x28c] sm:$0xf0] }
  0x8d   : > { %v3660_v10 = vor.u32 %v3809_v7, %v3659_v6  ;;  %v3731_v7 = vld [vmem:[%s4379_s7 + $0x24] sm:$0xf] }
  0x8e   : > { %v679_v29 = vadd.f32 %v678_v23, %v566_v22  ;;  %v3515_v22 = vld [vmem:[%s4379_s7 + $0x160] sm:$0xf] }
  0x8f   : > { %393 = vadd.xlane.f32.xlu0 %v392_v9  ;;  %v3452_v9 = vor.u32 %v3757_v5, %v3451_v4  ;;  %v3777_v5 = vld [vmem:[%s4379_s7 + $0x18c] sm:$0xf0] }
  0x91   : > { %656 = vadd.xlane.f32.xlu2 %v655_v14  ;;  %397 = vadd.xlane.f32.xlu1 %v396_v15  ;;  %v3821_v14 = vld [vmem:[%s4379_s7 + $0x2ec] sm:$0xf0]  ;;  %v419_v15 = vadd.f32 %v305_v3, %v304_v2 }
  0x92   : > { %v3708_v17 = vor.u32 %v3821_v14, %v3707_v13  ;;  %2008 = vmatpush.bf16.msra.mxu0 %v3452_v9  ;;  %v3745_v2 = vld [vmem:[%s4379_s7 + $0x8c] sm:$0xf0]  ;;  %v3743_v13 = vld [vmem:[%s4379_s7 + $0x84] sm:$0xf]  ;;  %v3405_v14 = vld [vmem:[%s4379_s7 + $0x90] sm:$0xf0] }
  0x93   : > { %v420_v33 = vadd.f32 %v419_v15, %v306_v21  ;;  %v3404_v4 = vor.u32 %v3745_v2, %v3403_v1  ;;  %v3408_v16 = vor.u32 %v3743_v13, %v3405_v14  ;;  %v3741_v21 = vld [vmem:[%s4379_s7 + $0x6c] sm:$0xf0]  ;;  %v3611_v2 = vld [vmem:[%s4379_s7 + $0x220] sm:$0xf]  ;;  %v314_v14 = vld [vmem:[#allocation2 + $0x218] sm:$0xff] }
  0x94   : > { %2186 = vmatpush.bf16.msra.mxu2 %v3708_v17  ;;  %v310_v17 = vld [vmem:[#allocation2 + $0x1f8] sm:$0xff]  ;;  %v3765_v1 = vld [vmem:[%s4379_s7 + $0x12c] sm:$0xf0] }
  0x95   : > { %v427_v23 = vadd.f32 %v311_v18, %v310_v17 }
  0x97   : > { %660 = vadd.xlane.f32.xlu0 %v659_v27  ;;  %v568_v27 = vmul.f32 %v305_v3, %v305_v3  ;;  %v3531_v3 = vld [vmem:[%s4379_s7 + $0x180] sm:$0xf] }
  0x98   : > { %2187 = vmatpush.bf16.msra.mxu2 %v3692_v39  ;;  %v3532_v9 = vor.u32 %v3777_v5, %v3531_v3  ;;  %v572_v39 = vmul.f32 %v309_v62, %v309_v62  ;;  %v3797_v3 = vld [vmem:[%s4379_s7 + $0x22c] sm:$0xf0] }
  0x99   : > { %405 = vadd.xlane.f32.xlu2 %v404_v30  ;;  %401 = vadd.xlane.f32.xlu1 %v400_v31  ;;  %v3435_v30 = vld [vmem:[%s4379_s7 + $0xc0] sm:$0xf]  ;;  %v3753_v31 = vld [vmem:[%s4379_s7 + $0xcc] sm:$0xf0]  ;;  %v3612_v6 = vor.u32 %v3797_v3, %v3611_v2 }
  0x9a   : > { %v3436_v34 = vor.u32 %v3753_v31, %v3435_v30  ;;  %v3643_v30 = vld [vmem:[%s4379_s7 + $0x260] sm:$0xf]  ;;  %v3805_v31 = vld [vmem:[%s4379_s7 + $0x26c] sm:$0xf0] }
  0x9c   : > { %2009 = vmatpush.bf16.msra.mxu0 %v3436_v34  ;;  %2188 = vmatpush.bf16.msra.mxu2 %v3676_v54  ;;  %v3644_v34 = vor.u32 %v3805_v31, %v3643_v30  ;;  %v3500_v54 = vor.u32 %v3769_v51, %v3499_v47  ;;  %v3727_v31 = vld [vmem:[%s4379_s7 + $0x4] sm:$0xf] }
  0x9f   : > { %664 = vadd.xlane.f32.xlu0 %v663_v44  ;;  %v682_v44 = vadd.f32 %v568_v27, %v567_v26  ;;  %v3388_v27 = vor.u32 %v3741_v21, %v3387_v20  ;;  %v3339_v20 = vld [vmem:[%s4379_s7] sm:$0xf]  ;;  %v3729_v21 = vld [vmem:[%s4379_s7 + $0xc] sm:$0xf0] }
  0xa0   : > { %2010 = vmatpush.bf16.msra.mxu0 %v3420_v49  ;;  %2189 = vmatpush.bf16.msra.mxu2 %v3660_v10 }
  0xa1   : > { %409 = vadd.xlane.f32.xlu2 %v408_v45  ;;  %668 = vadd.xlane.f32.xlu1 %v667_v48  ;;  %v3440_v45 = vor.u32 %v3751_v40, %v3437_v41  ;;  %v3547_v48 = vld [vmem:[%s4379_s7 + $0x1a0] sm:$0xf]  ;;  %v683_v59 = vadd.f32 %v682_v44, %v569_v43  ;;  %v3392_v40 = vor.u32 %v3739_v35, %v3389_v36 }
  0xa2   : > { %v3548_v53 = vor.u32 %v3781_v50, %v3547_v48  ;;  %v428_v41 = vadd.f32 %v427_v23, %v312_v37 }
  0xa3   : > { %2276 = vmatpush.bf16.msra.mxu3 %v3440_v45  ;;  %v3371_v45 = vld [vmem:[%s4379_s7 + $0x40] sm:$0xf] }
  0xa4   : > { %2099 = vmatpush.bf16.msra.mxu1 %v3548_v53  ;;  %2011 = vmatpush.bf16.msra.mxu0 %v3404_v4  ;;  %v3372_v50 = vor.u32 %v3737_v46, %v3371_v45  ;;  %v3801_v53 = vld [vmem:[%s4379_s7 + $0x24c] sm:$0xf0]  ;;  %v318_v46 = vld [vmem:[#allocation2 + $0x238] sm:$0xff] }
  0xa5   : > { %2190 = vmatpush.bf16.msra.mxu2 %v3644_v34  ;;  %v3628_v55 = vor.u32 %v3801_v53, %v3627_v52  ;;  %v581_v53 = vmul.f32 %v318_v46, %v318_v46 }
  0xa7   : > { %413 = vadd.xlane.f32.xlu0 %v412_v57  ;;  %v307_v57 = vld [vmem:[#allocation2 + $0x1e0] sm:$0xff]  ;;  %2277 = vmatpush.bf16.msra.mxu3 %v3424_v60 }
  0xa8   : > { %2100 = vmatpush.bf16.msra.mxu1 %v3532_v9  ;;  %v570_v26 = vmul.f32 %v307_v57, %v307_v57  ;;  %2012 = vmatpush.bf16.msra.mxu0 %v3388_v27  ;;  %v3355_v60 = vld [vmem:[%s4379_s7 + $0x20] sm:$0xf] }
  0xa9   : > { %676 = vadd.xlane.f32.xlu2 %v675_v58  ;;  %672 = vadd.xlane.f32.xlu1 %v671_v61  ;;  %v473_v58 = vsub.f32 1.0, %v472_v42  ;;  %v308_v61 = vld [vmem:[#allocation2 + $0x1e8] sm:$0xff]  ;;  %v575_v42 = vmul.f32 %v312_v37, %v312_v37 }
  0xaa   : > { %v423_v63 = vadd.f32 %v308_v61, %v307_v57  ;;  %v571_v32 = vmul.f32 %v308_v61, %v308_v61  ;;  %v3373_v57 = vld [vmem:[%s4379_s7 + $0x50] sm:$0xf0]  ;;  %v3733_v61 = vld [vmem:[%s4379_s7 + $0x2c] sm:$0xf0]  ;;  %2191 = vmatpush.bf16.msra.mxu2 %v3628_v55  ;;  %v577_v55 = vmul.f32 %v314_v14, %v314_v14 }
  0xab   : > { %v474_v15 = vmul.f32 %v4413_v28, %v473_v58  ;;  %2278 = vmatpush.bf16.msra.mxu3 %v3408_v16  ;;  %v3376_v58 = vor.u32 %v3735_v56, %v3373_v57  ;;  %v315_v16 = vld [vmem:[#allocation2 + $0x220] sm:$0xff] }
  0xac   : > { %v424_v8 = vadd.f32 %v423_v63, %v309_v62  ;;  %v686_v43 = vadd.f32 %v571_v32, %v570_v26  ;;  %2013 = vmatpush.bf16.msra.mxu0 %v3372_v50  ;;  %v3483_v62 = vld [vmem:[%s4379_s7 + $0x120] sm:$0xf]  ;;  %v3356_v63 = vor.u32 %v3733_v61, %v3355_v60  ;;  %v3793_v26 = vld [vmem:[%s4379_s7 + $0x20c] sm:$0xf0]  ;;  %v3341_v32 = vld [vmem:[%s4379_s7 + $0x10] sm:$0xf0] }
  0xad   : > { %v475_v44 = vadd.f32 %v4413_v28, %v474_v15  ;;  %v3484_v5 = vor.u32 %v3765_v1, %v3483_v62  ;;  %v3344_v35 = vor.u32 %v3727_v31, %v3341_v32 }
  0xae   : > { %v687_v49 = vadd.f32 %v686_v43, %v572_v39  ;;  %2192 = vmatpush.bf16.msra.mxu2 %v3612_v6 }
  0xaf   : > { %417 = vadd.xlane.f32.xlu0 %v416_v24  ;;  %v573_v24 = vmul.f32 %v310_v17, %v310_v17  ;;  %2279 = vmatpush.bf16.msra.mxu3 %v3392_v40  ;;  %v316_v40 = vld [vmem:[#allocation2 + $0x228] sm:$0xff] }
  0xb0   : > { %2014 = vmatpush.bf16.msra.mxu0 %v3356_v63  ;;  %v579_v50 = vmul.f32 %v316_v40, %v316_v40 }
  0xb1   : > { %680 = vadd.xlane.f32.xlu2 %v679_v29  ;;  %421 = vadd.xlane.f32.xlu1 %v420_v33  ;;  %v3773_v29 = vld [vmem:[%s4379_s7 + $0x16c] sm:$0xf0]  ;;  %v690_v38 = vadd.f32 %v574_v25, %v573_v24  ;;  %v3595_v25 = vld [vmem:[%s4379_s7 + $0x200] sm:$0xf] }
  0xb2   : > { %v3516_v33 = vor.u32 %v3773_v29, %v3515_v22  ;;  %v3467_v22 = vld [vmem:[%s4379_s7 + $0x100] sm:$0xf]  ;;  %v3761_v24 = vld [vmem:[%s4379_s7 + $0x10c] sm:$0xf0]  ;;  %v3340_v29 = vor.u32 %v3729_v21, %v3339_v20  ;;  %v3596_v34 = vor.u32 %v3793_v26, %v3595_v25 }
  0xb3   : > { %v691_v48 = vadd.f32 %v690_v38, %v575_v42  ;;  %2280 = vmatpush.bf16.msra.mxu3 %v3376_v58  ;;  %v3468_v30 = vor.u32 %v3761_v24, %v3467_v22  ;;  %v578_v58 = vmul.f32 %v315_v16, %v315_v16 }
  0xb4   : > { %2101 = vmatpush.bf16.msra.mxu1 %v3516_v33  ;;  %2015 = vmatpush.bf16.msra.mxu0 %v3340_v29 }
  0xb5   : > { %2193 = vmatpush.bf16.msra.mxu2 %v3596_v34 }
  0xb7   : > { %684 = vadd.xlane.f32.xlu0 %v683_v59  ;;  %v4462_v59 = vsel %vm476_vm0, %v4413_v28, %v475_v44  ;;  %v3357_v28 = vld [vmem:[%s4379_s7 + $0x30] sm:$0xf0] }
  0xb8   : > { %2102 = vmatpush.bf16.msra.mxu1 %v3500_v54  ;;  %v3360_v13 = vor.u32 %v3731_v7, %v3357_v28 }
  0xb9   : > { %425 = vadd.xlane.f32.xlu1 %v424_v8  ;;  %429 = vadd.xlane.f32.xlu2 %v428_v41  ;;  %v313_v8 = vld [vmem:[#allocation2 + $0x210] sm:$0xff] }
  0xba   : > { %v431_v17 = vadd.f32 %v314_v14, %v313_v8  ;;  %2281 = vmatpush.bf16.msra.mxu3 %v3360_v13  ;;  %v317_v41 = vld [vmem:[#allocation2 + $0x230] sm:$0xff]  ;;  %v576_v54 = vmul.f32 %v313_v8, %v313_v8  ;;  %v4515_v13 = vld [vmem:[#allocation2 + $0x240] sm:$0xff]  ;;  %v4517_v14 = vld [vmem:[#allocation2 + $0x248] sm:$0xff] }
  0xbb   : > { %v435_v43 = vadd.f32 %v317_v41, %v316_v40  ;;  %v580_v51 = vmul.f32 %v317_v41, %v317_v41  ;;  %v439_v20 = vadd.f32 %v4517_v14, %v4515_v13  ;;  %v3758_v40 = vld [vmem:[%s4379_s7 + $0xf4] sm:$0xf0] }
  0xbc   : > { %2103 = vmatpush.bf16.msra.mxu1 %v3484_v5  ;;  %v432_v27 = vadd.f32 %v431_v17, %v315_v16  ;;  %v694_v63 = vadd.f32 %v577_v55, %v576_v54 }
  0xbd   : > { %v698_v57 = vadd.f32 %v580_v51, %v579_v50 }
  0xbe   : > { %2282 = vmatpush.bf16.msra.mxu3 %v3344_v35  ;;  %v695_v7 = vadd.f32 %v694_v63, %v578_v58 }
  0xbf   : > { %688 = vadd.xlane.f32.xlu0 %v687_v49  ;;  %v436_v49 = vadd.f32 %v435_v43, %v318_v46  ;;  %v699_v5 = vadd.f32 %v698_v57, %v581_v53 }
  0xc0   : > { %2104 = vmatpush.bf16.msra.mxu1 %v3468_v30 }
  0xc1   : > { %692 = vadd.xlane.f32.xlu1 %v691_v48  ;;  %433 = vadd.xlane.f32.xlu2 %v432_v27 }
  0xc2   : > { %v346_v4 = vpop.xlane.xlu0 %345 }
  0xc3   : > { %v4473_v9 = vmul.f32 %v4462_v59, %v346_v4 }
  0xc4   : > { %v354_v10 = vpop.xlane.xlu2 %353  ;;  %v609_v15 = vpop.xlane.xlu1 %608 }
  0xc5   : > { %v734_v18 = vmul.f32 %v609_v15, %v4462_v59  ;;  %v766_v23 = vmul.f32 %v4473_v9, %v4473_v9  ;;  %v4493_v44 = vmul.f32 %v4462_v59, %v354_v10 }
  0xc7   : > { %v798_v33 = vsub.f32 %v734_v18, %v766_v23  ;;  %v768_v56 = vmul.f32 %v4493_v44, %v4493_v44  ;;  %437 = vadd.xlane.f32.xlu0 %v436_v49  ;;  %v4524_v18 = vld [vmem:[#allocation2 + $0x250] sm:$0xff] }
  0xc8   : > { %v440_v25 = vadd.f32 %v439_v20, %v4524_v18 }
  0xc9   : > { %v4486_v36 = vadd.f32 1e-06, %v798_v33  ;;  %700 = vadd.xlane.f32.xlu2 %v699_v5  ;;  %696 = vadd.xlane.f32.xlu1 %v695_v7  ;;  %v3963_v5 = vld [vmem:[#allocation2 + $0x8] sm:$0xff] }
  0xca   : > { %v350_v37 = vpop.xlane.xlu0 %349 }
  0xcb   : > { %v4489_v38 = vmul.f32 %v4462_v59, %v350_v37  ;;  %3899 = vrsqrt.f32 %v4486_v36  ;;  %vm868_vm3 = vweird.f32 %v4486_v36 }
  0xcc   : > { %v358_v39 = vpop.xlane.xlu2 %357  ;;  %v613_v42 = vpop.xlane.xlu1 %612 }
  0xcd   : > { %v735_v45 = vmul.f32 %v613_v42, %v4462_v59  ;;  %v767_v47 = vmul.f32 %v4489_v38, %v4489_v38  ;;  %v4499_v48 = vmul.f32 %v4462_v59, %v358_v39  ;;  %v3459_v39 = vld [vmem:[%s4379_s7 + $0xe8] sm:$0xf] }
  0xcf   : > { %v799_v52 = vsub.f32 %v735_v45, %v767_v47  ;;  %v769_v4 = vmul.f32 %v4499_v48, %v4499_v48  ;;  %441 = vadd.xlane.f32.xlu0 %v440_v25 }
  0xd1   : > { %v4503_v60 = vpop.eup %3899  ;;  %v4505_v61 = vadd.f32 1e-06, %v799_v52  ;;  %v3460_v52 = vor.u32 %v3758_v40, %v3459_v39 }
  0xd2   : > { %v617_v62 = vpop.xlane.xlu0 %616  ;;  %v863_v1 = vmul.f32 %v4503_v60, %v4486_v36  ;;  %vm869_vm1 = vweird.f32 %v4503_v60  ;;  %v1185_v36 = vsub.f32 %v4390_v11, %v4489_v38  ;;  %v1183_v11 = vsub.f32 %v3963_v5, %v4473_v9  ;;  %v3966_v5 = vld [vmem:[#allocation2 + $0x48] sm:$0xff] }
  0xd3   : > { %v736_v2 = vmul.f32 %v617_v62, %v4462_v59  ;;  %3901 = vrsqrt.f32 %v4505_v61  ;;  %vm870_vm4 = vmor %vm868_vm3, %vm869_vm1  ;;  %vm878_vm5 = vweird.f32 %v4505_v61  ;;  %2542 = vmatpush.bf16.msrb.mxu2 %v3460_v52 }
  0xd4   : > { %v362_v3 = vpop.xlane.xlu2 %361  ;;  %v621_v6 = vpop.xlane.xlu1 %620  ;;  %v864_v28 = vmul.f32 %v4503_v60, %v863_v1 }
  0xd5   : > { %v800_v8 = vsub.f32 %v736_v2, %v768_v56  ;;  %v737_v10 = vmul.f32 %v621_v6, %v4462_v59  ;;  %v4522_v16 = vmul.f32 %v4462_v59, %v362_v3  ;;  %v1182_v56 = vsub.f32 %v4385_v0, %v4473_v9 }
  0xd6   : > { %v865_v21 = vmul.f32 0.5, %v864_v28  ;;  %v1186_v0 = vsub.f32 %v4392_v12, %v4489_v38  ;;  %v1187_v6 = vsub.f32 %v4396_v19, %v4489_v38  ;;  %v3964_v28 = vld [vmem:[#allocation2 + $0x10] sm:$0xff] }
  0xd7   : > { %v4519_v15 = vadd.f32 1e-06, %v800_v8  ;;  %v801_v17 = vsub.f32 %v737_v10, %v769_v4  ;;  %v770_v29 = vmul.f32 %v4522_v16, %v4522_v16  ;;  %v3790_v4 = vld [vmem:[%s4379_s7 + $0x1f4] sm:$0xf0]  ;;  %v1184_v12 = vsub.f32 %v3964_v28, %v4473_v9 }
  0xd8   : > { %v866_v30 = vsub.f32 1.5, %v865_v21 }
  0xd9   : > { %3903 = vrsqrt.f32 %v4519_v15  ;;  %v4529_v22 = vadd.f32 1e-06, %v801_v17  ;;  %v3902_v23 = vpop.eup %3901  ;;  %vm888_vm11 = vweird.f32 %v4519_v15 }
  0xda   : > { %v366_v24 = vpop.xlane.xlu0 %365  ;;  %v873_v26 = vmul.f32 %v3902_v23, %v4505_v61  ;;  %v867_v45 = vmul.f32 %v4503_v60, %v866_v30  ;;  %vm879_vm2 = vweird.f32 %v3902_v23 }
  0xdb   : > { %3905 = vrsqrt.f32 %v4529_v22  ;;  %v4537_v31 = vmul.f32 %v4462_v59, %v366_v24  ;;  %vm880_vm6 = vmor %vm878_vm5, %vm879_vm2  ;;  %vm898_vm7 = vweird.f32 %v4529_v22 }
  0xdc   : > { %v629_v27 = vpop.xlane.xlu2 %628  ;;  %v625_v33 = vpop.xlane.xlu1 %624  ;;  %v874_v34 = vmul.f32 %v3902_v23, %v873_v26  ;;  %v871_v58 = vsel %vm870_vm4, %v4503_v60, %v867_v45  ;;  %v3587_v60 = vld [vmem:[%s4379_s7 + $0x1e8] sm:$0xf]  ;;  %v3787_v45 = vld [vmem:[%s4379_s7 + $0x1e4] sm:$0xf] }
  0xdd   : > { %v739_v32 = vmul.f32 %v629_v27, %v4462_v59  ;;  %v738_v35 = vmul.f32 %v625_v33, %v4462_v59  ;;  %v771_v37 = vmul.f32 %v4537_v31, %v4537_v31  ;;  %v1278_v8 = vmul.f32 %v1182_v56, %v871_v58  ;;  %v3819_v33 = vld [vmem:[%s4379_s7 + $0x2e4] sm:$0xf] }
  0xde   : > { %v875_v42 = vmul.f32 0.5, %v874_v34  ;;  %v3588_v24 = vor.u32 %v3790_v4, %v3587_v60  ;;  %v1279_v26 = vmul.f32 %v1183_v11, %v871_v58  ;;  %v1280_v27 = vmul.f32 %v1184_v12, %v871_v58  ;;  %v3709_v34 = vld [vmem:[%s4379_s7 + $0x2f0] sm:$0xf0] }
  0xdf   : > { %v4545_v41 = vpop.eup %3903  ;;  %v802_v43 = vsub.f32 %v738_v35, %v770_v29  ;;  %v803_v47 = vsub.f32 %v739_v32, %v771_v37  ;;  %v3965_v60 = vld [vmem:[#allocation2 + $0x30] sm:$0xff] }
  0xe0   : > { %v883_v46 = vmul.f32 %v4545_v41, %v4519_v15  ;;  %v876_v50 = vsub.f32 1.5, %v875_v42  ;;  %2631 = vmatpush.bf16.msrb.mxu3 %v3588_v24  ;;  %vm889_vm9 = vweird.f32 %v4545_v41  ;;  %v1188_v4 = vsub.f32 %v3965_v60, %v4493_v44  ;;  %v3969_v24 = vld [vmem:[#allocation2 + $0x58] sm:$0xff] }
  0xe1   : > { %v4551_v49 = vpop.eup %3905  ;;  %v4553_v51 = vadd.f32 1e-06, %v802_v43  ;;  %v4558_v54 = vadd.f32 1e-06, %v803_v47  ;;  %vm890_vm12 = vmor %vm888_vm11, %vm889_vm9 }
  0xe2   : > { %v893_v53 = vmul.f32 %v4551_v49, %v4529_v22  ;;  %v370_v55 = vpop.xlane.xlu0 %369  ;;  %v877_v57 = vmul.f32 %v3902_v23, %v876_v50  ;;  %v884_v62 = vmul.f32 %v4545_v41, %v883_v46  ;;  %v3581_v46 = vld [vmem:[%s4379_s7 + $0x1f0] sm:$0xf0]  ;;  %vm899_vm8 = vweird.f32 %v4551_v49 }
  0xe3   : > { %3907 = vrsqrt.f32 %v4553_v51  ;;  %v4572_v61 = vmul.f32 %v4462_v59, %v370_v55  ;;  %v3712_v55 = vor.u32 %v3819_v33, %v3709_v34  ;;  %vm900_vm10 = vmor %vm898_vm7, %vm899_vm8  ;;  %v1191_v22 = vsub.f32 %v3966_v5, %v4499_v48 }
  0xe4   : > { %v894_v63 = vmul.f32 %v4551_v49, %v893_v53  ;;  %v633_v1 = vpop.xlane.xlu2 %632  ;;  %v374_v2 = vpop.xlane.xlu1 %373  ;;  %v881_v3 = vsel %vm880_vm6, %v3902_v23, %v877_v57  ;;  %3909 = vrsqrt.f32 %v4558_v54  ;;  %v885_v20 = vmul.f32 0.5, %v884_v62 }
  0xe5   : > { %v1281_v10 = vmul.f32 %v1185_v36, %v881_v3  ;;  %v1282_v17 = vmul.f32 %v1186_v0, %v881_v3  ;;  %v4582_v21 = vmul.f32 %v4462_v59, %v374_v2  ;;  %v1283_v23 = vmul.f32 %v1187_v6, %v881_v3  ;;  %2453 = vmatpush.bf16.msrb.mxu1 %v3712_v55 }
  0xe6   : > { %v895_v7 = vmul.f32 0.5, %v894_v63  ;;  %v740_v25 = vmul.f32 %v633_v1, %v4462_v59  ;;  %v772_v19 = vmul.f32 %v4572_v61, %v4572_v61  ;;  %v886_v37 = vsub.f32 1.5, %v885_v20 }
  0xe7   : > { %v4587_v38 = vpack.c.bf16 %v1281_v10, %v1278_v8  ;;  %v4592_v32 = vpack.c.bf16 %v1282_v17, %v1279_v26  ;;  %v4599_v39 = vpack.c.bf16 %v1283_v23, %v1280_v27  ;;  %v773_v40 = vmul.f32 %v4582_v21, %v4582_v21  ;;  %v3967_v17 = vld [vmem:[#allocation2 + $0x38] sm:$0xff]  ;;  %v323_v27 = vld [vmem:[#allocation2 + $0x260] sm:$0xff] }
  0xe8   : > { %v896_v9 = vsub.f32 1.5, %v895_v7  ;;  %v804_v47 = vsub.f32 %v740_v25, %v772_v19  ;;  %v3584_v57 = vor.u32 %v3787_v45, %v3581_v46  ;;  %v887_v58 = vmul.f32 %v4545_v41, %v886_v37  ;;  %v324_v45 = vld [vmem:[#allocation2 + $0x268] sm:$0xff] }
  0xe9   : > { %v4589_v30 = vpop.eup %3907  ;;  %2016 = vmatmul.bf16.vlgmr.msra.gmra.mxu0 %v4587_v38  ;;  %2283 = vmatmul.bf16.vlgmr.msra.gmra.mxu3 %v4587_v38  ;;  %v1189_v20 = vsub.f32 %v3967_v17, %v4493_v44  ;;  %v1193_v25 = vsub.f32 %v3969_v24, %v4499_v48  ;;  %vm908_vm13 = vweird.f32 %v4553_v51  ;;  %vm918_vm14 = vweird.f32 %v4558_v54  ;;  %v4693_v17 = vld [vmem:[#allocation2 + $0x270] sm:$0xff] }
  0xea   : > { %v637_v29 = vpop.xlane.xlu0 %636  ;;  %v4597_v35 = vpop.eup %3909  ;;  %2105 = vmatmul.bf16.vlgmr.msra.gmra.mxu1 %v4592_v32  ;;  %v897_v52 = vmul.f32 %v4551_v49, %v896_v9  ;;  %v903_v53 = vmul.f32 %v4589_v30, %v4553_v51  ;;  %2194 = vmatmul.bf16.vlgmr.msra.gmra.mxu2 %v4599_v39  ;;  %v4622_v63 = vadd.f32 1e-06, %v804_v47  ;;  %v891_v6 = vsel %vm890_vm12, %v4545_v41, %v887_v58  ;;  %v3968_v41 = vld [vmem:[#allocation2 + $0x50] sm:$0xff]  ;;  %v322_v9 = vld [vmem:[#allocation2 + $0x258] sm:$0xff] }
  0xeb   : > { %v741_v50 = vmul.f32 %v637_v29, %v4462_v59  ;;  %v913_v56 = vmul.f32 %v4597_v35, %v4558_v54  ;;  %2364 = vmatpush.bf16.msrb.mxu0 %v3584_v57  ;;  %v1192_v23 = vsub.f32 %v3968_v41, %v4499_v48  ;;  %v3970_v29 = vld [vmem:[#allocation2 + $0x40] sm:$0xff]  ;;  %v1284_v37 = vmul.f32 %v1188_v4, %v891_v6 }
  0xec   : > { %v378_v42 = vpop.xlane.xlu1 %377  ;;  %v382_v43 = vpop.xlane.xlu2 %381  ;;  %v901_v2 = vsel %vm900_vm10, %v4551_v49, %v897_v52  ;;  %v904_v0 = vmul.f32 %v4589_v30, %v903_v53  ;;  %3911 = vrsqrt.f32 %v4622_v63  ;;  %v1190_v33 = vsub.f32 %v3970_v29, %v4493_v44 }
  0xed   : > { %v805_v36 = vsub.f32 %v741_v50, %v773_v40  ;;  %v4618_v62 = vmul.f32 %v4462_v59, %v378_v42  ;;  %v4625_v1 = vmul.f32 %v4462_v59, %v382_v43  ;;  %v914_v11 = vmul.f32 %v4597_v35, %v913_v56 }
  0xee   : > { %v1287_v10 = vmul.f32 %v1191_v22, %v901_v2  ;;  %v905_v19 = vmul.f32 0.5, %v904_v0  ;;  %v1288_v42 = vmul.f32 %v1192_v23, %v901_v2  ;;  %v1289_v43 = vmul.f32 %v1193_v25, %v901_v2 }
  0xef   : > { %v4636_v7 = vadd.f32 1e-06, %v805_v36  ;;  %v774_v15 = vmul.f32 %v4618_v62, %v4618_v62  ;;  %v775_v12 = vmul.f32 %v4625_v1, %v4625_v1  ;;  %v915_v34 = vmul.f32 0.5, %v914_v11 }
  0xf0   : > { %v4651_v47 = vpack.c.bf16 %v1287_v10, %v1284_v37  ;;  %v1285_v48 = vmul.f32 %v1189_v20, %v891_v6  ;;  %v443_v50 = vadd.f32 %v323_v27, %v322_v9  ;;  %v906_v52 = vsub.f32 1.5, %v905_v19  ;;  %v4695_v20 = vld [vmem:[#allocation2 + $0x278] sm:$0xff] }
  0xf1   : > { %3913 = vrsqrt.f32 %v4636_v7  ;;  %vm909_vm15 = vweird.f32 %v4589_v30  ;;  %v1286_v44 = vmul.f32 %v1190_v33, %v891_v6  ;;  %v916_v55 = vsub.f32 1.5, %v915_v34  ;;  %v3972_v34 = vld [vmem:[#allocation2 + $0x68] sm:$0xff] }
  0xf2   : > { %v641_v3 = vpop.xlane.xlu0 %640  ;;  %v4655_v53 = vpop.eup %3911  ;;  %vm919_vm0 = vweird.f32 %v4597_v35  ;;  %v4659_v56 = vpack.c.bf16 %v1288_v42, %v1285_v48  ;;  %v444_v57 = vadd.f32 %v443_v50, %v324_v45  ;;  %v582_v2 = vmul.f32 %v4515_v13, %v4515_v13  ;;  %vm910_vm1 = vmor %vm908_vm13, %vm909_vm15 }
  0xf3   : > { %v742_v49 = vmul.f32 %v641_v3, %v4462_v59  ;;  %v4664_v36 = vpack.c.bf16 %v1289_v43, %v1286_v44  ;;  %v583_v0 = vmul.f32 %v4517_v14, %v4517_v14  ;;  %v584_v4 = vmul.f32 %v4524_v18, %v4524_v18  ;;  %vm4701_vm2 = vmor %vm918_vm14, %vm919_vm0  ;;  %v3973_v43 = vld [vmem:[#allocation2 + $0x78] sm:$0xff]  ;;  %v3974_v44 = vld [vmem:[#allocation2 + $0x70] sm:$0xff] }
  0xf4   : > { %v645_v28 = vpop.xlane.xlu1 %644  ;;  %v386_v26 = vpop.xlane.xlu2 %385  ;;  %445 = vadd.xlane.f32.xlu1 %v444_v57  ;;  %v585_v5 = vmul.f32 %v322_v9, %v322_v9  ;;  %v586_v22 = vmul.f32 %v323_v27, %v323_v27  ;;  %v907_v6 = vmul.f32 %v4589_v30, %v906_v52  ;;  %v923_v13 = vmul.f32 %v4655_v53, %v4622_v63  ;;  %v3971_v9 = vld [vmem:[#allocation2 + $0x60] sm:$0xff] }
  0xf5   : > { %v743_v8 = vmul.f32 %v645_v28, %v4462_v59  ;;  %v806_v40 = vsub.f32 %v742_v49, %v774_v15  ;;  %v702_v14 = vadd.f32 %v583_v0, %v582_v2  ;;  %v587_v15 = vmul.f32 %v324_v45, %v324_v45 }
  0xf6   : > { %v706_v49 = vadd.f32 %v586_v22, %v585_v5  ;;  %v4691_v18 = vmul.f32 %v4462_v59, %v386_v26  ;;  %v911_v25 = vsel %vm910_vm1, %v4589_v30, %v907_v6  ;;  %v924_v19 = vmul.f32 %v4655_v53, %v923_v13  ;;  %v4710_v26 = vld [vmem:[#allocation2 + $0x280] sm:$0xff]  ;;  %v3443_v13 = vld [vmem:[%s4379_s7 + $0xc8] sm:$0xf] }
  0xf7   : > { %v807_v46 = vsub.f32 %v743_v8, %v775_v12  ;;  %v4662_v58 = vadd.f32 1e-06, %v806_v40  ;;  %v4675_v11 = vpop.eup %3913  ;;  %v917_v12 = vmul.f32 %v4597_v35, %v916_v55  ;;  %v703_v8 = vadd.f32 %v702_v14, %v584_v4  ;;  %v3975_v55 = vld [vmem:[#allocation2 + $0x80] sm:$0xff] }
  0xf8   : > { %v933_v51 = vmul.f32 %v4675_v11, %v4636_v7  ;;  %v707_v23 = vadd.f32 %v706_v49, %v587_v15  ;;  %v1194_v54 = vsub.f32 %v3971_v9, %v4522_v16  ;;  %v447_v33 = vadd.f32 %v4695_v20, %v4693_v17  ;;  %v3571_v49 = vld [vmem:[%s4379_s7 + $0x1c8] sm:$0xf] }
  0xf9   : > { %2021 = vmatmul.bf16.gmra.mxu0 %v4651_v47  ;;  %2288 = vmatmul.bf16.gmra.mxu3 %v4651_v47  ;;  %v4670_v60 = vadd.f32 1e-06, %v807_v46  ;;  %3915 = vrsqrt.f32 %v4662_v58  ;;  %v1195_v30 = vsub.f32 %v3972_v34, %v4522_v16  ;;  %v921_v37 = vsel %vm4701_vm2, %v4597_v35, %v917_v12  ;;  %v3786_v12 = vld [vmem:[%s4379_s7 + $0x1d4] sm:$0xf0] }
  0xfa   : > { %v390_v3 = vpop.xlane.xlu0 %389  ;;  %2110 = vmatmul.bf16.gmra.mxu1 %v4659_v56  ;;  %2199 = vmatmul.bf16.gmra.mxu2 %v4664_v36  ;;  %v776_v40 = vmul.f32 %v4691_v18, %v4691_v18  ;;  %v1197_v45 = vsub.f32 %v3973_v43, %v4537_v31  ;;  %v934_v46 = vmul.f32 %v4675_v11, %v933_v51  ;;  %v4732_v2 = vmul.f32 0.5, %v924_v19  ;;  %v329_v51 = vld [vmem:[#allocation2 + $0x290] sm:$0xff] }
  0xfb   : > { %v4682_v28 = vmul.f32 %v4462_v59, %v390_v3  ;;  %3917 = vrsqrt.f32 %v4670_v60  ;;  %704 = vadd.xlane.f32.xlu2 %v703_v8  ;;  %708 = vadd.xlane.f32.xlu0 %v707_v23  ;;  %v448_v48 = vadd.f32 %v447_v33, %v4710_v26  ;;  %v1290_v50 = vmul.f32 %v1194_v54, %v911_v25  ;;  %v3976_v3 = vld [vmem:[#allocation2 + $0x88] sm:$0xff]  ;;  %v3815_v23 = vld [vmem:[%s4379_s7 + $0x2c4] sm:$0xf] }
  0xfc   : > { %v653_v10 = vpop.xlane.xlu2 %652  ;;  %v649_v24 = vpop.xlane.xlu1 %648  ;;  %v1196_v35 = vsub.f32 %v3974_v44, %v4522_v16  ;;  %v1198_v57 = vsub.f32 %v3975_v55, %v4537_v31  ;;  %v1199_v4 = vsub.f32 %v3976_v3, %v4537_v31  ;;  %v1293_v22 = vmul.f32 %v1197_v45, %v921_v37  ;;  %v3754_v16 = vld [vmem:[%s4379_s7 + $0xd4] sm:$0xf0]  ;;  %v328_v8 = vld [vmem:[#allocation2 + $0x288] sm:$0xff] }
  0xfd   : > { %v745_v27 = vmul.f32 %v653_v10, %v4462_v59  ;;  %v777_v29 = vmul.f32 %v4682_v28, %v4682_v28  ;;  %v744_v42 = vmul.f32 %v649_v24, %v4462_v59  ;;  %449 = vadd.xlane.f32.xlu1 %v448_v48  ;;  %v1291_v6 = vmul.f32 %v1195_v30, %v911_v25  ;;  %v3693_v24 = vld [vmem:[%s4379_s7 + $0x2d0] sm:$0xf0] }
  0xfe   : > { %vm928_vm3 = vweird.f32 %v4622_v63  ;;  %vm938_vm4 = vweird.f32 %v4636_v7  ;;  %v1294_v15 = vmul.f32 %v1198_v57, %v921_v37  ;;  %vm929_vm5 = vweird.f32 %v4655_v53  ;;  %v4790_v63 = vld [vmem:[#allocation2 + $0x2a8] sm:$0xff] }
  0xff   : > { %v4728_v52 = vpop.eup %3915  ;;  %v809_v5 = vsub.f32 %v745_v27, %v777_v29  ;;  %v808_v14 = vsub.f32 %v744_v42, %v776_v40  ;;  %v935_v31 = vmul.f32 0.5, %v934_v46  ;;  %v4744_v10 = vpack.c.bf16 %v1293_v22, %v1290_v50  ;;  %v330_v29 = vld [vmem:[#allocation2 + $0x298] sm:$0xff]  ;;  %vm4778_vm7 = vmor %vm928_vm3, %vm929_vm5 }
 0x100   : > { %v1292_v41 = vmul.f32 %v1196_v35, %v911_v25  ;;  %v926_v19 = vsub.f32 1.5, %v4732_v2  ;;  %v943_v9 = vmul.f32 %v4728_v52, %v4662_v58  ;;  %v4753_v27 = vpack.c.bf16 %v1294_v15, %v1291_v6  ;;  %v4784_v6 = vld [vmem:[#allocation2 + $0x2a0] sm:$0xff]  ;;  %v3565_v15 = vld [vmem:[%s4379_s7 + $0x1d0] sm:$0xf0] }
 0x101   : > { %v4734_v0 = vpop.eup %3917  ;;  %v4755_v33 = vadd.f32 1e-06, %v809_v5  ;;  %v1295_v34 = vmul.f32 %v1199_v4, %v921_v37  ;;  %v3444_v25 = vor.u32 %v3754_v16, %v3443_v13  ;;  %v3572_v30 = vor.u32 %v3786_v12, %v3571_v49  ;;  %v3977_v49 = vld [vmem:[#allocation2 + $0x90] sm:$0xff] }
 0x102   : > { %v953_v54 = vmul.f32 %v4734_v0, %v4670_v60  ;;  %v4759_v40 = vadd.f32 1e-06, %v808_v14  ;;  %v451_v42 = vadd.f32 %v329_v51, %v328_v8  ;;  %v3696_v43 = vor.u32 %v3815_v23, %v3693_v24  ;;  %v394_v48 = vpop.xlane.xlu0 %393  ;;  %v3783_v14 = vld [vmem:[%s4379_s7 + $0x1c4] sm:$0xf] }
 0x103   : > { %v591_v45 = vmul.f32 %v328_v8, %v328_v8  ;;  %v936_v46 = vsub.f32 1.5, %v935_v31  ;;  %v4762_v50 = vpack.c.bf16 %v1295_v34, %v1292_v41  ;;  %2543 = vmatpush.bf16.msrb.mxu2 %v3444_v25  ;;  %v592_v44 = vmul.f32 %v329_v51, %v329_v51  ;;  %2632 = vmatpush.bf16.msrb.mxu3 %v3572_v30  ;;  %v3978_v41 = vld [vmem:[#allocation2 + $0x98] sm:$0xff]  ;;  %v3979_v23 = vld [vmem:[#allocation2 + $0xa0] sm:$0xff] }
 0x104   : > { %v593_v35 = vmul.f32 %v330_v29, %v330_v29  ;;  %vm939_vm6 = vweird.f32 %v4675_v11  ;;  %v452_v37 = vadd.f32 %v451_v42, %v330_v29  ;;  %2454 = vmatpush.bf16.msrb.mxu1 %v3696_v43  ;;  %v588_v55 = vmul.f32 %v4693_v17, %v4693_v17  ;;  %v398_v5 = vpop.xlane.xlu1 %397  ;;  %v3980_v29 = vld [vmem:[#allocation2 + $0xa8] sm:$0xff]  ;;  %v657_v25 = vpop.xlane.xlu2 %656 }
 0x105   : > { %v589_v57 = vmul.f32 %v4695_v20, %v4695_v20  ;;  %v944_v2 = vmul.f32 %v4728_v52, %v943_v9  ;;  %3919 = vrsqrt.f32 %v4755_v33  ;;  %v714_v3 = vadd.f32 %v592_v44, %v591_v45  ;;  %vm4797_vm8 = vmor %vm938_vm4, %vm939_vm6  ;;  %v3981_v45 = vld [vmem:[#allocation2 + $0xb0] sm:$0xff] }
 0x106   : > { %v590_v4 = vmul.f32 %v4710_v26, %v4710_v26  ;;  %v954_v20 = vmul.f32 %v4734_v0, %v953_v54  ;;  %3921 = vrsqrt.f32 %v4759_v40  ;;  %453 = vadd.xlane.f32.xlu2 %v452_v37  ;;  %v927_v13 = vmul.f32 %v4655_v53, %v926_v19  ;;  %v333_v54 = vld [vmem:[#allocation2 + $0x2b0] sm:$0xff]  ;;  %v3982_v37 = vld [vmem:[#allocation2 + $0xb8] sm:$0xff] }
 0x107   : > { %v710_v22 = vadd.f32 %v589_v57, %v588_v55  ;;  %v937_v26 = vmul.f32 %v4675_v11, %v936_v46  ;;  %v715_v16 = vadd.f32 %v714_v3, %v593_v35  ;;  %v1200_v12 = vsub.f32 %v3977_v49, %v4572_v61  ;;  %v336_v49 = vld [vmem:[#allocation2 + $0x2c8] sm:$0xff] }
 0x108   : > { %v1201_v51 = vsub.f32 %v3978_v41, %v4572_v61  ;;  %v1202_v24 = vsub.f32 %v3979_v23, %v4572_v61  ;;  %v4803_v19 = vmul.f32 0.5, %v944_v2  ;;  %v4806_v9 = vmul.f32 %v4462_v59, %v394_v48 }
 0x109   : > { %2026 = vmatmul.bf16.gmra.mxu0 %v4744_v10  ;;  %2293 = vmatmul.bf16.gmra.mxu3 %v4744_v10  ;;  %v711_v31 = vadd.f32 %v710_v22, %v590_v4  ;;  %v1203_v7 = vsub.f32 %v3980_v29, %v4582_v21  ;;  %v955_v34 = vmul.f32 0.5, %v954_v20  ;;  %v3568_v30 = vor.u32 %v3783_v14, %v3565_v15  ;;  %v334_v22 = vld [vmem:[#allocation2 + $0x2b8] sm:$0xff] }
 0x10a   : > { %2115 = vmatmul.bf16.gmra.mxu1 %v4753_v27  ;;  %2204 = vmatmul.bf16.gmra.mxu2 %v4762_v50  ;;  %v455_v42 = vadd.f32 %v4790_v63, %v4784_v6  ;;  %v931_v61 = vsel %vm4778_vm7, %v4655_v53, %v927_v13  ;;  %v1204_v46 = vsub.f32 %v3981_v45, %v4582_v21  ;;  %vm948_vm9 = vweird.f32 %v4662_v58  ;;  %v661_v3 = vpop.xlane.xlu0 %660  ;;  %v335_v13 = vld [vmem:[#allocation2 + $0x2c0] sm:$0xff] }
 0x10b   : > { %716 = vadd.xlane.f32.xlu1 %v715_v16  ;;  %712 = vadd.xlane.f32.xlu0 %v711_v31  ;;  %v4811_v43 = vpop.eup %3919  ;;  %v941_v48 = vsel %vm4797_vm8, %v4675_v11, %v937_v26  ;;  %v4821_v44 = vmul.f32 %v4462_v59, %v398_v5  ;;  %v1205_v55 = vsub.f32 %v3982_v37, %v4582_v21  ;;  %vm958_vm10 = vweird.f32 %v4670_v60 }
 0x10c   : > { %v4823_v35 = vpop.eup %3921  ;;  %2365 = vmatpush.bf16.msrb.mxu0 %v3568_v30  ;;  %v456_v53 = vadd.f32 %v455_v42, %v333_v54  ;;  %v946_v57 = vsub.f32 1.5, %v4803_v19  ;;  %vm949_vm11 = vweird.f32 %v4728_v52  ;;  %v746_v11 = vmul.f32 %v657_v25, %v4462_v59  ;;  %v402_v4 = vpop.xlane.xlu1 %401 }
 0x10d   : > { %v778_v2 = vmul.f32 %v4806_v9, %v4806_v9  ;;  %v956_v5 = vsub.f32 1.5, %v955_v34  ;;  %v973_v21 = vmul.f32 %v4811_v43, %v4755_v33  ;;  %v1296_v17 = vmul.f32 %v1200_v12, %v931_v61  ;;  %v406_v45 = vpop.xlane.xlu2 %405  ;;  %vm4870_vm14 = vmor %vm948_vm9, %vm949_vm11 }
 0x10e   : > { %457 = vadd.xlane.f32.xlu2 %v456_v53  ;;  %v1299_v20 = vmul.f32 %v1203_v7, %v941_v48  ;;  %v963_v26 = vmul.f32 %v4823_v35, %v4759_v40  ;;  %v779_v16 = vmul.f32 %v4821_v44, %v4821_v44  ;;  %v1297_v14 = vmul.f32 %v1201_v51, %v931_v61 }
 0x10f   : > { %v1300_v15 = vmul.f32 %v1204_v46, %v941_v48  ;;  %v747_v8 = vmul.f32 %v661_v3, %v4462_v59  ;;  %v1298_v41 = vmul.f32 %v1202_v24, %v931_v61  ;;  %v1301_v23 = vmul.f32 %v1205_v55, %v941_v48  ;;  %v4880_v3 = vld [vmem:[#allocation2 + $0x2d0] sm:$0xff] }
 0x110   : > { %v4840_v31 = vpack.c.bf16 %v1299_v20, %v1296_v17  ;;  %v810_v19 = vsub.f32 %v746_v11, %v778_v2  ;;  %v459_v29 = vadd.f32 %v335_v13, %v334_v22  ;;  %v597_v7 = vmul.f32 %v334_v22, %v334_v22 }
 0x111   : > { %v4842_v12 = vpack.c.bf16 %v1300_v15, %v1297_v14  ;;  %vm959_vm12 = vweird.f32 %v4734_v0  ;;  %v4846_v34 = vpack.c.bf16 %v1301_v23, %v1298_v41  ;;  %v598_v51 = vmul.f32 %v335_v13, %v335_v13  ;;  %v3984_v13 = vld [vmem:[#allocation2 + $0xc0] sm:$0xff]  ;;  %v3986_v23 = vld [vmem:[#allocation2 + $0xe8] sm:$0xff] }
 0x112   : > { %v599_v25 = vmul.f32 %v336_v49, %v336_v49  ;;  %v460_v30 = vadd.f32 %v459_v29, %v336_v49  ;;  %v594_v24 = vmul.f32 %v4784_v6, %v4784_v6  ;;  %v595_v42 = vmul.f32 %v4790_v63, %v4790_v63  ;;  %vm4860_vm13 = vmor %vm958_vm10, %vm959_vm12  ;;  %v339_v41 = vld [vmem:[#allocation2 + $0x2e0] sm:$0xff] }
 0x113   : > { %v596_v61 = vmul.f32 %v333_v54, %v333_v54  ;;  %v957_v46 = vmul.f32 %v4734_v0, %v956_v5  ;;  %v811_v48 = vsub.f32 %v747_v8, %v779_v16  ;;  %v722_v37 = vadd.f32 %v598_v51, %v597_v7  ;;  %v4882_v5 = vld [vmem:[#allocation2 + $0x2d8] sm:$0xff]  ;;  %v3985_v16 = vld [vmem:[#allocation2 + $0xe0] sm:$0xff]  ;;  %v665_v8 = vpop.xlane.xlu0 %664  ;;  %v340_v54 = vld [vmem:[#allocation2 + $0x2e8] sm:$0xff] }
 0x114   : > { %v947_v55 = vmul.f32 %v4728_v52, %v946_v57  ;;  %v974_v6 = vmul.f32 %v4811_v43, %v973_v21  ;;  %461 = vadd.xlane.f32.xlu0 %v460_v30  ;;  %v718_v63 = vadd.f32 %v595_v42, %v594_v24  ;;  %v964_v60 = vmul.f32 %v4823_v35, %v963_v26  ;;  %v3983_v21 = vld [vmem:[#allocation2 + $0xd8] sm:$0xff]  ;;  %v669_v22 = vpop.xlane.xlu1 %668  ;;  %v3987_v42 = vld [vmem:[#allocation2 + $0xc8] sm:$0xff] }
 0x115   : > { %v4875_v57 = vadd.f32 1e-06, %v810_v19  ;;  %v723_v11 = vadd.f32 %v722_v37, %v599_v25  ;;  %v4878_v2 = vmul.f32 %v4462_v59, %v406_v45  ;;  %v1209_v17 = vsub.f32 %v3983_v21, %v4625_v1  ;;  %v3988_v45 = vld [vmem:[#allocation2 + $0xd0] sm:$0xff]  ;;  %v3750_v37 = vld [vmem:[%s4379_s7 + $0xb4] sm:$0xf0] }
 0x116   : > { %v4886_v58 = vmul.f32 %v4462_v59, %v402_v4  ;;  %v719_v20 = vadd.f32 %v718_v63, %v596_v61  ;;  %v1206_v26 = vsub.f32 %v3984_v13, %v4618_v62  ;;  %v1210_v14 = vsub.f32 %v3985_v16, %v4625_v1  ;;  %v3782_v63 = vld [vmem:[%s4379_s7 + $0x1b4] sm:$0xf0] }
 0x117   : > { %v961_v15 = vsel %vm4860_vm13, %v4734_v0, %v957_v46  ;;  %v4893_v49 = vadd.f32 1e-06, %v811_v48  ;;  %724 = vadd.xlane.f32.xlu2 %v723_v11  ;;  %v1211_v4 = vsub.f32 %v3986_v23, %v4625_v1  ;;  %v951_v19 = vsel %vm4870_vm14, %v4728_v52, %v947_v55  ;;  %v3427_v48 = vld [vmem:[%s4379_s7 + $0xa8] sm:$0xf] }
 0x118   : > { %v975_v29 = vmul.f32 0.5, %v974_v6  ;;  %720 = vadd.xlane.f32.xlu1 %v719_v20  ;;  %v463_v7 = vadd.f32 %v4882_v5, %v4880_v3  ;;  %v965_v0 = vmul.f32 0.5, %v964_v60  ;;  %3923 = vrsqrt.f32 %v4875_v57  ;;  %v3555_v55 = vld [vmem:[%s4379_s7 + $0x1a8] sm:$0xf]  ;;  %v341_v60 = vld [vmem:[#allocation2 + $0x2f0] sm:$0xff] }
 0x119   : > { %2031 = vmatmul.bf16.gmra.mxu0 %v4840_v31  ;;  %2298 = vmatmul.bf16.gmra.mxu3 %v4840_v31  ;;  %v4904_v51 = vmul.f32 %v4878_v2, %v4878_v2  ;;  %v4907_v1 = vmul.f32 %v669_v22, %v4462_v59  ;;  %v4911_v52 = vmul.f32 %v4886_v58, %v4886_v58  ;;  %3925 = vrsqrt.f32 %v4893_v49  ;;  %v3811_v20 = vld [vmem:[%s4379_s7 + $0x2a4] sm:$0xf]  ;;  %v3677_v22 = vld [vmem:[%s4379_s7 + $0x2b0] sm:$0xf0] }
 0x11a   : > { %2120 = vmatmul.bf16.gmra.mxu1 %v4842_v12  ;;  %2209 = vmatmul.bf16.gmra.mxu2 %v4846_v34  ;;  %v4914_v25 = vmul.f32 %v665_v8, %v4462_v59  ;;  %v464_v30 = vadd.f32 %v463_v7, %v339_v41  ;;  %v1305_v24 = vmul.f32 %v1209_v17, %v961_v15  ;;  %vm978_vm15 = vweird.f32 %v4755_v33 }
 0x11b   : > { %v1207_v61 = vsub.f32 %v3987_v42, %v4618_v62  ;;  %v1208_v46 = vsub.f32 %v3988_v45, %v4618_v62  ;;  %vm968_vm0 = vweird.f32 %v4759_v40  ;;  %v1302_v53 = vmul.f32 %v1206_v26, %v951_v19  ;;  %v342_v26 = vld [vmem:[#allocation2 + $0x2f8] sm:$0xff]  ;;  %v410_v42 = vpop.xlane.xlu2 %409 }
 0x11c   : > { %465 = vadd.xlane.f32.xlu0 %v464_v30  ;;  %v1306_v6 = vmul.f32 %v1210_v14, %v961_v15  ;;  %v976_v11 = vsub.f32 1.5, %v975_v29  ;;  %v966_v21 = vsub.f32 1.5, %v965_v0  ;;  %v813_v62 = vsub.f32 %v4907_v1, %v4904_v51 }
 0x11d   : > { %v1303_v17 = vmul.f32 %v1207_v61, %v951_v19  ;;  %v812_v13 = vsub.f32 %v4914_v25, %v4911_v52  ;;  %v4931_v16 = vpack.c.bf16 %v1305_v24, %v1302_v53  ;;  %v1304_v8 = vmul.f32 %v1208_v46, %v951_v19 }
 0x11e   : > { %v1307_v23 = vmul.f32 %v1211_v4, %v961_v15  ;;  %v4933_v14 = vpop.eup %3923  ;;  %v3428_v29 = vor.u32 %v3750_v37, %v3427_v48  ;;  %v3556_v0 = vor.u32 %v3782_v63, %v3555_v55  ;;  %v467_v30 = vadd.f32 %v341_v60, %v340_v54  ;;  %v3549_v63 = vld [vmem:[%s4379_s7 + $0x1b0] sm:$0xf0] }
 0x11f   : > { %6426 = vst [vmem:[#allocation12_spill] sm:$0xff] %v4931_v16  ;;  %v4935_v7 = vpack.c.bf16 %v1306_v6, %v1303_v17  ;;  %v3680_v1 = vor.u32 %v3811_v20, %v3677_v22  ;;  %v600_v61 = vmul.f32 %v4880_v3, %v4880_v3  ;;  %v601_v52 = vmul.f32 %v4882_v5, %v4882_v5  ;;  %v4943_v19 = vpop.eup %3925  ;;  %v3779_v6 = vld [vmem:[%s4379_s7 + $0x1a4] sm:$0xf]  ;;  %v414_v20 = vpop.xlane.xlu0 %413  ;;  %v3990_v22 = vld [vmem:[#allocation2 + $0xf8] sm:$0xff] }
 0x120   : > { %v4937_v51 = vpack.c.bf16 %v1307_v23, %v1304_v8  ;;  %vm979_vm1 = vweird.f32 %v4811_v43  ;;  %v468_v15 = vadd.f32 %v467_v30, %v342_v26  ;;  %v602_v4 = vmul.f32 %v339_v41, %v339_v41  ;;  %2544 = vmatpush.bf16.msrb.mxu2 %v3428_v29  ;;  %2633 = vmatpush.bf16.msrb.mxu3 %v3556_v0  ;;  %v3991_v23 = vld [vmem:[#allocation2 + $0x108] sm:$0xff] }
 0x121   : > { %6427 = vst [vmem:[#allocation13_spill] sm:$0xff] %v4935_v7  ;;  %v603_v25 = vmul.f32 %v340_v54, %v340_v54  ;;  %vm969_vm2 = vweird.f32 %v4823_v35  ;;  %v726_v3 = vadd.f32 %v601_v52, %v600_v61  ;;  %v604_v5 = vmul.f32 %v341_v60, %v341_v60  ;;  %vm4958_vm3 = vmor %vm978_vm15, %vm979_vm1  ;;  %2455 = vmatpush.bf16.msrb.mxu1 %v3680_v1  ;;  %v3989_v60 = vld [vmem:[#allocation2 + $0xf0] sm:$0xff]  ;;  %v3993_v52 = vld [vmem:[#allocation2 + $0x100] sm:$0xff] }
 0x122   : > { %6428 = vst [vmem:[#allocation14_spill] sm:$0xff] %v4937_v51  ;;  %v605_v24 = vmul.f32 %v342_v26, %v342_v26  ;;  %v977_v45 = vmul.f32 %v4811_v43, %v976_v11  ;;  %v967_v46 = vmul.f32 %v4823_v35, %v966_v21  ;;  %v983_v48 = vmul.f32 %v4933_v14, %v4875_v57  ;;  %vm4971_vm4 = vmor %vm968_vm0, %vm969_vm2  ;;  %v3992_v26 = vld [vmem:[#allocation2 + $0x110] sm:$0xff] }
 0x123   : > { %469 = vadd.xlane.f32.xlu1 %v468_v15  ;;  %v993_v37 = vmul.f32 %v4943_v19, %v4893_v49  ;;  %v727_v55 = vadd.f32 %v726_v3, %v602_v4  ;;  %v730_v53 = vadd.f32 %v604_v5, %v603_v25  ;;  %v4975_v54 = vadd.f32 1e-06, %v813_v62  ;;  %v3994_v4 = vld [vmem:[#allocation2 + $0x118] sm:$0xff]  ;;  %v677_v25 = vpop.xlane.xlu2 %676  ;;  %v673_v3 = vpop.xlane.xlu1 %672 }
 0x124   : > { %v1212_v11 = vsub.f32 %v3989_v60, %v4691_v18  ;;  %v4978_v21 = vadd.f32 1e-06, %v812_v13  ;;  %v1213_v8 = vsub.f32 %v3990_v22, %v4691_v18  ;;  %v1215_v40 = vsub.f32 %v3991_v23, %v4682_v28 }
 0x125   : > { %728 = vadd.xlane.f32.xlu2 %v727_v55  ;;  %v731_v17 = vadd.f32 %v730_v53, %v605_v24  ;;  %v1216_v29 = vsub.f32 %v3992_v26, %v4682_v28  ;;  %v3552_v0 = vor.u32 %v3779_v6, %v3549_v63  ;;  %v981_v62 = vsel %vm4958_vm3, %v4811_v43, %v977_v45 }
 0x126   : > { %v971_v13 = vsel %vm4971_vm4, %v4823_v35, %v967_v46  ;;  %v984_v30 = vmul.f32 %v4933_v14, %v983_v48  ;;  %v994_v1 = vmul.f32 %v4943_v19, %v993_v37  ;;  %3927 = vrsqrt.f32 %v4975_v54 }
 0x127   : > { %732 = vadd.xlane.f32.xlu0 %v731_v17  ;;  %v4993_v61 = vmul.f32 %v4462_v59, %v414_v20  ;;  %2366 = vmatpush.bf16.msrb.mxu0 %v3552_v0  ;;  %v1214_v15 = vsub.f32 %v3993_v52, %v4691_v18  ;;  %v1217_v43 = vsub.f32 %v3994_v4, %v4682_v28  ;;  %3929 = vrsqrt.f32 %v4978_v21  ;;  %v418_v17 = vpop.xlane.xlu0 %417  ;;  %v3411_v0 = vld [vmem:[%s4379_s7 + $0x88] sm:$0xf]  ;;  %v3778_v52 = vld [vmem:[%s4379_s7 + $0x194] sm:$0xf0] }
 0x128   : > { %v4999_v35 = vmul.f32 %v4462_v59, %v410_v42  ;;  %v1308_v5 = vmul.f32 %v1212_v11, %v971_v13  ;;  %v1311_v24 = vmul.f32 %v1215_v40, %v981_v62  ;;  %v985_v45 = vmul.f32 0.5, %v984_v30 }
 0x129   : > { %2036 = vmatmul.bf16.gmra.mxu0 %v4931_v16  ;;  %2303 = vmatmul.bf16.gmra.mxu3 %v4931_v16  ;;  %v995_v46 = vmul.f32 0.5, %v994_v1  ;;  %v1309_v48 = vmul.f32 %v1213_v8, %v971_v13  ;;  %v1312_v41 = vmul.f32 %v1216_v29, %v981_v62  ;;  %v751_v37 = vmul.f32 %v677_v25, %v4462_v59  ;;  %v3539_v1 = vld [vmem:[%s4379_s7 + $0x188] sm:$0xf] }
 0x12a   : > { %2125 = vmatmul.bf16.gmra.mxu1 %v4935_v7  ;;  %2214 = vmatmul.bf16.gmra.mxu2 %v4937_v51  ;;  %v783_v18 = vmul.f32 %v4993_v61, %v4993_v61  ;;  %v782_v28 = vmul.f32 %v4999_v35, %v4999_v35  ;;  %v750_v55 = vmul.f32 %v673_v3, %v4462_v59  ;;  %v986_v60 = vsub.f32 1.5, %v985_v45  ;;  %v3997_v3 = vld [vmem:[#allocation2 + $0x138] sm:$0xff] }
 0x12b   : > { %v1310_v42 = vmul.f32 %v1214_v15, %v971_v13  ;;  %v1313_v53 = vmul.f32 %v1217_v43, %v981_v62  ;;  %v5009_v63 = vpack.c.bf16 %v1311_v24, %v1308_v5  ;;  %v996_v11 = vsub.f32 1.5, %v995_v46  ;;  %v3746_v62 = vld [vmem:[%s4379_s7 + $0x94] sm:$0xf0]  ;;  %v3995_v15 = vld [vmem:[#allocation2 + $0x120] sm:$0xff]  ;;  %v3996_v43 = vld [vmem:[#allocation2 + $0x128] sm:$0xff]  ;;  %v422_v45 = vpop.xlane.xlu1 %421 }
 0x12c   : > { %v5007_v6 = vpop.eup %3927  ;;  %v5013_v20 = vpack.c.bf16 %v1312_v41, %v1309_v48  ;;  %vm988_vm5 = vweird.f32 %v4875_v57  ;;  %vm989_vm6 = vweird.f32 %v4933_v14  ;;  %v815_v22 = vsub.f32 %v751_v37, %v783_v18  ;;  %v3807_v46 = vld [vmem:[%s4379_s7 + $0x284] sm:$0xf]  ;;  %v3661_v48 = vld [vmem:[%s4379_s7 + $0x290] sm:$0xf0] }
 0x12d   : > { %6433 = vst [vmem:[#allocation15_spill] sm:$0xff] %v5009_v63  ;;  %v5011_v33 = vpop.eup %3929  ;;  %vm998_vm7 = vweird.f32 %v4893_v49  ;;  %vm999_vm8 = vweird.f32 %v4943_v19  ;;  %v814_v8 = vsub.f32 %v750_v55, %v782_v28  ;;  %v5022_v23 = vpack.c.bf16 %v1313_v53, %v1310_v42  ;;  %vm5029_vm9 = vmor %vm988_vm5, %vm989_vm6  ;;  %v3998_v41 = vld [vmem:[#allocation2 + $0x140] sm:$0xff]  ;;  %v3533_v53 = vld [vmem:[%s4379_s7 + $0x190] sm:$0xf0] }
 0x12e   : > { %6434 = vst [vmem:[#allocation16_spill] sm:$0xff] %v5013_v20  ;;  %v1013_v57 = vmul.f32 %v5007_v6, %v4975_v54  ;;  %v1003_v40 = vmul.f32 %v5011_v33, %v4978_v21  ;;  %v987_v26 = vmul.f32 %v4933_v14, %v986_v60  ;;  %v997_v49 = vmul.f32 %v4943_v19, %v996_v11  ;;  %vm5037_vm10 = vmor %vm998_vm7, %vm999_vm8  ;;  %v3775_v42 = vld [vmem:[%s4379_s7 + $0x184] sm:$0xf] }
 0x12f   : > { %v5041_v30 = vadd.f32 1e-06, %v815_v22  ;;  %v1218_v4 = vsub.f32 %v3995_v15, %v4806_v9  ;;  %v1219_v25 = vsub.f32 %v3996_v43, %v4806_v9  ;;  %v1221_v5 = vsub.f32 %v3997_v3, %v4821_v44 }
 0x130   : > { %v5048_v24 = vadd.f32 1e-06, %v814_v8  ;;  %v1222_v37 = vsub.f32 %v3998_v41, %v4821_v44  ;;  %v1014_v18 = vmul.f32 %v5007_v6, %v1013_v57  ;;  %v1004_v28 = vmul.f32 %v5011_v33, %v1003_v40  ;;  %v681_v40 = vpop.xlane.xlu2 %680 }
 0x131   : > { %v3412_v55 = vor.u32 %v3746_v62, %v3411_v0  ;;  %v991_v60 = vsel %vm5029_vm9, %v4933_v14, %v987_v26  ;;  %v1001_v11 = vsel %vm5037_vm10, %v4943_v19, %v997_v49  ;;  %v5064_v22 = vmul.f32 %v4462_v59, %v418_v17  ;;  %v3999_v62 = vld [vmem:[#allocation2 + $0x130] sm:$0xff]  ;;  %v4000_v14 = vld [vmem:[#allocation2 + $0x148] sm:$0xff]  ;;  %v685_v19 = vpop.xlane.xlu0 %684 }
 0x132   : > { %v3540_v8 = vor.u32 %v3778_v52, %v3539_v1  ;;  %3931 = vrsqrt.f32 %v5041_v30  ;;  %v5068_v57 = vmul.f32 %v4462_v59, %v422_v45  ;;  %v3664_v0 = vor.u32 %v3807_v46, %v3661_v48 }
 0x133   : > { %2545 = vmatpush.bf16.msrb.mxu2 %v3412_v55  ;;  %v1220_v29 = vsub.f32 %v3999_v62, %v4806_v9  ;;  %v1223_v26 = vsub.f32 %v4000_v14, %v4821_v44  ;;  %3933 = vrsqrt.f32 %v5048_v24  ;;  %v3536_v17 = vor.u32 %v3775_v42, %v3533_v53  ;;  %v4001_v62 = vld [vmem:[#allocation2 + $0x150] sm:$0xff]  ;;  %v4002_v14 = vld [vmem:[#allocation2 + $0x158] sm:$0xff] }
 0x134   : > { %2634 = vmatpush.bf16.msrb.mxu3 %v3540_v8  ;;  %v1015_v49 = vmul.f32 0.5, %v1014_v18  ;;  %v1005_v13 = vmul.f32 0.5, %v1004_v28  ;;  %v1314_v1 = vmul.f32 %v1218_v4, %v991_v60  ;;  %v1317_v52 = vmul.f32 %v1221_v5, %v1001_v11  ;;  %2456 = vmatpush.bf16.msrb.mxu1 %v3664_v0  ;;  %v3742_v8 = vld [vmem:[%s4379_s7 + $0x74] sm:$0xf0] }
 0x135   : > { %v752_v15 = vmul.f32 %v681_v40, %v4462_v59  ;;  %v784_v43 = vmul.f32 %v5064_v22, %v5064_v22  ;;  %v1315_v3 = vmul.f32 %v1219_v25, %v991_v60  ;;  %v1318_v9 = vmul.f32 %v1222_v37, %v1001_v11  ;;  %2367 = vmatpush.bf16.msrb.mxu0 %v3536_v17  ;;  %v426_v37 = vpop.xlane.xlu1 %425 }
 0x136   : > { %v785_v44 = vmul.f32 %v5068_v57, %v5068_v57  ;;  %v753_v45 = vmul.f32 %v685_v19, %v4462_v59  ;;  %v1316_v46 = vmul.f32 %v1220_v29, %v991_v60  ;;  %v1319_v48 = vmul.f32 %v1223_v26, %v1001_v11  ;;  %v4003_v19 = vld [vmem:[#allocation2 + $0x168] sm:$0xff] }
 0x137   : > { %v5081_v4 = vpack.c.bf16 %v1317_v52, %v1314_v1  ;;  %v1016_v18 = vsub.f32 1.5, %v1015_v49  ;;  %v1006_v28 = vsub.f32 1.5, %v1005_v13  ;;  %v816_v55 = vsub.f32 %v752_v15, %v784_v43  ;;  %v4004_v52 = vld [vmem:[#allocation2 + $0x170] sm:$0xff] }
 0x138   : > { %v5079_v41 = vpop.eup %3931  ;;  %v5085_v42 = vpack.c.bf16 %v1318_v9, %v1315_v3  ;;  %vm1018_vm11 = vweird.f32 %v4975_v54  ;;  %vm1019_vm12 = vweird.f32 %v5007_v6  ;;  %v817_v25 = vsub.f32 %v753_v45, %v785_v44  ;;  %v430_v1 = vpop.xlane.xlu2 %429  ;;  %v4005_v44 = vld [vmem:[#allocation2 + $0x160] sm:$0xff] }
 0x139   : > { %2041 = vmatmul.bf16.gmra.mxu0 %v5009_v63  ;;  %2308 = vmatmul.bf16.gmra.mxu3 %v5009_v63  ;;  %6439 = vst [vmem:[#allocation17_spill] sm:$0xff] %v5081_v4  ;;  %v5083_v5 = vpop.eup %3933  ;;  %vm1008_vm13 = vweird.f32 %v4978_v21  ;;  %vm1009_vm14 = vweird.f32 %v5011_v33  ;;  %v5094_v53 = vpack.c.bf16 %v1319_v48, %v1316_v46  ;;  %v1033_v60 = vmul.f32 %v5079_v41, %v5041_v30  ;;  %vm5101_vm15 = vmor %vm1018_vm11, %vm1019_vm12  ;;  %v4006_v46 = vld [vmem:[#allocation2 + $0x178] sm:$0xff] }
 0x13a   : > { %2130 = vmatmul.bf16.gmra.mxu1 %v5013_v20  ;;  %2219 = vmatmul.bf16.gmra.mxu2 %v5022_v23  ;;  %6440 = vst [vmem:[#allocation18_spill] sm:$0xff] %v5085_v42  ;;  %v1023_v54 = vmul.f32 %v5083_v5, %v5048_v24  ;;  %v1017_v11 = vmul.f32 %v5007_v6, %v1016_v18  ;;  %v5106_v40 = vadd.f32 1e-06, %v816_v55  ;;  %vm1010_vm0 = vmor %vm1008_vm13, %vm1009_vm14  ;;  %v5109_v0 = vadd.f32 1e-06, %v817_v25 }
 0x13b   : > { %6441 = vst [vmem:[#allocation19_spill] sm:$0xff] %v5094_v53  ;;  %v1007_v21 = vmul.f32 %v5011_v33, %v1006_v28  ;;  %v1224_v29 = vsub.f32 %v4001_v62, %v4886_v58  ;;  %v1225_v26 = vsub.f32 %v4002_v14, %v4886_v58  ;;  %v1227_v17 = vsub.f32 %v4003_v19, %v4878_v2  ;;  %v3803_v14 = vld [vmem:[%s4379_s7 + $0x264] sm:$0xf]  ;;  %v3645_v19 = vld [vmem:[%s4379_s7 + $0x270] sm:$0xf0] }
 0x13c   : > { %v1034_v49 = vmul.f32 %v5079_v41, %v1033_v60  ;;  %v1024_v13 = vmul.f32 %v5083_v5, %v1023_v54  ;;  %v1228_v15 = vsub.f32 %v4004_v52, %v4878_v2  ;;  %v1021_v43 = vsel %vm5101_vm15, %v5007_v6, %v1017_v11  ;;  %v3395_v60 = vld [vmem:[%s4379_s7 + $0x68] sm:$0xf] }
 0x13d   : > { %v1011_v3 = vsel %vm1010_vm0, %v5011_v33, %v1007_v21  ;;  %3935 = vrsqrt.f32 %v5106_v40  ;;  %v5124_v9 = vmul.f32 %v4462_v59, %v426_v37  ;;  %v1226_v45 = vsub.f32 %v4005_v44, %v4886_v58  ;;  %v689_v33 = vpop.xlane.xlu0 %688  ;;  %v693_v55 = vpop.xlane.xlu1 %692  ;;  %v3523_v21 = vld [vmem:[%s4379_s7 + $0x168] sm:$0xf]  ;;  %v3774_v58 = vld [vmem:[%s4379_s7 + $0x174] sm:$0xf0] }
 0x13e   : > { %3937 = vrsqrt.f32 %v5109_v0  ;;  %v1229_v48 = vsub.f32 %v4006_v46, %v4878_v2  ;;  %v5129_v6 = vmul.f32 %v4462_v59, %v430_v1  ;;  %v1035_v18 = vmul.f32 0.5, %v1034_v49 }
 0x13f   : > { %v1025_v28 = vmul.f32 0.5, %v1024_v13  ;;  %v1320_v25 = vmul.f32 %v1224_v29, %v1011_v3  ;;  %v1323_v37 = vmul.f32 %v1227_v17, %v1021_v43  ;;  %v1321_v54 = vmul.f32 %v1225_v26, %v1011_v3 }
 0x140   : > { %v1324_v11 = vmul.f32 %v1228_v15, %v1021_v43  ;;  %v786_v2 = vmul.f32 %v5124_v9, %v5124_v9  ;;  %v754_v62 = vmul.f32 %v689_v33, %v4462_v59  ;;  %v787_v49 = vmul.f32 %v5129_v6, %v5129_v6  ;;  %v434_v52 = vpop.xlane.xlu2 %433 }
 0x141   : > { %v755_v29 = vmul.f32 %v693_v55, %v4462_v59  ;;  %v1322_v17 = vmul.f32 %v1226_v45, %v1011_v3  ;;  %v1325_v26 = vmul.f32 %v1229_v48, %v1021_v43  ;;  %vm1038_vm1 = vweird.f32 %v5041_v30 }
 0x142   : > { %v5148_v15 = vpack.c.bf16 %v1323_v37, %v1320_v25  ;;  %v3396_v44 = vor.u32 %v3742_v8, %v3395_v60  ;;  %v3524_v46 = vor.u32 %v3774_v58, %v3523_v21  ;;  %v1036_v33 = vsub.f32 1.5, %v1035_v18  ;;  %v4007_v8 = vld [vmem:[#allocation2 + $0x180] sm:$0xff]  ;;  %v4008_v21 = vld [vmem:[#allocation2 + $0x188] sm:$0xff] }
 0x143   : > { %v5140_v1 = vpop.eup %3935  ;;  %vm1039_vm2 = vweird.f32 %v5079_v41  ;;  %vm1028_vm3 = vweird.f32 %v5048_v24  ;;  %v818_v3 = vsub.f32 %v754_v62, %v786_v2  ;;  %vm1029_vm4 = vweird.f32 %v5083_v5  ;;  %v4009_v24 = vld [vmem:[#allocation2 + $0x198] sm:$0xff] }
 0x144   : > { %v5145_v13 = vpop.eup %3937  ;;  %6444 = vst [vmem:[#allocation20_spill] sm:$0xff] %v5148_v15  ;;  %v1043_v43 = vmul.f32 %v5140_v1, %v5106_v40  ;;  %v819_v48 = vsub.f32 %v755_v29, %v787_v49  ;;  %v5162_v18 = vpack.c.bf16 %v1325_v26, %v1322_v17  ;;  %2546 = vmatpush.bf16.msrb.mxu2 %v3396_v44  ;;  %vm5169_vm5 = vmor %vm1038_vm1, %vm1039_vm2  ;;  %v4011_v44 = vld [vmem:[#allocation2 + $0x190] sm:$0xff]  ;;  %vm1048_vm7 = vweird.f32 %v5106_v40 }
 0x145   : > { %v1053_v45 = vmul.f32 %v5145_v13, %v5109_v0  ;;  %2635 = vmatpush.bf16.msrb.mxu3 %v3524_v46  ;;  %vm5178_vm6 = vmor %vm1028_vm3, %vm1029_vm4  ;;  %v438_v60 = vpop.xlane.xlu0 %437  ;;  %v1231_v58 = vsub.f32 %v4008_v21, %v4999_v35  ;;  %v1233_v2 = vsub.f32 %v4009_v24, %v4993_v61  ;;  %v5192_v62 = vmul.f32 %v4462_v59, %v434_v52  ;;  %v697_v26 = vpop.xlane.xlu1 %696 }
 0x146   : > { %6446 = vst [vmem:[#allocation22_spill] sm:$0xff] %v5162_v18  ;;  %v1044_v30 = vmul.f32 %v5140_v1, %v1043_v43  ;;  %v5202_v17 = vmul.f32 %v4462_v59, %v438_v60  ;;  %v1232_v46 = vsub.f32 %v4011_v44, %v4999_v35  ;;  %vm1049_vm8 = vweird.f32 %v5140_v1 }
 0x147   : > { %vm1058_vm9 = vweird.f32 %v5109_v0  ;;  %vm1059_vm10 = vweird.f32 %v5145_v13  ;;  %vm5250_vm11 = vmor %vm1048_vm7, %vm1049_vm8 }
 0x148   : > { %v701_v52 = vpop.xlane.xlu2 %700  ;;  %vm5265_vm12 = vmor %vm1058_vm9, %vm1059_vm10 }
 0x149   : > { %2046 = vmatmul.bf16.gmra.mxu0 %v5081_v4  ;;  %2313 = vmatmul.bf16.gmra.mxu3 %v5081_v4  ;;  %v1026_v4 = vsub.f32 1.5, %v1025_v28  ;;  %v1037_v28 = vmul.f32 %v5079_v41, %v1036_v33  ;;  %v4012_v33 = vld [vmem:[#allocation2 + $0x1a8] sm:$0xff]  ;;  %v757_v55 = vmul.f32 %v701_v52, %v4462_v59 }
 0x14a   : > { %2135 = vmatmul.bf16.gmra.mxu1 %v5085_v42  ;;  %2224 = vmatmul.bf16.gmra.mxu2 %v5094_v53  ;;  %v5150_v53 = vpack.c.bf16 %v1324_v11, %v1321_v54  ;;  %v3648_v42 = vor.u32 %v3803_v14, %v3645_v19  ;;  %v1054_v54 = vmul.f32 %v5145_v13, %v1053_v45  ;;  %v5186_v11 = vadd.f32 1e-06, %v819_v48  ;;  %v4010_v14 = vld [vmem:[#allocation2 + $0x1a0] sm:$0xff] }
 0x14b   : > { %v1027_v25 = vmul.f32 %v5083_v5, %v1026_v4  ;;  %v1230_v4 = vsub.f32 %v4007_v8, %v4999_v35  ;;  %v1234_v19 = vsub.f32 %v4010_v14, %v4993_v61  ;;  %v1041_v49 = vsel %vm5169_vm5, %v5079_v41, %v1037_v28  ;;  %v1518_v41 = vld [vmem:[%s5208_s24] sm:$0xf] }
 0x14c   : > { %6445 = vst [vmem:[#allocation21_spill] sm:$0xff] %v5150_v53  ;;  %2457 = vmatpush.bf16.msrb.mxu1 %v3648_v42  ;;  %v5182_v42 = vadd.f32 1e-06, %v818_v3  ;;  %v1235_v43 = vsub.f32 %v4012_v33, %v4993_v61  ;;  %v1045_v3 = vmul.f32 0.5, %v1044_v30  ;;  %v1055_v45 = vmul.f32 0.5, %v1054_v54 }
 0x14d   : > { %v1031_v29 = vsel %vm5178_vm6, %v5083_v5, %v1027_v25  ;;  %v788_v5 = vmul.f32 %v5192_v62, %v5192_v62  ;;  %v756_v48 = vmul.f32 %v697_v26, %v4462_v59  ;;  %v1329_v28 = vmul.f32 %v1233_v2, %v1041_v49 }
 0x14e   : > { %3939 = vrsqrt.f32 %v5182_v42  ;;  %v1326_v35 = vmul.f32 %v1230_v4, %v1031_v29  ;;  %v789_v61 = vmul.f32 %v5202_v17, %v5202_v17  ;;  %v1327_v25 = vmul.f32 %v1231_v58, %v1031_v29 }
 0x14f   : > { %3941 = vrsqrt.f32 %v5186_v11  ;;  %v1330_v37 = vmul.f32 %v1234_v19, %v1041_v49  ;;  %v5217_v60 = vperm.slane %v1518_v41, 0  ;;  %v1328_v54 = vmul.f32 %v1232_v46, %v1031_v29  ;;  %v442_v19 = vpop.xlane.xlu0 %441  ;;  %v3517_v41 = vld [vmem:[%s4379_s7 + $0x170] sm:$0xf0] }
 0x150   : > { %v1331_v8 = vmul.f32 %v1235_v43, %v1041_v49  ;;  %v1046_v24 = vsub.f32 1.5, %v1045_v3  ;;  %v1056_v14 = vsub.f32 1.5, %v1055_v45  ;;  %v820_v44 = vsub.f32 %v756_v48, %v788_v5  ;;  %v3771_v45 = vld [vmem:[%s4379_s7 + $0x164] sm:$0xf] }
 0x151   : > { %v5221_v2 = vpack.c.bf16 %v1329_v28, %v1326_v35  ;;  %v821_v52 = vsub.f32 %v757_v55, %v789_v61  ;;  %v5225_v33 = vpack.c.bf16 %v1330_v37, %v1327_v25  ;;  %v3520_v55 = vor.u32 %v3771_v45, %v3517_v41  ;;  %v4013_v37 = vld [vmem:[#allocation2 + $0x1b0] sm:$0xff] }
 0x152   : > { %v5235_v49 = vpack.c.bf16 %v1331_v8, %v1328_v54  ;;  %v1047_v29 = vmul.f32 %v5140_v1, %v1046_v24  ;;  %v1057_v46 = vmul.f32 %v5145_v13, %v1056_v14  ;;  %v5240_v43 = vadd.f32 1e-06, %v820_v44  ;;  %v4014_v54 = vld [vmem:[#allocation2 + $0x1b8] sm:$0xff]  ;;  %v4015_v24 = vld [vmem:[#allocation2 + $0x1c8] sm:$0xff] }
 0x153   : > { %6451 = vst [vmem:[#allocation23_spill] sm:$0xff] %v5221_v2  ;;  %v5258_v28 = vadd.f32 1e-06, %v821_v52  ;;  %v1237_v8 = vsub.f32 %v4014_v54, %v5064_v22  ;;  %v1239_v14 = vsub.f32 %v4015_v24, %v5068_v57  ;;  %2368 = vmatpush.bf16.msrb.mxu0 %v3520_v55  ;;  %v4016_v52 = vld [vmem:[#allocation2 + $0x1d0] sm:$0xff]  ;;  %vm1078_vm13 = vweird.f32 %v5186_v11 }
 0x154   : > { %v5219_v21 = vpop.eup %3939  ;;  %6452 = vst [vmem:[#allocation24_spill] sm:$0xff] %v5225_v33  ;;  %v1240_v0 = vsub.f32 %v4016_v52, %v5068_v57  ;;  %3943 = vrsqrt.f32 %v5240_v43  ;;  %v1061_v41 = vsel %vm5265_vm12, %v5145_v13, %v1057_v46  ;;  %v5292_v46 = vmul.f32 %v4462_v59, %v442_v19 }
 0x155   : > { %v5223_v26 = vpop.eup %3941  ;;  %6453 = vst [vmem:[#allocation25_spill] sm:$0xff] %v5235_v49  ;;  %v1063_v35 = vmul.f32 %v5219_v21, %v5182_v42  ;;  %3945 = vrsqrt.f32 %v5258_v28  ;;  %vm1068_vm14 = vweird.f32 %v5182_v42  ;;  %vm1069_vm15 = vweird.f32 %v5219_v21 }
 0x156   : > { %v1073_v48 = vmul.f32 %v5223_v26, %v5186_v11  ;;  %vm1079_vm0 = vweird.f32 %v5223_v26  ;;  %vm5329_vm1 = vmor %vm1068_vm14, %vm1069_vm15  ;;  %vm1088_vm3 = vweird.f32 %v5240_v43  ;;  %vm1098_vm5 = vweird.f32 %v5258_v28 }
 0x157   : > { %v1064_v54 = vmul.f32 %v5219_v21, %v1063_v35  ;;  %vm5338_vm2 = vmor %vm1078_vm13, %vm1079_vm0 }
 0x159   : > { %2051 = vmatmul.bf16.gmra.mxu0 %v5148_v15  ;;  %2318 = vmatmul.bf16.gmra.mxu3 %v5148_v15 }
 0x15a   : > { %2140 = vmatmul.bf16.gmra.mxu1 %v5150_v53  ;;  %2229 = vmatmul.bf16.gmra.mxu2 %v5162_v18 }
 0x166   : > { %v2017_v30 = vpop.f32.mrf.mxu0 }
 0x167   : > { %v2106_v4 = vpop.f32.mrf.mxu1  ;;  %v2018_v58 = vadd.f32 %v2017_v30, %v5217_v60  ;;  %v1236_v30 = vsub.f32 %v4013_v37, %v5064_v22  ;;  %v1074_v37 = vmul.f32 %v5223_v26, %v1073_v48  ;;  %v446_v55 = vpop.xlane.xlu1 %445 }
 0x168   : > { %v5295_v48 = vmul.f32 %v4462_v59, %v446_v55 }
 0x169   : > { %2056 = vmatmul.bf16.gmra.mxu0 %v5221_v2  ;;  %2323 = vmatmul.bf16.gmra.mxu3 %v5221_v2  ;;  %v2107_v61 = vadd.f32 %v2106_v4, %v2018_v58  ;;  %v1051_v4 = vsel %vm5250_vm11, %v5140_v1, %v1047_v29  ;;  %v4017_v29 = vld [vmem:[#allocation2 + $0x1c0] sm:$0xff]  ;;  %v1075_v52 = vmul.f32 0.5, %v1074_v37 }
 0x16a   : > { %2145 = vmatmul.bf16.gmra.mxu1 %v5225_v33  ;;  %2234 = vmatmul.bf16.gmra.mxu2 %v5235_v49  ;;  %v1238_v5 = vsub.f32 %v4017_v29, %v5064_v22  ;;  %v1332_v24 = vmul.f32 %v1236_v30, %v1051_v4  ;;  %v1333_v2 = vmul.f32 %v1237_v8, %v1051_v4  ;;  %v5299_v22 = vpop.eup %3943 }
 0x16b   : > { %v1336_v49 = vmul.f32 %v1240_v0, %v1061_v41  ;;  %v5304_v55 = vpop.eup %3945  ;;  %vm1089_vm4 = vweird.f32 %v5299_v22 }
 0x16c   : > { %v5242_v3 = vpop.f32.mrf.mxu3  ;;  %v1334_v0 = vmul.f32 %v1238_v5, %v1051_v4  ;;  %v1083_v4 = vmul.f32 %v5299_v22, %v5240_v43  ;;  %vm1099_vm6 = vweird.f32 %v5304_v55  ;;  %vm5410_vm7 = vmor %vm1088_vm3, %vm1089_vm4 }
 0x16d   : > { %6454 = vst [vmem:[#allocation26_spill] sm:$0xff] %v5242_v3  ;;  %v2195_v44 = vpop.f32.mrf.mxu2  ;;  %v5315_v33 = vpack.c.bf16 %v1336_v49, %v1333_v2  ;;  %v1093_v3 = vmul.f32 %v5304_v55, %v5258_v28  ;;  %vm1100_vm8 = vmor %vm1098_vm5, %vm1099_vm6 }
 0x16e   : > { %v2019_v25 = vpop.f32.mrf.mxu0  ;;  %v2196_v58 = vadd.f32 %v2195_v44, %v2107_v61  ;;  %v4018_v61 = vld [vmem:[#allocation2 + $0x1d8] sm:$0xff]  ;;  %v705_v35 = vpop.xlane.xlu2 %704  ;;  %v1335_v44 = vmul.f32 %v1239_v14, %v1061_v41  ;;  %v790_v14 = vmul.f32 %v5292_v46, %v5292_v46 }
 0x16f   : > { %v2108_v45 = vpop.f32.mrf.mxu1  ;;  %v2020_v1 = vadd.f32 %v2019_v25, %v5217_v60  ;;  %v1241_v13 = vsub.f32 %v4018_v61, %v5068_v57  ;;  %v709_v25 = vpop.xlane.xlu0 %708  ;;  %v758_v30 = vmul.f32 %v705_v35, %v4462_v59  ;;  %6461 = vst [vmem:[#allocation29_spill] sm:$0xff] %v5315_v33  ;;  %v1094_v11 = vmul.f32 %v5304_v55, %v1093_v3  ;;  %v4021_v3 = vld [vmem:[#allocation2 + $0x1f8] sm:$0xff] }
 0x170   : > { %3076 = vst [vmem:[%s5285_s8] sm:$0xff] %v2196_v58  ;;  %v1065_v58 = vmul.f32 0.5, %v1064_v54  ;;  %v791_v54 = vmul.f32 %v5295_v48, %v5295_v48  ;;  %v759_v29 = vmul.f32 %v709_v25, %v4462_v59  ;;  %v450_v5 = vpop.xlane.xlu1 %449  ;;  %v3379_v25 = vld [vmem:[%s4379_s7 + $0x48] sm:$0xf] }
 0x171   : > { %v2109_v57 = vadd.f32 %v2108_v45, %v2020_v1  ;;  %v1337_v37 = vmul.f32 %v1241_v13, %v1061_v41  ;;  %v5312_v45 = vpack.c.bf16 %v1335_v44, %v1332_v24  ;;  %v1076_v1 = vsub.f32 1.5, %v1075_v52 }
 0x172   : > { %v1066_v35 = vsub.f32 1.5, %v1065_v58  ;;  %v822_v49 = vsub.f32 %v758_v30, %v790_v14  ;;  %v823_v42 = vsub.f32 %v759_v29, %v791_v54  ;;  %v1084_v30 = vmul.f32 %v5299_v22, %v1083_v4  ;;  %v3799_v54 = vld [vmem:[%s4379_s7 + $0x244] sm:$0xf]  ;;  %v3629_v29 = vld [vmem:[%s4379_s7 + $0x250] sm:$0xf0] }
 0x173   : > { %6460 = vst [vmem:[#allocation28_spill] sm:$0xff] %v5312_v45  ;;  %v5334_v13 = vpack.c.bf16 %v1337_v37, %v1334_v0  ;;  %v1077_v52 = vmul.f32 %v5223_v26, %v1076_v1  ;;  %v3770_v37 = vld [vmem:[%s4379_s7 + $0x154] sm:$0xf0] }
 0x174   : > { %v5297_v40 = vpop.f32.mrf.mxu3  ;;  %v1067_v58 = vmul.f32 %v5219_v21, %v1066_v35  ;;  %v5360_v4 = vadd.f32 1e-06, %v823_v42  ;;  %v1085_v42 = vmul.f32 0.5, %v1084_v30 }
 0x175   : > { %6459 = vst [vmem:[#allocation27_spill] sm:$0xff] %v5297_v40  ;;  %v2197_v8 = vpop.f32.mrf.mxu2 }
 0x176   : > { %v2022_v19 = vpop.f32.mrf.mxu0  ;;  %v2198_v61 = vadd.f32 %v2197_v8, %v2109_v57  ;;  %6464 = vst [vmem:[#allocation30_spill] sm:$0xff] %v5334_v13  ;;  %v3738_v57 = vld [vmem:[%s4379_s7 + $0x54] sm:$0xf0]  ;;  %vm1118_vm11 = vweird.f32 %v5360_v4 }
 0x177   : > { %v2111_v40 = vpop.f32.mrf.mxu1  ;;  %v2023_v41 = vadd.f32 %v2022_v19, %v5217_v60  ;;  %v3507_v19 = vld [vmem:[%s4379_s7 + $0x148] sm:$0xf]  ;;  %v3380_v0 = vor.u32 %v3738_v57, %v3379_v25  ;;  %v4022_v57 = vld [vmem:[#allocation2 + $0x200] sm:$0xff] }
 0x178   : > { %3080 = vst [vmem:[%s5285_s8 + $0x20] sm:$0xff] %v2198_v61  ;;  %v4019_v61 = vld [vmem:[#allocation2 + $0x1e0] sm:$0xff] }
 0x179   : > { %2061 = vmatmul.bf16.gmra.mxu0 %v5312_v45  ;;  %2328 = vmatmul.bf16.gmra.mxu3 %v5312_v45  ;;  %v2112_v14 = vadd.f32 %v2111_v40, %v2023_v41  ;;  %v1242_v1 = vsub.f32 %v4019_v61, %v5124_v9  ;;  %v5356_v45 = vadd.f32 1e-06, %v822_v49  ;;  %v1245_v40 = vsub.f32 %v4021_v3, %v5129_v6 }
 0x17a   : > { %2150 = vmatmul.bf16.gmra.mxu1 %v5315_v33  ;;  %2239 = vmatmul.bf16.gmra.mxu2 %v5334_v13  ;;  %v3508_v13 = vor.u32 %v3770_v37, %v3507_v19  ;;  %v3632_v33 = vor.u32 %v3799_v54, %v3629_v29  ;;  %v1246_v61 = vsub.f32 %v4022_v57, %v5129_v6  ;;  %v454_v19 = vpop.xlane.xlu2 %453  ;;  %v1095_v37 = vmul.f32 0.5, %v1094_v11  ;;  %v4024_v29 = vld [vmem:[#allocation2 + $0x208] sm:$0xff] }
 0x17b   : > { %2547 = vmatpush.bf16.msrb.mxu2 %v3380_v0  ;;  %v1081_v49 = vsel %vm5338_vm2, %v5223_v26, %v1077_v52  ;;  %v4023_v0 = vld [vmem:[#allocation2 + $0x1f0] sm:$0xff]  ;;  %3947 = vrsqrt.f32 %v5356_v45  ;;  %v5375_v26 = vmul.f32 %v4462_v59, %v450_v5  ;;  %v1086_v11 = vsub.f32 1.5, %v1085_v42 }
 0x17c   : > { %v5342_v44 = vpop.f32.mrf.mxu3  ;;  %2636 = vmatpush.bf16.msrb.mxu3 %v3508_v13  ;;  %2458 = vmatpush.bf16.msrb.mxu1 %v3632_v33  ;;  %v1244_v54 = vsub.f32 %v4023_v0, %v5124_v9  ;;  %3949 = vrsqrt.f32 %v5360_v4  ;;  %v1341_v13 = vmul.f32 %v1245_v40, %v1081_v49  ;;  %vm1108_vm9 = vweird.f32 %v5356_v45 }
 0x17d   : > { %6467 = vst [vmem:[#allocation31_spill] sm:$0xff] %v5342_v44  ;;  %v2200_v35 = vpop.f32.mrf.mxu2  ;;  %v4020_v44 = vld [vmem:[#allocation2 + $0x1e8] sm:$0xff] }
 0x17e   : > { %v2024_v8 = vpop.f32.mrf.mxu0  ;;  %v1243_v15 = vsub.f32 %v4020_v44, %v5124_v9  ;;  %v2201_v41 = vadd.f32 %v2200_v35, %v2112_v14  ;;  %v1071_v44 = vsel %vm5329_vm1, %v5219_v21, %v1067_v58  ;;  %v1247_v35 = vsub.f32 %v4024_v29, %v5129_v6  ;;  %v717_v9 = vpop.xlane.xlu1 %716 }
 0x17f   : > { %v2113_v25 = vpop.f32.mrf.mxu1  ;;  %v2025_v14 = vadd.f32 %v2024_v8, %v5217_v60  ;;  %v5379_v21 = vmul.f32 %v4462_v59, %v454_v19  ;;  %v1338_v2 = vmul.f32 %v1242_v1, %v1071_v44  ;;  %v713_v24 = vpop.xlane.xlu0 %712  ;;  %v1342_v6 = vmul.f32 %v1246_v61, %v1081_v49 }
 0x180   : > { %3084 = vst [vmem:[%s5285_s8 + $0x40] sm:$0xff] %v2201_v41  ;;  %v1339_v52 = vmul.f32 %v1243_v15, %v1071_v44  ;;  %v1096_v58 = vsub.f32 1.5, %v1095_v37  ;;  %v792_v8 = vmul.f32 %v5375_v26, %v5375_v26  ;;  %v760_v3 = vmul.f32 %v713_v24, %v4462_v59 }
 0x181   : > { %v2114_v5 = vadd.f32 %v2113_v25, %v2025_v14  ;;  %v1340_v40 = vmul.f32 %v1244_v54, %v1071_v44  ;;  %v1343_v41 = vmul.f32 %v1247_v35, %v1081_v49  ;;  %v793_v57 = vmul.f32 %v5379_v21, %v5379_v21  ;;  %v5393_v25 = vpop.eup %3947  ;;  %v4029_v54 = vld [vmem:[#allocation2 + $0x220] sm:$0xff] }
 0x182   : > { %v761_v15 = vmul.f32 %v717_v9, %v4462_v59  ;;  %v5391_v37 = vpack.c.bf16 %v1341_v13, %v1338_v2  ;;  %v5397_v42 = vpack.c.bf16 %v1342_v6, %v1339_v52  ;;  %v5399_v14 = vpop.eup %3949  ;;  %v1087_v49 = vmul.f32 %v5299_v22, %v1086_v11  ;;  %v458_v44 = vpop.xlane.xlu2 %457  ;;  %v3767_v52 = vld [vmem:[%s4379_s7 + $0x144] sm:$0xf]  ;;  %v3501_v6 = vld [vmem:[%s4379_s7 + $0x150] sm:$0xf0] }
 0x183   : > { %v1097_v0 = vmul.f32 %v5304_v55, %v1096_v58  ;;  %v824_v29 = vsub.f32 %v760_v3, %v792_v8  ;;  %v5416_v2 = vpack.c.bf16 %v1343_v41, %v1340_v40  ;;  %v1103_v13 = vmul.f32 %v5393_v25, %v5356_v45  ;;  %v4025_v58 = vld [vmem:[#allocation2 + $0x210] sm:$0xff] }
 0x184   : > { %v5381_v33 = vpop.f32.mrf.mxu3  ;;  %6469 = vst [vmem:[#allocation33_spill] sm:$0xff] %v5391_v37  ;;  %v825_v9 = vsub.f32 %v761_v15, %v793_v57  ;;  %v1113_v43 = vmul.f32 %v5399_v14, %v5360_v4  ;;  %v1248_v11 = vsub.f32 %v4025_v58, %v5192_v62  ;;  %v3504_v8 = vor.u32 %v3767_v52, %v3501_v6  ;;  %v4028_v6 = vld [vmem:[#allocation2 + $0x230] sm:$0xff] }
 0x185   : > { %6468 = vst [vmem:[#allocation32_spill] sm:$0xff] %v5381_v33  ;;  %v2202_v1 = vpop.f32.mrf.mxu2  ;;  %v1101_v3 = vsel %vm1100_vm8, %v5304_v55, %v1097_v0  ;;  %v5435_v40 = vadd.f32 1e-06, %v824_v29  ;;  %v1104_v57 = vmul.f32 %v5393_v25, %v1103_v13  ;;  %v1252_v55 = vsub.f32 %v4028_v6, %v5202_v17  ;;  %v4030_v13 = vld [vmem:[#allocation2 + $0x238] sm:$0xff] }
 0x186   : > { %v2027_v30 = vpop.f32.mrf.mxu0  ;;  %v2203_v61 = vadd.f32 %v2202_v1, %v2114_v5  ;;  %6470 = vst [vmem:[#allocation34_spill] sm:$0xff] %v5397_v42  ;;  %v4026_v5 = vld [vmem:[#allocation2 + $0x228] sm:$0xff]  ;;  %v1091_v1 = vsel %vm5410_vm7, %v5299_v22, %v1087_v49  ;;  %v5438_v15 = vadd.f32 1e-06, %v825_v9  ;;  %2369 = vmatpush.bf16.msrb.mxu0 %v3504_v8  ;;  %v1114_v0 = vmul.f32 %v5399_v14, %v1113_v43 }
 0x187   : > { %v2116_v19 = vpop.f32.mrf.mxu1  ;;  %v2028_v35 = vadd.f32 %v2027_v30, %v5217_v60  ;;  %6473 = vst [vmem:[#allocation35_spill] sm:$0xff] %v5416_v2  ;;  %v1251_v28 = vsub.f32 %v4026_v5, %v5202_v17  ;;  %v4027_v5 = vld [vmem:[#allocation2 + $0x218] sm:$0xff]  ;;  %v462_v49 = vpop.xlane.xlu0 %461  ;;  %v1344_v29 = vmul.f32 %v1248_v11, %v1091_v1  ;;  %v1253_v9 = vsub.f32 %v4030_v13, %v5202_v17 }
 0x188   : > { %3088 = vst [vmem:[%s5285_s8 + $0x60] sm:$0xff] %v2203_v61  ;;  %v1249_v52 = vsub.f32 %v4027_v5, %v5192_v62  ;;  %3951 = vrsqrt.f32 %v5435_v40  ;;  %v5449_v5 = vmul.f32 %v4462_v59, %v462_v49  ;;  %v1105_v6 = vmul.f32 0.5, %v1104_v57 }
 0x189   : > { %2066 = vmatmul.bf16.gmra.mxu0 %v5391_v37  ;;  %2333 = vmatmul.bf16.gmra.mxu3 %v5391_v37  ;;  %v2117_v41 = vadd.f32 %v2116_v19, %v2028_v35  ;;  %v1250_v19 = vsub.f32 %v4029_v54, %v5192_v62  ;;  %v1347_v35 = vmul.f32 %v1251_v28, %v1101_v3  ;;  %3953 = vrsqrt.f32 %v5438_v15 }
 0x18a   : > { %2155 = vmatmul.bf16.gmra.mxu1 %v5397_v42  ;;  %2244 = vmatmul.bf16.gmra.mxu2 %v5416_v2  ;;  %v5453_v43 = vmul.f32 %v4462_v59, %v458_v44  ;;  %v725_v62 = vpop.xlane.xlu2 %724  ;;  %v1115_v28 = vmul.f32 0.5, %v1114_v0  ;;  %v1345_v17 = vmul.f32 %v1249_v52, %v1091_v1  ;;  %v795_v54 = vmul.f32 %v5449_v5, %v5449_v5 }
 0x18b   : > { %v763_v57 = vmul.f32 %v725_v62, %v4462_v59  ;;  %v1349_v13 = vmul.f32 %v1253_v9, %v1101_v3  ;;  %v1106_v37 = vsub.f32 1.5, %v1105_v6  ;;  %vm1109_vm10 = vweird.f32 %v5393_v25 }
 0x18c   : > { %v5422_v24 = vpop.f32.mrf.mxu3  ;;  %v794_v52 = vmul.f32 %v5453_v43, %v5453_v43  ;;  %vm5478_vm12 = vmor %vm1108_vm9, %vm1109_vm10  ;;  %vm1119_vm13 = vweird.f32 %v5399_v14  ;;  %vm1128_vm15 = vweird.f32 %v5435_v40  ;;  %vm1138_vm1 = vweird.f32 %v5438_v15 }
 0x18d   : > { %6474 = vst [vmem:[#allocation36_spill] sm:$0xff] %v5422_v24  ;;  %v2205_v61 = vpop.f32.mrf.mxu2  ;;  %v827_v9 = vsub.f32 %v763_v57, %v795_v54  ;;  %v1107_v45 = vmul.f32 %v5393_v25, %v1106_v37  ;;  %v3491_v57 = vld [vmem:[%s4379_s7 + $0x128] sm:$0xf]  ;;  %v3766_v37 = vld [vmem:[%s4379_s7 + $0x134] sm:$0xf0]  ;;  %vm5508_vm14 = vmor %vm1118_vm11, %vm1119_vm13 }
 0x18e   : > { %v2029_v30 = vpop.f32.mrf.mxu0  ;;  %v2206_v22 = vadd.f32 %v2205_v61, %v2117_v41  ;;  %v721_v41 = vpop.xlane.xlu1 %720  ;;  %v1348_v61 = vmul.f32 %v1252_v55, %v1101_v3  ;;  %v4033_v24 = vld [vmem:[#allocation2 + $0x258] sm:$0xff] }
 0x18f   : > { %v2118_v58 = vpop.f32.mrf.mxu1  ;;  %v2030_v8 = vadd.f32 %v2029_v30, %v5217_v60  ;;  %v1346_v30 = vmul.f32 %v1250_v19, %v1091_v1  ;;  %v762_v55 = vmul.f32 %v721_v41, %v4462_v59  ;;  %v5467_v1 = vpop.eup %3951  ;;  %v1257_v4 = vsub.f32 %v4033_v24, %v5295_v48 }
 0x190   : > { %3092 = vst [vmem:[%s5285_s8 + $0x80] sm:$0xff] %v2206_v22  ;;  %v5458_v22 = vpack.c.bf16 %v1347_v35, %v1344_v29  ;;  %v5469_v35 = vpack.c.bf16 %v1348_v61, %v1345_v17  ;;  %v466_v62 = vpop.xlane.xlu0 %465  ;;  %v1123_v41 = vmul.f32 %v5467_v1, %v5435_v40  ;;  %v3363_v61 = vld [vmem:[%s4379_s7 + $0x28] sm:$0xf]  ;;  %v1111_v33 = vsel %vm5478_vm12, %v5393_v25, %v1107_v45  ;;  %v3730_v40 = vld [vmem:[%s4379_s7 + $0x14] sm:$0xf0] }
 0x191   : > { %v2119_v49 = vadd.f32 %v2118_v58, %v2030_v8  ;;  %v1116_v58 = vsub.f32 1.5, %v1115_v28  ;;  %v5471_v8 = vpop.eup %3953  ;;  %v5486_v28 = vpack.c.bf16 %v1349_v13, %v1346_v30  ;;  %v826_v17 = vsub.f32 %v762_v55, %v794_v52  ;;  %v4036_v45 = vld [vmem:[#allocation2 + $0x268] sm:$0xff] }
 0x192   : > { %6476 = vst [vmem:[#allocation38_spill] sm:$0xff] %v5458_v22  ;;  %vm1129_vm0 = vweird.f32 %v5467_v1  ;;  %vm1139_vm2 = vweird.f32 %v5471_v8 }
 0x193   : > { %6477 = vst [vmem:[#allocation39_spill] sm:$0xff] %v5469_v35  ;;  %v1117_v54 = vmul.f32 %v5399_v14, %v1116_v58  ;;  %v3492_v58 = vor.u32 %v3766_v37, %v3491_v57  ;;  %v1124_v57 = vmul.f32 %v5467_v1, %v1123_v41  ;;  %v5522_v37 = vadd.f32 1e-06, %v826_v17  ;;  %vm5571_vm3 = vmor %vm1128_vm15, %vm1129_vm0 }
 0x194   : > { %v5455_v11 = vpop.f32.mrf.mxu3  ;;  %6480 = vst [vmem:[#allocation40_spill] sm:$0xff] %v5486_v28  ;;  %v1259_v41 = vsub.f32 %v4036_v45, %v5295_v48  ;;  %vm1140_vm4 = vmor %vm1138_vm1, %vm1139_vm2 }
 0x195   : > { %6475 = vst [vmem:[#allocation37_spill] sm:$0xff] %v5455_v11  ;;  %v2207_v0 = vpop.f32.mrf.mxu2  ;;  %v3485_v11 = vld [vmem:[%s4379_s7 + $0x130] sm:$0xf0]  ;;  %2637 = vmatpush.bf16.msrb.mxu3 %v3492_v58  ;;  %v1121_v24 = vsel %vm5508_vm14, %v5399_v14, %v1117_v54  ;;  %v1125_v54 = vmul.f32 0.5, %v1124_v57  ;;  %vm1148_vm7 = vweird.f32 %v5522_v37 }
 0x196   : > { %v2032_v44 = vpop.f32.mrf.mxu0  ;;  %v2208_v19 = vadd.f32 %v2207_v0, %v2119_v49  ;;  %v3734_v49 = vld [vmem:[%s4379_s7 + $0x34] sm:$0xf0]  ;;  %v3795_v0 = vld [vmem:[%s4379_s7 + $0x224] sm:$0xf]  ;;  %v470_v25 = vpop.xlane.xlu1 %469 }
 0x197   : > { %v2121_v29 = vpop.f32.mrf.mxu1  ;;  %v2033_v6 = vadd.f32 %v2032_v44, %v5217_v60  ;;  %v1133_v44 = vmul.f32 %v5471_v8, %v5438_v15  ;;  %v3364_v13 = vor.u32 %v3734_v49, %v3363_v61  ;;  %v5515_v49 = vadd.f32 1e-06, %v827_v9 }
 0x198   : > { %3096 = vst [vmem:[%s5285_s8 + $0xa0] sm:$0xff] %v2208_v19  ;;  %v3613_v19 = vld [vmem:[%s4379_s7 + $0x230] sm:$0xf0] }
 0x199   : > { %2071 = vmatmul.bf16.gmra.mxu0 %v5458_v22  ;;  %2338 = vmatmul.bf16.gmra.mxu3 %v5458_v22  ;;  %v4031_v22 = vld [vmem:[#allocation2 + $0x240] sm:$0xff]  ;;  %v2122_v2 = vadd.f32 %v2121_v29, %v2033_v6  ;;  %v4035_v6 = vld [vmem:[#allocation2 + $0x250] sm:$0xff]  ;;  %3955 = vrsqrt.f32 %v5515_v49  ;;  %vm1158_vm5 = vweird.f32 %v5515_v49 }
 0x19a   : > { %2160 = vmatmul.bf16.gmra.mxu1 %v5469_v35  ;;  %2249 = vmatmul.bf16.gmra.mxu2 %v5486_v28  ;;  %v1254_v52 = vsub.f32 %v4031_v22, %v5292_v46  ;;  %v3616_v35 = vor.u32 %v3795_v0, %v3613_v19  ;;  %v3763_v28 = vld [vmem:[%s4379_s7 + $0x124] sm:$0xf]  ;;  %3957 = vrsqrt.f32 %v5522_v37 }
 0x19b   : > { %2548 = vmatpush.bf16.msrb.mxu2 %v3364_v13  ;;  %v3488_v22 = vor.u32 %v3763_v28, %v3485_v11  ;;  %v4034_v29 = vld [vmem:[#allocation2 + $0x260] sm:$0xff]  ;;  %v1134_v11 = vmul.f32 %v5471_v8, %v1133_v44  ;;  %v1256_v28 = vsub.f32 %v4035_v6, %v5292_v46  ;;  %v729_v44 = vpop.xlane.xlu2 %728  ;;  %v733_v13 = vpop.xlane.xlu0 %732 }
 0x19c   : > { %v5498_v30 = vpop.f32.mrf.mxu3  ;;  %2459 = vmatpush.bf16.msrb.mxu1 %v3616_v35  ;;  %v1258_v9 = vsub.f32 %v4034_v29, %v5295_v48  ;;  %v5533_v35 = vmul.f32 %v4462_v59, %v466_v62  ;;  %v1350_v14 = vmul.f32 %v1254_v52, %v1111_v33  ;;  %v1126_v29 = vsub.f32 1.5, %v1125_v54 }
 0x19d   : > { %6481 = vst [vmem:[#allocation41_spill] sm:$0xff] %v5498_v30  ;;  %v4032_v30 = vld [vmem:[#allocation2 + $0x248] sm:$0xff]  ;;  %v2210_v0 = vpop.f32.mrf.mxu2  ;;  %2370 = vmatpush.bf16.msrb.mxu0 %v3488_v22  ;;  %v1352_v62 = vmul.f32 %v1256_v28, %v1111_v33 }
 0x19e   : > { %v1255_v61 = vsub.f32 %v4032_v30, %v5292_v46  ;;  %v2034_v42 = vpop.f32.mrf.mxu0  ;;  %v2211_v3 = vadd.f32 %v2210_v0, %v2122_v2  ;;  %v5539_v2 = vmul.f32 %v4462_v59, %v470_v25  ;;  %v1353_v46 = vmul.f32 %v1257_v4, %v1121_v24 }
 0x19f   : > { %v2123_v19 = vpop.f32.mrf.mxu1  ;;  %v2035_v17 = vadd.f32 %v2034_v42, %v5217_v60  ;;  %v1135_v30 = vmul.f32 0.5, %v1134_v11  ;;  %v1354_v58 = vmul.f32 %v1258_v9, %v1121_v24  ;;  %v764_v42 = vmul.f32 %v729_v44, %v4462_v59 }
 0x1a0   : > { %3100 = vst [vmem:[%s5285_s8 + $0xc0] sm:$0xff] %v2211_v3  ;;  %v1351_v55 = vmul.f32 %v1255_v61, %v1111_v33  ;;  %v796_v52 = vmul.f32 %v5533_v35, %v5533_v35  ;;  %v1355_v0 = vmul.f32 %v1259_v41, %v1121_v24  ;;  %v797_v4 = vmul.f32 %v5539_v2, %v5539_v2  ;;  %v5552_v33 = vpop.eup %3955 }
 0x1a1   : > { %v2124_v22 = vadd.f32 %v2123_v19, %v2035_v17  ;;  %v765_v11 = vmul.f32 %v733_v13, %v4462_v59  ;;  %v5550_v3 = vpack.c.bf16 %v1353_v46, %v1350_v14  ;;  %v1136_v19 = vsub.f32 1.5, %v1135_v30  ;;  %v5557_v24 = vpop.eup %3957  ;;  %v3347_v13 = vld [vmem:[%s4379_s7 + $0x8] sm:$0xf]  ;;  %v4041_v17 = vld [vmem:[#allocation2 + $0x280] sm:$0xff] }
 0x1a2   : > { %v5555_v6 = vpack.c.bf16 %v1354_v58, %v1351_v55  ;;  %v828_v59 = vsub.f32 %v764_v42, %v796_v52  ;;  %v5566_v45 = vpack.c.bf16 %v1355_v0, %v1352_v62  ;;  %v1127_v41 = vmul.f32 %v5467_v1, %v1126_v29  ;;  %v3475_v55 = vld [vmem:[%s4379_s7 + $0x108] sm:$0xf]  ;;  %v4037_v58 = vld [vmem:[#allocation2 + $0x270] sm:$0xff]  ;;  %v3762_v0 = vld [vmem:[%s4379_s7 + $0x114] sm:$0xf0] }
 0x1a3   : > { %6484 = vst [vmem:[#allocation42_spill] sm:$0xff] %v5550_v3  ;;  %v1153_v14 = vmul.f32 %v5552_v33, %v5515_v49  ;;  %v829_v54 = vsub.f32 %v765_v11, %v797_v4  ;;  %v1137_v44 = vmul.f32 %v5471_v8, %v1136_v19  ;;  %v1143_v46 = vmul.f32 %v5557_v24, %v5522_v37  ;;  %v4039_v52 = vld [vmem:[#allocation2 + $0x288] sm:$0xff] }
 0x1a4   : > { %v5541_v48 = vpop.f32.mrf.mxu3  ;;  %6485 = vst [vmem:[#allocation43_spill] sm:$0xff] %v5555_v6  ;;  %v1260_v62 = vsub.f32 %v4037_v58, %v5375_v26  ;;  %v5594_v29 = vadd.f32 1e-06, %v828_v59  ;;  %v3476_v19 = vor.u32 %v3762_v0, %v3475_v55  ;;  %vm1159_vm6 = vweird.f32 %v5552_v33 }
 0x1a5   : > { %v2212_v61 = vpop.f32.mrf.mxu2  ;;  %6486 = vst [vmem:[#allocation44_spill] sm:$0xff] %v5566_v45  ;;  %vm1149_vm8 = vweird.f32 %v5557_v24  ;;  %vm5637_vm9 = vmor %vm1158_vm5, %vm1159_vm6 }
 0x1a6   : > { %v2037_v57 = vpop.f32.mrf.mxu0  ;;  %v2213_v25 = vadd.f32 %v2212_v61, %v2124_v22  ;;  %v4038_v22 = vld [vmem:[#allocation2 + $0x278] sm:$0xff]  ;;  %v3348_v61 = vor.u32 %v3730_v40, %v3347_v13  ;;  %2638 = vmatpush.bf16.msrb.mxu3 %v3476_v19  ;;  %3959 = vrsqrt.f32 %v5594_v29  ;;  %vm1150_vm10 = vmor %vm1148_vm7, %vm1149_vm8  ;;  %vm1168_vm11 = vweird.f32 %v5594_v29 }
 0x1a7   : > { %v2126_v9 = vpop.f32.mrf.mxu1  ;;  %v2038_v28 = vadd.f32 %v2037_v57, %v5217_v60  ;;  %v1261_v42 = vsub.f32 %v4038_v22, %v5375_v26  ;;  %v1263_v57 = vsub.f32 %v4039_v52, %v5379_v21  ;;  %v1131_v22 = vsel %vm5571_vm3, %v5467_v1, %v1127_v41  ;;  %v4042_v41 = vld [vmem:[#allocation2 + $0x298] sm:$0xff] }
 0x1a8   : > { %3104 = vst [vmem:[%s5285_s8 + $0xe0] sm:$0xff] %v2213_v25  ;;  %v4040_v25 = vld [vmem:[#allocation2 + $0x290] sm:$0xff]  ;;  %v1154_v52 = vmul.f32 %v5552_v33, %v1153_v14  ;;  %2549 = vmatpush.bf16.msrb.mxu2 %v3348_v61  ;;  %v1262_v1 = vsub.f32 %v4041_v17, %v5375_v26  ;;  %v1265_v14 = vsub.f32 %v4042_v41, %v5379_v21 }
 0x1a9   : > { %2076 = vmatmul.bf16.gmra.mxu0 %v5550_v3  ;;  %2343 = vmatmul.bf16.gmra.mxu3 %v5550_v3  ;;  %v2127_v4 = vadd.f32 %v2126_v9, %v2038_v28  ;;  %v1264_v58 = vsub.f32 %v4040_v25, %v5379_v21  ;;  %v5601_v3 = vadd.f32 1e-06, %v829_v54  ;;  %v1141_v9 = vsel %vm1140_vm4, %v5471_v8, %v1137_v44  ;;  %v3791_v8 = vld [vmem:[%s4379_s7 + $0x204] sm:$0xf]  ;;  %v3597_v44 = vld [vmem:[%s4379_s7 + $0x210] sm:$0xf0] }
 0x1aa   : > { %2165 = vmatmul.bf16.gmra.mxu1 %v5555_v6  ;;  %2254 = vmatmul.bf16.gmra.mxu2 %v5566_v45  ;;  %v1144_v28 = vmul.f32 %v5557_v24, %v1143_v46  ;;  %v1356_v40 = vmul.f32 %v1260_v62, %v1131_v22  ;;  %v1155_v46 = vmul.f32 0.5, %v1154_v52  ;;  %v1359_v55 = vmul.f32 %v1263_v57, %v1141_v9  ;;  %v3469_v61 = vld [vmem:[%s4379_s7 + $0x110] sm:$0xf0] }
 0x1ab   : > { %3961 = vrsqrt.f32 %v5601_v3  ;;  %v3600_v0 = vor.u32 %v3791_v8, %v3597_v44  ;;  %v1357_v25 = vmul.f32 %v1261_v42, %v1131_v22  ;;  %v1360_v21 = vmul.f32 %v1264_v58, %v1141_v9 }
 0x1ac   : > { %v5581_v30 = vpop.f32.mrf.mxu3  ;;  %v1145_v19 = vmul.f32 0.5, %v1144_v28  ;;  %v1361_v62 = vmul.f32 %v1265_v14, %v1141_v9  ;;  %v1156_v52 = vsub.f32 1.5, %v1155_v46  ;;  %v5617_v57 = vpack.c.bf16 %v1359_v55, %v1356_v40  ;;  %v5619_v8 = vpop.eup %3959 }
 0x1ad   : > { %v2215_v15 = vpop.f32.mrf.mxu2  ;;  %2460 = vmatpush.bf16.msrb.mxu1 %v3600_v0  ;;  %v1163_v37 = vmul.f32 %v5619_v8, %v5594_v29  ;;  %v4044_v0 = vld [vmem:[#allocation2 + $0x2a8] sm:$0xff]  ;;  %vm1169_vm12 = vweird.f32 %v5619_v8  ;;  %vm1178_vm13 = vweird.f32 %v5601_v3 }
 0x1ae   : > { %v2039_v11 = vpop.f32.mrf.mxu0  ;;  %v2216_v13 = vadd.f32 %v2215_v15, %v2127_v4  ;;  %v3759_v4 = vld [vmem:[%s4379_s7 + $0x104] sm:$0xf]  ;;  %v1146_v28 = vsub.f32 1.5, %v1145_v19  ;;  %vm5682_vm15 = vmor %vm1168_vm11, %vm1169_vm12 }
 0x1af   : > { %v2128_v59 = vpop.f32.mrf.mxu1  ;;  %v2040_v54 = vadd.f32 %v2039_v11, %v5217_v60  ;;  %v3472_v15 = vor.u32 %v3759_v4, %v3469_v61  ;;  %v1358_v11 = vmul.f32 %v1262_v1, %v1131_v22  ;;  %v1267_v4 = vsub.f32 %v4044_v0, %v5453_v43  ;;  %v4045_v61 = vld [vmem:[#allocation2 + $0x2b8] sm:$0xff] }
 0x1b0   : > { %3108 = vst [vmem:[%s5285_s8 + $0x100] sm:$0xff] %v2216_v13  ;;  %v1147_v9 = vmul.f32 %v5557_v24, %v1146_v28  ;;  %v1269_v19 = vsub.f32 %v4045_v61, %v5449_v5 }
 0x1b1   : > { %v2129_v13 = vadd.f32 %v2128_v59, %v2040_v54  ;;  %2371 = vmatpush.bf16.msrb.mxu0 %v3472_v15  ;;  %v5623_v42 = vpop.eup %3961  ;;  %v5634_v22 = vpack.c.bf16 %v1361_v62, %v1358_v11  ;;  %v1157_v59 = vmul.f32 %v5552_v33, %v1156_v52  ;;  %v4043_v54 = vld [vmem:[#allocation2 + $0x2a0] sm:$0xff] }
 0x1b2   : > { %v1173_v1 = vmul.f32 %v5623_v42, %v5601_v3  ;;  %v1266_v40 = vsub.f32 %v4043_v54, %v5453_v43  ;;  %v1151_v11 = vsel %vm1150_vm10, %v5557_v24, %v1147_v9  ;;  %vm1179_vm14 = vweird.f32 %v5623_v42 }
 0x1b3   : > { %v1161_v15 = vsel %vm5637_vm9, %v5552_v33, %v1157_v59  ;;  %v1363_v59 = vmul.f32 %v1267_v4, %v1151_v11  ;;  %vm5694_vm0 = vmor %vm1178_vm13, %vm1179_vm14 }
 0x1b4   : > { %v5615_v26 = vpop.f32.mrf.mxu3  ;;  %v1174_v62 = vmul.f32 %v5623_v42, %v1173_v1  ;;  %v1362_v49 = vmul.f32 %v1266_v40, %v1151_v11  ;;  %v1365_v33 = vmul.f32 %v1269_v19, %v1161_v15 }
 0x1b5   : > { %6489 = vst [vmem:[#allocation45_spill] sm:$0xff] %v5615_v26  ;;  %v2217_v41 = vpop.f32.mrf.mxu2  ;;  %v5621_v26 = vpack.c.bf16 %v1360_v21, %v1357_v25  ;;  %v4046_v25 = vld [vmem:[#allocation2 + $0x2c0] sm:$0xff] }
 0x1b6   : > { %v2042_v17 = vpop.f32.mrf.mxu0  ;;  %v2218_v44 = vadd.f32 %v2217_v41, %v2129_v13  ;;  %v1270_v21 = vsub.f32 %v4046_v25, %v5449_v5  ;;  %v4047_v41 = vld [vmem:[#allocation2 + $0x2b0] sm:$0xff]  ;;  %v1175_v24 = vmul.f32 0.5, %v1174_v62  ;;  %v3788_v62 = vld [vmem:[%s4379_s7 + $0x1ec] sm:$0xf] }
 0x1b7   : > { %v2131_v45 = vpop.f32.mrf.mxu1  ;;  %v2043_v58 = vadd.f32 %v2042_v17, %v5217_v60  ;;  %v1268_v28 = vsub.f32 %v4047_v41, %v5453_v43  ;;  %v3820_v41 = vld [vmem:[%s4379_s7 + $0x2ec] sm:$0xf] }
 0x1b8   : > { %3112 = vst [vmem:[%s5285_s8 + $0x120] sm:$0xff] %v2218_v44  ;;  %v4048_v44 = vld [vmem:[#allocation2 + $0x2c8] sm:$0xff]  ;;  %v1366_v0 = vmul.f32 %v1270_v21, %v1161_v15  ;;  %v1176_v4 = vsub.f32 1.5, %v1175_v24 }
 0x1b9   : > { %2081 = vmatmul.bf16.gmra.mxu0 %v5617_v57  ;;  %2348 = vmatmul.bf16.gmra.mxu3 %v5617_v57  ;;  %v2132_v46 = vadd.f32 %v2131_v45, %v2043_v58  ;;  %v1164_v45 = vmul.f32 %v5619_v8, %v1163_v37  ;;  %v1271_v58 = vsub.f32 %v4048_v44, %v5449_v5  ;;  %v3717_v44 = vld [vmem:[%s4379_s7 + $0x2f8] sm:$0xf0]  ;;  %v4051_v24 = vld [vmem:[#allocation2 + $0x2e8] sm:$0xff] }
 0x1ba   : > { %2170 = vmatmul.bf16.gmra.mxu1 %v5621_v26  ;;  %2259 = vmatmul.bf16.gmra.mxu2 %v5634_v22  ;;  %v1177_v3 = vmul.f32 %v5623_v42, %v1176_v4 }
 0x1bb   : > { %v1165_v61 = vmul.f32 0.5, %v1164_v45  ;;  %v1367_v25 = vmul.f32 %v1271_v58, %v1161_v15 }
 0x1bc   : > { %v5647_v14 = vpop.f32.mrf.mxu3 }
 0x1bd   : > { %v2220_v13 = vpop.f32.mrf.mxu2  ;;  %v1166_v40 = vsub.f32 1.5, %v1165_v61 }
 0x1be   : > { %v2044_v55 = vpop.f32.mrf.mxu0  ;;  %v2221_v52 = vadd.f32 %v2220_v13, %v2132_v46  ;;  %v1364_v46 = vmul.f32 %v1268_v28, %v1151_v11  ;;  %v5666_v13 = vpack.c.bf16 %v1365_v33, %v1362_v49  ;;  %v3720_v49 = vor.u32 %v3820_v41, %v3717_v44  ;;  %v4049_v33 = vld [vmem:[#allocation2 + $0x2d0] sm:$0xff]  ;;  %v3822_v28 = vld [vmem:[%s4379_s7 + $0x2f4] sm:$0xf0] }
 0x1bf   : > { %v2133_v17 = vpop.f32.mrf.mxu1  ;;  %v2045_v54 = vadd.f32 %v2044_v55, %v5217_v60  ;;  %v5668_v55 = vpack.c.bf16 %v1366_v0, %v1363_v59  ;;  %v1167_v11 = vmul.f32 %v5619_v8, %v1166_v40  ;;  %v1272_v59 = vsub.f32 %v4049_v33, %v5533_v35  ;;  %v4050_v0 = vld [vmem:[#allocation2 + $0x2d8] sm:$0xff]  ;;  %v3715_v33 = vld [vmem:[%s4379_s7 + $0x2e8] sm:$0xf] }
 0x1c0   : > { %3116 = vst [vmem:[%s5285_s8 + $0x140] sm:$0xff] %v2221_v52  ;;  %v5678_v15 = vpack.c.bf16 %v1367_v25, %v1364_v46  ;;  %v3589_v52 = vld [vmem:[%s4379_s7 + $0x1f8] sm:$0xf0]  ;;  %v1273_v61 = vsub.f32 %v4050_v0, %v5533_v35  ;;  %v4052_v25 = vld [vmem:[#allocation2 + $0x2f0] sm:$0xff]  ;;  %v1181_v40 = vsel %vm5694_vm0, %v5623_v42, %v1177_v3  ;;  %2987 = vmatpush.bf16.msra.mxu3 %v3720_v49 }
 0x1c1   : > { %v2134_v37 = vadd.f32 %v2133_v17, %v2045_v54  ;;  %v3592_v29 = vor.u32 %v3788_v62, %v3589_v52  ;;  %v4054_v62 = vld [vmem:[#allocation2 + $0x2f8] sm:$0xff] }
 0x1c2   : > { %v1277_v52 = vsub.f32 %v4054_v62, %v5539_v2  ;;  %v3461_v17 = vld [vmem:[%s4379_s7 + $0xf8] sm:$0xf0] }
 0x1c3   : > { %2898 = vmatpush.bf16.msra.mxu2 %v3592_v29  ;;  %v3756_v29 = vld [vmem:[%s4379_s7 + $0xec] sm:$0xf] }
 0x1c4   : > { %v5663_v9 = vpop.f32.mrf.mxu3 }
 0x1c5   : > { %v2222_v43 = vpop.f32.mrf.mxu2 }
 0x1c6   : > { %v2047_v1 = vpop.f32.mrf.mxu0  ;;  %v2223_v19 = vadd.f32 %v2222_v43, %v2134_v37  ;;  %v1275_v37 = vsub.f32 %v4051_v24, %v5539_v2  ;;  %v1276_v43 = vsub.f32 %v4052_v25, %v5539_v2  ;;  %v1373_v24 = vmul.f32 %v1277_v52, %v1181_v40 }
 0x1c7   : > { %v2136_v5 = vpop.f32.mrf.mxu1  ;;  %v2048_v21 = vadd.f32 %v2047_v1, %v5217_v60 }
 0x1c8   : > { %3120 = vst [vmem:[%s5285_s8 + $0x160] sm:$0xff] %v2223_v19  ;;  %v4053_v19 = vld [vmem:[#allocation2 + $0x2e0] sm:$0xff]  ;;  %v1372_v3 = vmul.f32 %v1276_v43, %v1181_v40 }
 0x1c9   : > { %2086 = vmatmul.bf16.gmra.mxu0 %v5666_v13  ;;  %2353 = vmatmul.bf16.gmra.mxu3 %v5666_v13  ;;  %v2137_v58 = vadd.f32 %v2136_v5, %v2048_v21  ;;  %v1171_v5 = vsel %vm5682_vm15, %v5619_v8, %v1167_v11  ;;  %v1274_v21 = vsub.f32 %v4053_v19, %v5533_v35 }
 0x1ca   : > { %2175 = vmatmul.bf16.gmra.mxu1 %v5668_v55  ;;  %2264 = vmatmul.bf16.gmra.mxu2 %v5678_v15  ;;  %v1368_v44 = vmul.f32 %v1272_v59, %v1171_v5  ;;  %v1371_v8 = vmul.f32 %v1275_v37, %v1181_v40  ;;  %v3464_v11 = vor.u32 %v3756_v29, %v3461_v17 }
 0x1cb   : > { %v1369_v42 = vmul.f32 %v1273_v61, %v1171_v5  ;;  %v1370_v2 = vmul.f32 %v1274_v21, %v1171_v5 }
 0x1cc   : > { %v5689_v45 = vpop.f32.mrf.mxu3  ;;  %2809 = vmatpush.bf16.msra.mxu1 %v3464_v11  ;;  %v5719_v25 = vpack.c.bf16 %v1371_v8, %v1368_v44 }
 0x1cd   : > { %v2225_v1 = vpop.f32.mrf.mxu2  ;;  %v5721_v37 = vpack.c.bf16 %v1372_v3, %v1369_v42  ;;  %v3573_v42 = vld [vmem:[%s4379_s7 + $0x1d8] sm:$0xf0]  ;;  %v3816_v3 = vld [vmem:[%s4379_s7 + $0x2cc] sm:$0xf] }
 0x1ce   : > { %v2049_v54 = vpop.f32.mrf.mxu0  ;;  %v2226_v4 = vadd.f32 %v2225_v1, %v2137_v58  ;;  %v3716_v58 = vor.u32 %v3822_v28, %v3715_v33  ;;  %v3784_v28 = vld [vmem:[%s4379_s7 + $0x1cc] sm:$0xf] }
 0x1cf   : > { %v2138_v46 = vpop.f32.mrf.mxu1  ;;  %v2050_v41 = vadd.f32 %v2049_v54, %v5217_v60 }
 0x1d0   : > { %3124 = vst [vmem:[%s5285_s8 + $0x180] sm:$0xff] %v2226_v4  ;;  %2720 = vmatpush.bf16.msra.mxu0 %v3716_v58  ;;  %v3576_v58 = vor.u32 %v3784_v28, %v3573_v42 }
 0x1d1   : > { %v2139_v35 = vadd.f32 %v2138_v46, %v2050_v41  ;;  %v5728_v46 = vpack.c.bf16 %v1373_v24, %v1370_v2 }
 0x1d2   : > { %2899 = vmatpush.bf16.msra.mxu2 %v3576_v58 }
 0x1d4   : > { %v5717_v0 = vpop.f32.mrf.mxu3 }
 0x1d5   : > { %v2227_v54 = vpop.f32.mrf.mxu2 }
 0x1d6   : > { %v2052_v49 = vpop.f32.mrf.mxu0  ;;  %v2228_v59 = vadd.f32 %v2227_v54, %v2139_v35  ;;  %v3701_v35 = vld [vmem:[%s4379_s7 + $0x2d8] sm:$0xf0] }
 0x1d7   : > { %v2141_v1 = vpop.f32.mrf.mxu1  ;;  %v2053_v61 = vadd.f32 %v2052_v49, %v5217_v60  ;;  %v3704_v24 = vor.u32 %v3816_v3, %v3701_v35 }
 0x1d8   : > { %3128 = vst [vmem:[%s5285_s8 + $0x1a0] sm:$0xff] %v2228_v59 }
 0x1d9   : > { %2091 = vmatmul.bf16.gmra.mxu0 %v5719_v25  ;;  %2358 = vmatmul.bf16.gmra.mxu3 %v5719_v25  ;;  %v2142_v5 = vadd.f32 %v2141_v1, %v2053_v61 }
 0x1da   : > { %2180 = vmatmul.bf16.gmra.mxu1 %v5721_v37  ;;  %2269 = vmatmul.bf16.gmra.mxu2 %v5728_v46 }
 0x1db   : > { %2988 = vmatpush.bf16.msra.mxu3 %v3704_v24 }
 0x1dc   : > { %v5731_v43 = vpop.f32.mrf.mxu3 }
 0x1dd   : > { %v2230_v4 = vpop.f32.mrf.mxu2 }
 0x1de   : > { %v2054_v40 = vpop.f32.mrf.mxu0  ;;  %v2231_v21 = vadd.f32 %v2230_v4, %v2142_v5  ;;  %v3752_v5 = vld [vmem:[%s4379_s7 + $0xcc] sm:$0xf] }
 0x1df   : > { %v2143_v19 = vpop.f32.mrf.mxu1  ;;  %v2055_v62 = vadd.f32 %v2054_v40, %v5217_v60  ;;  %v3445_v40 = vld [vmem:[%s4379_s7 + $0xd8] sm:$0xf0] }
 0x1e0   : > { %3132 = vst [vmem:[%s5285_s8 + $0x1c0] sm:$0xff] %v2231_v21  ;;  %v3448_v4 = vor.u32 %v3752_v5, %v3445_v40  ;;  %v3818_v21 = vld [vmem:[%s4379_s7 + $0x2d4] sm:$0xf0] }
 0x1e1   : > { %v2144_v41 = vadd.f32 %v2143_v19, %v2055_v62  ;;  %v3699_v19 = vld [vmem:[%s4379_s7 + $0x2c8] sm:$0xf] }
 0x1e2   : > { %2810 = vmatpush.bf16.msra.mxu1 %v3448_v4 }
 0x1e4   : > { %v5735_v52 = vpop.f32.mrf.mxu3 }
 0x1e5   : > { %v2232_v17 = vpop.f32.mrf.mxu2 }
 0x1e6   : > { %v2057_v29 = vpop.f32.mrf.mxu0  ;;  %v2233_v8 = vadd.f32 %v2232_v17, %v2144_v41  ;;  %v3700_v41 = vor.u32 %v3818_v21, %v3699_v19  ;;  %v3780_v21 = vld [vmem:[%s4379_s7 + $0x1ac] sm:$0xf] }
 0x1e7   : > { %v2146_v44 = vpop.f32.mrf.mxu1  ;;  %v2058_v11 = vadd.f32 %v2057_v29, %v5217_v60 }
 0x1e8   : > { %3136 = vst [vmem:[%s5285_s8 + $0x1e0] sm:$0xff] %v2233_v8  ;;  %2721 = vmatpush.bf16.msra.mxu0 %v3700_v41  ;;  %v3557_v41 = vld [vmem:[%s4379_s7 + $0x1b8] sm:$0xf0] }
 0x1e9   : > { %2372 = vmatmul.bf16.vlgmr.msrb.gmra.mxu0 %v4592_v32  ;;  %2639 = vmatmul.bf16.vlgmr.msrb.gmra.mxu3 %v4592_v32  ;;  %v2147_v49 = vadd.f32 %v2146_v44, %v2058_v11 }
 0x1ea   : > { %2461 = vmatmul.bf16.vlgmr.msrb.gmra.mxu1 %v4599_v39  ;;  %2550 = vmatmul.bf16.vlgmr.msrb.gmra.mxu2 %v4587_v38 }
 0x1ec   : > { %v5743_v33 = vpop.f32.mrf.mxu3 }
 0x1ed   : > { %v2235_v54 = vpop.f32.mrf.mxu2 }
 0x1ee   : > { %v2059_v2 = vpop.f32.mrf.mxu0  ;;  %v2236_v59 = vadd.f32 %v2235_v54, %v2147_v49 }
 0x1ef   : > { %v2148_v1 = vpop.f32.mrf.mxu1  ;;  %v2060_v61 = vadd.f32 %v2059_v2, %v5217_v60 }
 0x1f0   : > { %3140 = vst [vmem:[%s5285_s8 + $0x200] sm:$0xff] %v2236_v59 }
 0x1f1   : > { %v2149_v29 = vadd.f32 %v2148_v1, %v2060_v61 }
 0x1f4   : > { %v5755_v62 = vpop.f32.mrf.mxu3 }
 0x1f5   : > { %v2237_v44 = vpop.f32.mrf.mxu2 }
 0x1f6   : > { %v2062_v17 = vpop.f32.mrf.mxu0  ;;  %v2238_v11 = vadd.f32 %v2237_v44, %v2149_v29  ;;  %v3812_v29 = vld [vmem:[%s4379_s7 + $0x2ac] sm:$0xf]  ;;  %v3685_v44 = vld [vmem:[%s4379_s7 + $0x2b8] sm:$0xf0] }
 0x1f7   : > { %v2151_v8 = vpop.f32.mrf.mxu1  ;;  %v2063_v28 = vadd.f32 %v2062_v17, %v5217_v60  ;;  %v3560_v17 = vor.u32 %v3780_v21, %v3557_v41 }
 0x1f8   : > { %3144 = vst [vmem:[%s5285_s8 + $0x220] sm:$0xff] %v2238_v11 }
 0x1f9   : > { %2377 = vmatmul.bf16.gmra.mxu0 %v4659_v56  ;;  %2644 = vmatmul.bf16.gmra.mxu3 %v4659_v56  ;;  %v2152_v3 = vadd.f32 %v2151_v8, %v2063_v28  ;;  %v3688_v28 = vor.u32 %v3812_v29, %v3685_v44 }
 0x1fa   : > { %2466 = vmatmul.bf16.gmra.mxu1 %v4664_v36  ;;  %2555 = vmatmul.bf16.gmra.mxu2 %v4651_v47 }
 0x1fb   : > { %2900 = vmatpush.bf16.msra.mxu2 %v3560_v17  ;;  %2989 = vmatpush.bf16.msra.mxu3 %v3688_v28 }
 0x1fc   : > { %v5763_v42 = vpop.f32.mrf.mxu3 }
 0x1fd   : > { %v2240_v35 = vpop.f32.mrf.mxu2 }
 0x1fe   : > { %v2064_v58 = vpop.f32.mrf.mxu0  ;;  %v2241_v2 = vadd.f32 %v2240_v35, %v2152_v3 }
 0x1ff   : > { %v2153_v49 = vpop.f32.mrf.mxu1  ;;  %v2065_v24 = vadd.f32 %v2064_v58, %v5217_v60 }
 0x200   : > { %3148 = vst [vmem:[%s5285_s8 + $0x240] sm:$0xff] %v2241_v2  ;;  %v3748_v2 = vld [vmem:[%s4379_s7 + $0xac] sm:$0xf] }
 0x201   : > { %v2154_v1 = vadd.f32 %v2153_v49, %v2065_v24  ;;  %v3429_v24 = vld [vmem:[%s4379_s7 + $0xb8] sm:$0xf0] }
 0x204   : > { %v5767_v54 = vpop.f32.mrf.mxu3 }
 0x205   : > { %v2242_v61 = vpop.f32.mrf.mxu2 }
 0x206   : > { %v2067_v59 = vpop.f32.mrf.mxu0  ;;  %v2243_v40 = vadd.f32 %v2242_v61, %v2154_v1  ;;  %v3432_v1 = vor.u32 %v3748_v2, %v3429_v24  ;;  %v3814_v61 = vld [vmem:[%s4379_s7 + $0x2b4] sm:$0xf0] }
 0x207   : > { %v2156_v5 = vpop.f32.mrf.mxu1  ;;  %v2068_v4 = vadd.f32 %v2067_v59, %v5217_v60  ;;  %v3683_v59 = vld [vmem:[%s4379_s7 + $0x2a8] sm:$0xf] }
 0x208   : > { %3152 = vst [vmem:[%s5285_s8 + $0x260] sm:$0xff] %v2243_v40  ;;  %v3684_v21 = vor.u32 %v3814_v61, %v3683_v59  ;;  %2811 = vmatpush.bf16.msra.mxu1 %v3432_v1 }
 0x209   : > { %2382 = vmatmul.bf16.gmra.mxu0 %v4753_v27  ;;  %2649 = vmatmul.bf16.gmra.mxu3 %v4753_v27  ;;  %v2157_v8 = vadd.f32 %v2156_v5, %v2068_v4 }
 0x20a   : > { %2471 = vmatmul.bf16.gmra.mxu1 %v4762_v50  ;;  %2560 = vmatmul.bf16.gmra.mxu2 %v4744_v10 }
 0x20b   : > { %2722 = vmatpush.bf16.msra.mxu0 %v3684_v21 }
 0x20c   : > { %v5775_v19 = vpop.f32.mrf.mxu3 }
 0x20d   : > { %v2245_v3 = vpop.f32.mrf.mxu2 }
 0x20e   : > { %v2069_v11 = vpop.f32.mrf.mxu0  ;;  %v2246_v35 = vadd.f32 %v2245_v3, %v2157_v8 }
 0x20f   : > { %v2158_v58 = vpop.f32.mrf.mxu1  ;;  %v2070_v49 = vadd.f32 %v2069_v11, %v5217_v60 }
 0x210   : > { %3156 = vst [vmem:[%s5285_s8 + $0x280] sm:$0xff] %v2246_v35 }
 0x211   : > { %v2159_v5 = vadd.f32 %v2158_v58, %v2070_v49 }
 0x214   : > { %v5787_v40 = vpop.f32.mrf.mxu3 }
 0x215   : > { %v2247_v41 = vpop.f32.mrf.mxu2 }
 0x216   : > { %v2072_v4 = vpop.f32.mrf.mxu0  ;;  %v2248_v17 = vadd.f32 %v2247_v41, %v2159_v5  ;;  %v3776_v41 = vld [vmem:[%s4379_s7 + $0x18c] sm:$0xf] }
 0x217   : > { %v2161_v29 = vpop.f32.mrf.mxu1  ;;  %v2073_v44 = vadd.f32 %v2072_v4, %v5217_v60 }
 0x218   : > { %3160 = vst [vmem:[%s5285_s8 + $0x2a0] sm:$0xff] %v2248_v17  ;;  %v3808_v17 = vld [vmem:[%s4379_s7 + $0x28c] sm:$0xf] }
 0x219   : > { %2387 = vmatmul.bf16.gmra.mxu0 %v4842_v12  ;;  %2654 = vmatmul.bf16.gmra.mxu3 %v4842_v12  ;;  %v2162_v11 = vadd.f32 %v2161_v29, %v2073_v44  ;;  %v3541_v29 = vld [vmem:[%s4379_s7 + $0x198] sm:$0xf0] }
 0x21a   : > { %2476 = vmatmul.bf16.gmra.mxu1 %v4846_v34  ;;  %2565 = vmatmul.bf16.gmra.mxu2 %v4840_v31  ;;  %v3544_v44 = vor.u32 %v3776_v41, %v3541_v29 }
 0x21c   : > { %v5795_v8 = vpop.f32.mrf.mxu3  ;;  %2901 = vmatpush.bf16.msra.mxu2 %v3544_v44 }
 0x21d   : > { %v2250_v3 = vpop.f32.mrf.mxu2 }
 0x21e   : > { %v2074_v28 = vpop.f32.mrf.mxu0  ;;  %v2251_v35 = vadd.f32 %v2250_v3, %v2162_v11  ;;  %v3669_v11 = vld [vmem:[%s4379_s7 + $0x298] sm:$0xf0] }
 0x21f   : > { %v2163_v58 = vpop.f32.mrf.mxu1  ;;  %v2075_v49 = vadd.f32 %v2074_v28, %v5217_v60 }
 0x220   : > { %3164 = vst [vmem:[%s5285_s8 + $0x2c0] sm:$0xff] %v2251_v35 }
 0x221   : > { %v2164_v24 = vadd.f32 %v2163_v58, %v2075_v49  ;;  %v3672_v58 = vor.u32 %v3808_v17, %v3669_v11 }
 0x223   : > { %2990 = vmatpush.bf16.msra.mxu3 %v3672_v58 }
 0x224   : > { %v5799_v2 = vpop.f32.mrf.mxu3 }
 0x225   : > { %v2252_v59 = vpop.f32.mrf.mxu2 }
 0x226   : > { %v2077_v1 = vpop.f32.mrf.mxu0  ;;  %v2253_v21 = vadd.f32 %v2252_v59, %v2164_v24  ;;  %v3744_v59 = vld [vmem:[%s4379_s7 + $0x8c] sm:$0xf] }
 0x227   : > { %v2166_v61 = vpop.f32.mrf.mxu1  ;;  %v2078_v5 = vadd.f32 %v2077_v1, %v5217_v60 }
 0x228   : > { %3168 = vst [vmem:[%s5285_s8 + $0x2e0] sm:$0xff] %v2253_v21  ;;  %v3413_v21 = vld [vmem:[%s4379_s7 + $0x98] sm:$0xf0] }
 0x229   : > { %2392 = vmatmul.bf16.gmra.mxu0 %v4935_v7  ;;  %2659 = vmatmul.bf16.gmra.mxu3 %v4935_v7  ;;  %v2167_v28 = vadd.f32 %v2166_v61, %v2078_v5  ;;  %v3416_v7 = vor.u32 %v3744_v59, %v3413_v21 }
 0x22a   : > { %2481 = vmatmul.bf16.gmra.mxu1 %v4937_v51  ;;  %2570 = vmatmul.bf16.gmra.mxu2 %v4931_v16  ;;  %v3667_v16 = vld [vmem:[%s4379_s7 + $0x288] sm:$0xf]  ;;  %v3810_v51 = vld [vmem:[%s4379_s7 + $0x294] sm:$0xf0] }
 0x22b   : > { %v3668_v29 = vor.u32 %v3810_v51, %v3667_v16  ;;  %2812 = vmatpush.bf16.msra.mxu1 %v3416_v7 }
 0x22c   : > { %v5807_v4 = vpop.f32.mrf.mxu3 }
 0x22d   : > { %v2255_v35 = vpop.f32.mrf.mxu2  ;;  %2723 = vmatpush.bf16.msra.mxu0 %v3668_v29 }
 0x22e   : > { %v2079_v3 = vpop.f32.mrf.mxu0  ;;  %v2256_v24 = vadd.f32 %v2255_v35, %v2167_v28 }
 0x22f   : > { %v2168_v49 = vpop.f32.mrf.mxu1  ;;  %v2080_v1 = vadd.f32 %v2079_v3, %v5217_v60 }
 0x230   : > { %3172 = vst [vmem:[%s5285_s8 + $0x300] sm:$0xff] %v2256_v24 }
 0x231   : > { %v2169_v61 = vadd.f32 %v2168_v49, %v2080_v1 }
 0x234   : > { %v5819_v41 = vpop.f32.mrf.mxu3 }
 0x235   : > { %v2257_v17 = vpop.f32.mrf.mxu2 }
 0x236   : > { %v2082_v5 = vpop.f32.mrf.mxu0  ;;  %v2258_v11 = vadd.f32 %v2257_v17, %v2169_v61 }
 0x237   : > { %v2171_v44 = vpop.f32.mrf.mxu1  ;;  %v2083_v28 = vadd.f32 %v2082_v5, %v5217_v60  ;;  %v6497_v5 = vld [vmem:[#allocation18_spill] sm:$0xff] }
 0x238   : > { %3176 = vst [vmem:[%s5285_s8 + $0x320] sm:$0xff] %v2258_v11  ;;  %v6499_v11 = vld [vmem:[#allocation17_spill] sm:$0xff] }
 0x239   : > { %2397 = vmatmul.bf16.gmra.mxu0 %v5013_v20  ;;  %2664 = vmatmul.bf16.gmra.mxu3 %v5013_v20  ;;  %v2172_v7 = vadd.f32 %v2171_v44, %v2083_v28  ;;  %v6498_v44 = vld [vmem:[#allocation19_spill] sm:$0xff]  ;;  %v3651_v20 = vld [vmem:[%s4379_s7 + $0x268] sm:$0xf] }
 0x23a   : > { %2486 = vmatmul.bf16.gmra.mxu1 %v5022_v23  ;;  %2575 = vmatmul.bf16.gmra.mxu2 %v5009_v63  ;;  %v3806_v63 = vld [vmem:[%s4379_s7 + $0x274] sm:$0xf0] }
 0x23c   : > { %v5827_v16 = vpop.f32.mrf.mxu3 }
 0x23d   : > { %v2260_v3 = vpop.f32.mrf.mxu2 }
 0x23e   : > { %v2084_v51 = vpop.f32.mrf.mxu0  ;;  %v2261_v35 = vadd.f32 %v2260_v3, %v2172_v7  ;;  %v3772_v7 = vld [vmem:[%s4379_s7 + $0x16c] sm:$0xf] }
 0x23f   : > { %v2173_v58 = vpop.f32.mrf.mxu1  ;;  %v2085_v49 = vadd.f32 %v2084_v51, %v5217_v60  ;;  %v3525_v51 = vld [vmem:[%s4379_s7 + $0x178] sm:$0xf0]  ;;  %v3804_v3 = vld [vmem:[%s4379_s7 + $0x26c] sm:$0xf] }
 0x240   : > { %3180 = vst [vmem:[%s5285_s8 + $0x340] sm:$0xff] %v2261_v35  ;;  %v3653_v35 = vld [vmem:[%s4379_s7 + $0x278] sm:$0xf0] }
 0x241   : > { %v2174_v1 = vadd.f32 %v2173_v58, %v2085_v49  ;;  %v3528_v58 = vor.u32 %v3772_v7, %v3525_v51  ;;  %v3652_v51 = vor.u32 %v3806_v63, %v3651_v20 }
 0x243   : > { %2902 = vmatpush.bf16.msra.mxu2 %v3528_v58  ;;  %2724 = vmatpush.bf16.msra.mxu0 %v3652_v51  ;;  %v6506_v51 = vld [vmem:[#allocation26_spill] sm:$0xff] }
 0x244   : > { %v5831_v24 = vpop.f32.mrf.mxu3 }
 0x245   : > { %6496 = vst [vmem:[#allocation46_spill] sm:$0xff] %v5831_v24  ;;  %v2262_v21 = vpop.f32.mrf.mxu2 }
 0x246   : > { %v2087_v59 = vpop.f32.mrf.mxu0  ;;  %v2263_v61 = vadd.f32 %v2262_v21, %v2174_v1  ;;  %v3656_v21 = vor.u32 %v3804_v3, %v3653_v35 }
 0x247   : > { %v2176_v29 = vpop.f32.mrf.mxu1  ;;  %v2088_v17 = vadd.f32 %v2087_v59, %v5217_v60 }
 0x248   : > { %3184 = vst [vmem:[%s5285_s8 + $0x360] sm:$0xff] %v2263_v61  ;;  %2991 = vmatpush.bf16.msra.mxu3 %v3656_v21 }
 0x249   : > { %2402 = vmatmul.bf16.gmra.mxu0 %v6497_v5  ;;  %2669 = vmatmul.bf16.gmra.mxu3 %v6497_v5  ;;  %v2177_v49 = vadd.f32 %v2176_v29, %v2088_v17 }
 0x24a   : > { %2491 = vmatmul.bf16.gmra.mxu1 %v6498_v44  ;;  %2580 = vmatmul.bf16.gmra.mxu2 %v6499_v11  ;;  %v3740_v44 = vld [vmem:[%s4379_s7 + $0x6c] sm:$0xf] }
 0x24c   : > { %v5839_v28 = vpop.f32.mrf.mxu3 }
 0x24d   : > { %6500 = vst [vmem:[#allocation47_spill] sm:$0xff] %v5839_v28  ;;  %v2265_v59 = vpop.f32.mrf.mxu2  ;;  %v3397_v28 = vld [vmem:[%s4379_s7 + $0x78] sm:$0xf0] }
 0x24e   : > { %v2089_v1 = vpop.f32.mrf.mxu0  ;;  %v2266_v5 = vadd.f32 %v2265_v59, %v2177_v49  ;;  %v3400_v24 = vor.u32 %v3740_v44, %v3397_v28  ;;  %v6502_v28 = vld [vmem:[#allocation20_spill] sm:$0xff] }
 0x24f   : > { %v2178_v61 = vpop.f32.mrf.mxu1  ;;  %v2090_v11 = vadd.f32 %v2089_v1, %v5217_v60  ;;  %v5862_v1 = vld [vmem:[%s5208_s24] sm:$0xf] }
 0x250   : > { %3188 = vst [vmem:[%s5285_s8 + $0x380] sm:$0xff] %v2266_v5  ;;  %2813 = vmatpush.bf16.msra.mxu1 %v3400_v24  ;;  %v5865_v21 = vperm.slane %v5862_v1, 1 }
 0x251   : > { %v2179_v29 = vadd.f32 %v2178_v61, %v2090_v11  ;;  %6504 = vst [vmem:[#allocation50_spill] sm:$0xff] %v5862_v1 }
 0x254   : > { %v5851_v7 = vpop.f32.mrf.mxu3 }
 0x255   : > { %6501 = vst [vmem:[#allocation48_spill] sm:$0xff] %v5851_v7  ;;  %v2267_v3 = vpop.f32.mrf.mxu2 }
 0x256   : > { %v2092_v17 = vpop.f32.mrf.mxu0  ;;  %v2268_v5 = vadd.f32 %v2267_v3, %v2179_v29  ;;  %v2285_v29 = vadd.f32 %v6506_v51, %v5865_v21  ;;  %v3509_v51 = vld [vmem:[%s4379_s7 + $0x158] sm:$0xf0] }
 0x257   : > { %v2181_v58 = vpop.f32.mrf.mxu1  ;;  %v2093_v44 = vadd.f32 %v2092_v17, %v5217_v60 }
 0x258   : > { %3192 = vst [vmem:[%s5285_s8 + $0x3a0] sm:$0xff] %v2268_v5 }
 0x259   : > { %2407 = vmatmul.bf16.gmra.mxu0 %v5150_v53  ;;  %2674 = vmatmul.bf16.gmra.mxu3 %v5150_v53  ;;  %v2182_v20 = vadd.f32 %v2181_v58, %v2093_v44  ;;  %v6507_v53 = vld [vmem:[#allocation24_spill] sm:$0xff] }
 0x25a   : > { %2496 = vmatmul.bf16.gmra.mxu1 %v5162_v18  ;;  %2585 = vmatmul.bf16.gmra.mxu2 %v6502_v28  ;;  %v3736_v28 = vld [vmem:[%s4379_s7 + $0x4c] sm:$0xf]  ;;  %v3381_v18 = vld [vmem:[%s4379_s7 + $0x58] sm:$0xf0] }
 0x25c   : > { %v5859_v63 = vpop.f32.mrf.mxu3 }
 0x25d   : > { %6503 = vst [vmem:[#allocation49_spill] sm:$0xff] %v5859_v63  ;;  %v2270_v11 = vpop.f32.mrf.mxu2 }
 0x25e   : > { %v2094_v24 = vpop.f32.mrf.mxu0  ;;  %v2271_v49 = vadd.f32 %v2270_v11, %v2182_v20 }
 0x25f   : > { %v2183_v35 = vpop.f32.mrf.mxu1  ;;  %v2095_v59 = vadd.f32 %v2094_v24, %v5217_v60  ;;  %v6508_v60 = vld [vmem:[#allocation25_spill] sm:$0xff]  ;;  %v5879_v24 = vperm.slane %v5862_v1, 2 }
 0x260   : > { %3196 = vst [vmem:[%s5285_s8 + $0x3c0] sm:$0xff] %v2271_v49 }
 0x261   : > { %v2184_v17 = vadd.f32 %v2183_v35, %v2095_v59  ;;  %v6509_v35 = vld [vmem:[#allocation23_spill] sm:$0xff]  ;;  %v3768_v59 = vld [vmem:[%s4379_s7 + $0x14c] sm:$0xf] }
 0x264   : > { %v5869_v61 = vpop.f32.mrf.mxu3 }
 0x265   : > { %6505 = vst [vmem:[#allocation51_spill] sm:$0xff] %v5869_v61  ;;  %v2272_v58 = vpop.f32.mrf.mxu2 }
 0x266   : > { %v2373_v3 = vpop.f32.mrf.mxu0  ;;  %v2273_v20 = vadd.f32 %v2272_v58, %v2184_v17  ;;  %v6510_v17 = vld [vmem:[#allocation27_spill] sm:$0xff]  ;;  %v3512_v58 = vor.u32 %v3768_v59, %v3509_v51  ;;  %v3635_v59 = vld [vmem:[%s4379_s7 + $0x248] sm:$0xf]  ;;  %v3802_v51 = vld [vmem:[%s4379_s7 + $0x254] sm:$0xf0] }
 0x267   : > { %v2374_v5 = vadd.f32 %v2373_v3, %v2285_v29  ;;  %v2462_v44 = vpop.f32.mrf.mxu1  ;;  %v3800_v29 = vld [vmem:[%s4379_s7 + $0x24c] sm:$0xf]  ;;  %v2287_v3 = vadd.f32 %v6510_v17, %v5865_v21  ;;  %v3384_v17 = vor.u32 %v3736_v28, %v3381_v18  ;;  %v3636_v7 = vor.u32 %v3802_v51, %v3635_v59  ;;  %v6515_v28 = vld [vmem:[#allocation30_spill] sm:$0xff] }
 0x268   : > { %3200 = vst [vmem:[%s5285_s8 + $0x3e0] sm:$0xff] %v2273_v20  ;;  %2903 = vmatpush.bf16.msra.mxu2 %v3512_v58 }
 0x269   : > { %v2463_v11 = vadd.f32 %v2462_v44, %v2374_v5  ;;  %2412 = vmatmul.bf16.gmra.mxu0 %v6507_v53  ;;  %2679 = vmatmul.bf16.gmra.mxu3 %v6507_v53  ;;  %v3637_v5 = vld [vmem:[%s4379_s7 + $0x258] sm:$0xf0] }
 0x26a   : > { %2501 = vmatmul.bf16.gmra.mxu1 %v6508_v60  ;;  %2590 = vmatmul.bf16.gmra.mxu2 %v6509_v35  ;;  %v3640_v20 = vor.u32 %v3800_v29, %v3637_v5  ;;  %v6512_v29 = vld [vmem:[#allocation31_spill] sm:$0xff] }
 0x26b   : > { %3077 = vst [vmem:[%s5285_s8 + $0x8] sm:$0xff] %v2463_v11  ;;  %2814 = vmatpush.bf16.msra.mxu1 %v3384_v17  ;;  %2725 = vmatpush.bf16.msra.mxu0 %v3636_v7  ;;  %v6517_v7 = vld [vmem:[#allocation32_spill] sm:$0xff] }
 0x26c   : > { %v2640_v49 = vpop.f32.mrf.mxu3  ;;  %2992 = vmatpush.bf16.msra.mxu3 %v3640_v20 }
 0x26d   : > { %v2551_v11 = vpop.f32.mrf.mxu2 }
 0x26e   : > { %v2375_v44 = vpop.f32.mrf.mxu0  ;;  %v2552_v35 = vadd.f32 %v2551_v11, %v5879_v24  ;;  %v2292_v11 = vadd.f32 %v6517_v7, %v5865_v21 }
 0x26f   : > { %v2376_v53 = vadd.f32 %v2375_v44, %v2287_v3  ;;  %v2464_v1 = vpop.f32.mrf.mxu1  ;;  %v2290_v3 = vadd.f32 %v6512_v29, %v5865_v21 }
 0x270   : > { %v5889_v61 = vadd.f32 %v2640_v49, %v2552_v35  ;;  %v6513_v49 = vld [vmem:[#allocation29_spill] sm:$0xff] }
 0x271   : > { %v2465_v60 = vadd.f32 %v2464_v1, %v2376_v53 }
 0x272   : > { %6511 = vst [vmem:[#allocation26_spill] sm:$0xff] %v5889_v61 }
 0x273   : > { %3081 = vst [vmem:[%s5285_s8 + $0x28] sm:$0xff] %v2465_v60  ;;  %v6516_v60 = vld [vmem:[#allocation28_spill] sm:$0xff] }
 0x274   : > { %v2642_v63 = vpop.f32.mrf.mxu3 }
 0x275   : > { %v2553_v5 = vpop.f32.mrf.mxu2 }
 0x276   : > { %v2378_v58 = vpop.f32.mrf.mxu0  ;;  %v2554_v1 = vadd.f32 %v2553_v5, %v5879_v24 }
 0x277   : > { %v2379_v44 = vadd.f32 %v2378_v58, %v2290_v3  ;;  %v2467_v53 = vpop.f32.mrf.mxu1 }
 0x278   : > { %v5901_v18 = vadd.f32 %v2642_v63, %v2554_v1 }
 0x279   : > { %v2468_v35 = vadd.f32 %v2467_v53, %v2379_v44  ;;  %2417 = vmatmul.bf16.gmra.mxu0 %v6513_v49  ;;  %2684 = vmatmul.bf16.gmra.mxu3 %v6513_v49  ;;  %v6519_v44 = vld [vmem:[#allocation36_spill] sm:$0xff]  ;;  %v6520_v49 = vld [vmem:[#allocation34_spill] sm:$0xff] }
 0x27a   : > { %6514 = vst [vmem:[#allocation27_spill] sm:$0xff] %v5901_v18  ;;  %2506 = vmatmul.bf16.gmra.mxu1 %v6515_v28  ;;  %2595 = vmatmul.bf16.gmra.mxu2 %v6516_v60  ;;  %v2295_v53 = vadd.f32 %v6519_v44, %v5865_v21  ;;  %v3493_v44 = vld [vmem:[%s4379_s7 + $0x138] sm:$0xf0]  ;;  %v3732_v28 = vld [vmem:[%s4379_s7 + $0x2c] sm:$0xf] }
 0x27b   : > { %3085 = vst [vmem:[%s5285_s8 + $0x48] sm:$0xff] %v2468_v35 }
 0x27c   : > { %v2645_v20 = vpop.f32.mrf.mxu3 }
 0x27d   : > { %v2556_v59 = vpop.f32.mrf.mxu2 }
 0x27e   : > { %v2380_v17 = vpop.f32.mrf.mxu0  ;;  %v2557_v3 = vadd.f32 %v2556_v59, %v5879_v24 }
 0x27f   : > { %v2381_v51 = vadd.f32 %v2380_v17, %v2292_v11  ;;  %v2469_v29 = vpop.f32.mrf.mxu1 }
 0x280   : > { %v5909_v5 = vadd.f32 %v2645_v20, %v2557_v3 }
 0x281   : > { %v2470_v58 = vadd.f32 %v2469_v29, %v2381_v51  ;;  %v6522_v51 = vld [vmem:[#allocation35_spill] sm:$0xff]  ;;  %v6523_v29 = vld [vmem:[#allocation33_spill] sm:$0xff] }
 0x282   : > { %6518 = vst [vmem:[#allocation31_spill] sm:$0xff] %v5909_v5  ;;  %v3365_v5 = vld [vmem:[%s4379_s7 + $0x38] sm:$0xf0] }
 0x283   : > { %3089 = vst [vmem:[%s5285_s8 + $0x68] sm:$0xff] %v2470_v58  ;;  %v3764_v58 = vld [vmem:[%s4379_s7 + $0x12c] sm:$0xf] }
 0x284   : > { %v2647_v63 = vpop.f32.mrf.mxu3 }
 0x285   : > { %v2558_v35 = vpop.f32.mrf.mxu2 }
 0x286   : > { %v2383_v1 = vpop.f32.mrf.mxu0  ;;  %v2559_v17 = vadd.f32 %v2558_v35, %v5879_v24 }
 0x287   : > { %v2384_v7 = vadd.f32 %v2383_v1, %v2295_v53  ;;  %v2472_v11 = vpop.f32.mrf.mxu1  ;;  %v3796_v53 = vld [vmem:[%s4379_s7 + $0x22c] sm:$0xf]  ;;  %v6524_v1 = vld [vmem:[#allocation37_spill] sm:$0xff] }
 0x288   : > { %v5917_v20 = vadd.f32 %v2647_v63, %v2559_v17  ;;  %v2297_v35 = vadd.f32 %v6524_v1, %v5865_v21  ;;  %v3368_v1 = vor.u32 %v3732_v28, %v3365_v5  ;;  %v6527_v5 = vld [vmem:[#allocation40_spill] sm:$0xff] }
 0x289   : > { %v2473_v59 = vadd.f32 %v2472_v11, %v2384_v7  ;;  %2422 = vmatmul.bf16.gmra.mxu0 %v6520_v49  ;;  %2689 = vmatmul.bf16.gmra.mxu3 %v6520_v49  ;;  %v3496_v7 = vor.u32 %v3764_v58, %v3493_v44  ;;  %v3621_v11 = vld [vmem:[%s4379_s7 + $0x238] sm:$0xf0]  ;;  %v3619_v58 = vld [vmem:[%s4379_s7 + $0x228] sm:$0xf]  ;;  %v3798_v44 = vld [vmem:[%s4379_s7 + $0x234] sm:$0xf0] }
 0x28a   : > { %6521 = vst [vmem:[#allocation32_spill] sm:$0xff] %v5917_v20  ;;  %2511 = vmatmul.bf16.gmra.mxu1 %v6522_v51  ;;  %2600 = vmatmul.bf16.gmra.mxu2 %v6523_v29  ;;  %v3624_v17 = vor.u32 %v3796_v53, %v3621_v11  ;;  %v3620_v61 = vor.u32 %v3798_v44, %v3619_v58  ;;  %v6525_v53 = vld [vmem:[#allocation41_spill] sm:$0xff] }
 0x28b   : > { %3093 = vst [vmem:[%s5285_s8 + $0x88] sm:$0xff] %v2473_v59  ;;  %2904 = vmatpush.bf16.msra.mxu2 %v3496_v7  ;;  %2815 = vmatpush.bf16.msra.mxu1 %v3368_v1 }
 0x28c   : > { %v2650_v3 = vpop.f32.mrf.mxu3  ;;  %2993 = vmatpush.bf16.msra.mxu3 %v3624_v17  ;;  %2726 = vmatpush.bf16.msra.mxu0 %v3620_v61  ;;  %v2302_v61 = vadd.f32 %v5541_v48, %v5865_v21 }
 0x28d   : > { %v2561_v49 = vpop.f32.mrf.mxu2 }
 0x28e   : > { %v2385_v63 = vpop.f32.mrf.mxu0  ;;  %v2562_v29 = vadd.f32 %v2561_v49, %v5879_v24 }
 0x28f   : > { %v2386_v59 = vadd.f32 %v2385_v63, %v2297_v35  ;;  %v2474_v51 = vpop.f32.mrf.mxu1  ;;  %v2300_v35 = vadd.f32 %v6525_v53, %v5865_v21  ;;  %v6526_v63 = vld [vmem:[#allocation39_spill] sm:$0xff] }
 0x290   : > { %v5929_v60 = vadd.f32 %v2650_v3, %v2562_v29 }
 0x291   : > { %v2475_v20 = vadd.f32 %v2474_v51, %v2386_v59 }
 0x293   : > { %3097 = vst [vmem:[%s5285_s8 + $0xa8] sm:$0xff] %v2475_v20  ;;  %v6528_v20 = vld [vmem:[#allocation38_spill] sm:$0xff] }
 0x294   : > { %v2652_v18 = vpop.f32.mrf.mxu3 }
 0x295   : > { %v2563_v49 = vpop.f32.mrf.mxu2 }
 0x296   : > { %v2388_v7 = vpop.f32.mrf.mxu0  ;;  %v2564_v29 = vadd.f32 %v2563_v49, %v5879_v24  ;;  %v2305_v49 = vadd.f32 %v5581_v30, %v5865_v21 }
 0x297   : > { %v2389_v11 = vadd.f32 %v2388_v7, %v2300_v35  ;;  %v2477_v51 = vpop.f32.mrf.mxu1 }
 0x298   : > { %v5941_v28 = vadd.f32 %v2652_v18, %v2564_v29 }
 0x299   : > { %v2478_v3 = vadd.f32 %v2477_v51, %v2389_v11  ;;  %2427 = vmatmul.bf16.gmra.mxu0 %v6526_v63  ;;  %2694 = vmatmul.bf16.gmra.mxu3 %v6526_v63  ;;  %v3349_v63 = vld [vmem:[%s4379_s7 + $0x18] sm:$0xf0] }
 0x29a   : > { %2516 = vmatmul.bf16.gmra.mxu1 %v6527_v5  ;;  %2605 = vmatmul.bf16.gmra.mxu2 %v6528_v20 }
 0x29b   : > { %3101 = vst [vmem:[%s5285_s8 + $0xc8] sm:$0xff] %v2478_v3 }
 0x29c   : > { %v2655_v17 = vpop.f32.mrf.mxu3 }
 0x29d   : > { %v2566_v1 = vpop.f32.mrf.mxu2 }
 0x29e   : > { %v2390_v59 = vpop.f32.mrf.mxu0  ;;  %v2567_v53 = vadd.f32 %v2566_v1, %v5879_v24  ;;  %v6531_v1 = vld [vmem:[#allocation42_spill] sm:$0xff] }
 0x29f   : > { %v2391_v58 = vadd.f32 %v2390_v59, %v2302_v61  ;;  %v2479_v44 = vpop.f32.mrf.mxu1  ;;  %v6530_v59 = vld [vmem:[#allocation44_spill] sm:$0xff] }
 0x2a0   : > { %v5949_v7 = vadd.f32 %v2655_v17, %v2567_v53  ;;  %v3792_v53 = vld [vmem:[%s4379_s7 + $0x20c] sm:$0xf] }
 0x2a1   : > { %v2480_v35 = vadd.f32 %v2479_v44, %v2391_v58  ;;  %v3760_v58 = vld [vmem:[%s4379_s7 + $0x10c] sm:$0xf]  ;;  %v3477_v44 = vld [vmem:[%s4379_s7 + $0x118] sm:$0xf0] }
 0x2a3   : > { %3105 = vst [vmem:[%s5285_s8 + $0xe8] sm:$0xff] %v2480_v35  ;;  %v6532_v35 = vld [vmem:[#allocation45_spill] sm:$0xff] }
 0x2a4   : > { %v2657_v18 = vpop.f32.mrf.mxu3 }
 0x2a5   : > { %v2568_v48 = vpop.f32.mrf.mxu2 }
 0x2a6   : > { %v2393_v11 = vpop.f32.mrf.mxu0  ;;  %v2569_v3 = vadd.f32 %v2568_v48, %v5879_v24  ;;  %v3605_v48 = vld [vmem:[%s4379_s7 + $0x218] sm:$0xf0] }
 0x2a7   : > { %v2394_v51 = vadd.f32 %v2393_v11, %v2305_v49  ;;  %v2482_v29 = vpop.f32.mrf.mxu1  ;;  %v2307_v49 = vadd.f32 %v6532_v35, %v5865_v21  ;;  %v3480_v11 = vor.u32 %v3760_v58, %v3477_v44  ;;  %v3603_v58 = vld [vmem:[%s4379_s7 + $0x208] sm:$0xf]  ;;  %v3794_v44 = vld [vmem:[%s4379_s7 + $0x214] sm:$0xf0] }
 0x2a8   : > { %v5957_v17 = vadd.f32 %v2657_v18, %v2569_v3  ;;  %v3604_v5 = vor.u32 %v3794_v44, %v3603_v58  ;;  %v2315_v58 = vadd.f32 %v5689_v45, %v5865_v21 }
 0x2a9   : > { %v2483_v61 = vadd.f32 %v2482_v29, %v2394_v51  ;;  %2432 = vmatmul.bf16.gmra.mxu0 %v5555_v6  ;;  %2699 = vmatmul.bf16.gmra.mxu3 %v5555_v6  ;;  %v3608_v51 = vor.u32 %v3792_v53, %v3605_v48  ;;  %v2310_v53 = vadd.f32 %v5647_v14, %v5865_v21 }
 0x2aa   : > { %6529 = vst [vmem:[#allocation36_spill] sm:$0xff] %v5957_v17  ;;  %2521 = vmatmul.bf16.gmra.mxu1 %v6530_v59  ;;  %2610 = vmatmul.bf16.gmra.mxu2 %v6531_v1  ;;  %v3728_v17 = vld [vmem:[%s4379_s7 + $0xc] sm:$0xf] }
 0x2ab   : > { %3109 = vst [vmem:[%s5285_s8 + $0x108] sm:$0xff] %v2483_v61  ;;  %2905 = vmatpush.bf16.msra.mxu2 %v3480_v11  ;;  %2994 = vmatpush.bf16.msra.mxu3 %v3608_v51  ;;  %v3352_v35 = vor.u32 %v3728_v17, %v3349_v63 }
 0x2ac   : > { %v2660_v30 = vpop.f32.mrf.mxu3  ;;  %2727 = vmatpush.bf16.msra.mxu0 %v3604_v5  ;;  %v2312_v5 = vadd.f32 %v5663_v9, %v5865_v21 }
 0x2ad   : > { %v2571_v29 = vpop.f32.mrf.mxu2  ;;  %2816 = vmatpush.bf16.msra.mxu1 %v3352_v35 }
 0x2ae   : > { %v2395_v18 = vpop.f32.mrf.mxu0  ;;  %v2572_v6 = vadd.f32 %v2571_v29, %v5879_v24 }
 0x2af   : > { %v2396_v3 = vadd.f32 %v2395_v18, %v2307_v49  ;;  %v2484_v61 = vpop.f32.mrf.mxu1 }
 0x2b0   : > { %v5969_v59 = vadd.f32 %v2660_v30, %v2572_v6 }
 0x2b1   : > { %v2485_v1 = vadd.f32 %v2484_v61, %v2396_v3 }
 0x2b3   : > { %3113 = vst [vmem:[%s5285_s8 + $0x128] sm:$0xff] %v2485_v1 }
 0x2b4   : > { %v2662_v20 = vpop.f32.mrf.mxu3 }
 0x2b5   : > { %v2573_v11 = vpop.f32.mrf.mxu2 }
 0x2b6   : > { %v2398_v49 = vpop.f32.mrf.mxu0  ;;  %v2574_v6 = vadd.f32 %v2573_v11, %v5879_v24 }
 0x2b7   : > { %v2399_v48 = vadd.f32 %v2398_v49, %v2310_v53  ;;  %v2487_v18 = vpop.f32.mrf.mxu1 }
 0x2b8   : > { %v5981_v63 = vadd.f32 %v2662_v20, %v2574_v6  ;;  %v2317_v6 = vadd.f32 %v5717_v0, %v5865_v21 }
 0x2b9   : > { %v2488_v30 = vadd.f32 %v2487_v18, %v2399_v48  ;;  %2437 = vmatmul.bf16.gmra.mxu0 %v5621_v26  ;;  %2704 = vmatmul.bf16.gmra.mxu3 %v5621_v26 }
 0x2ba   : > { %2526 = vmatmul.bf16.gmra.mxu1 %v5634_v22  ;;  %2615 = vmatmul.bf16.gmra.mxu2 %v5617_v57 }
 0x2bb   : > { %3117 = vst [vmem:[%s5285_s8 + $0x148] sm:$0xff] %v2488_v30 }
 0x2bc   : > { %v2665_v14 = vpop.f32.mrf.mxu3 }
 0x2bd   : > { %v2576_v1 = vpop.f32.mrf.mxu2 }
 0x2be   : > { %v2400_v17 = vpop.f32.mrf.mxu0  ;;  %v2577_v3 = vadd.f32 %v2576_v1, %v5879_v24 }
 0x2bf   : > { %v2401_v51 = vadd.f32 %v2400_v17, %v2312_v5  ;;  %v2489_v29 = vpop.f32.mrf.mxu1 }
 0x2c0   : > { %v5989_v35 = vadd.f32 %v2665_v14, %v2577_v3 }
 0x2c1   : > { %v2490_v61 = vadd.f32 %v2489_v29, %v2401_v51 }
 0x2c3   : > { %3121 = vst [vmem:[%s5285_s8 + $0x168] sm:$0xff] %v2490_v61  ;;  %v2320_v61 = vadd.f32 %v5731_v43, %v5865_v21 }
 0x2c4   : > { %v2667_v20 = vpop.f32.mrf.mxu3 }
 0x2c5   : > { %v2578_v53 = vpop.f32.mrf.mxu2 }
 0x2c6   : > { %v2403_v44 = vpop.f32.mrf.mxu0  ;;  %v2579_v9 = vadd.f32 %v2578_v53, %v5879_v24 }
 0x2c7   : > { %v2404_v49 = vadd.f32 %v2403_v44, %v2315_v58  ;;  %v2492_v11 = vpop.f32.mrf.mxu1 }
 0x2c8   : > { %v5997_v18 = vadd.f32 %v2667_v20, %v2579_v9  ;;  %v2322_v9 = vadd.f32 %v5735_v52, %v5865_v21 }
 0x2c9   : > { %v2493_v48 = vadd.f32 %v2492_v11, %v2404_v49  ;;  %2442 = vmatmul.bf16.gmra.mxu0 %v5668_v55  ;;  %2709 = vmatmul.bf16.gmra.mxu3 %v5668_v55 }
 0x2ca   : > { %2531 = vmatmul.bf16.gmra.mxu1 %v5678_v15  ;;  %2620 = vmatmul.bf16.gmra.mxu2 %v5666_v13 }
 0x2cb   : > { %3125 = vst [vmem:[%s5285_s8 + $0x188] sm:$0xff] %v2493_v48 }
 0x2cc   : > { %v2670_v45 = vpop.f32.mrf.mxu3 }
 0x2cd   : > { %v2581_v14 = vpop.f32.mrf.mxu2 }
 0x2ce   : > { %v2405_v30 = vpop.f32.mrf.mxu0  ;;  %v2582_v1 = vadd.f32 %v2581_v14, %v5879_v24 }
 0x2cf   : > { %v2406_v5 = vadd.f32 %v2405_v30, %v2317_v6  ;;  %v2494_v17 = vpop.f32.mrf.mxu1 }
 0x2d0   : > { %v6005_v29 = vadd.f32 %v2670_v45, %v2582_v1 }
 0x2d1   : > { %v2495_v51 = vadd.f32 %v2494_v17, %v2406_v5 }
 0x2d3   : > { %3129 = vst [vmem:[%s5285_s8 + $0x1a8] sm:$0xff] %v2495_v51  ;;  %v2325_v51 = vadd.f32 %v5743_v33, %v5865_v21 }
 0x2d4   : > { %v2672_v3 = vpop.f32.mrf.mxu3 }
 0x2d5   : > { %v2583_v58 = vpop.f32.mrf.mxu2 }
 0x2d6   : > { %v2408_v20 = vpop.f32.mrf.mxu0  ;;  %v2584_v0 = vadd.f32 %v2583_v58, %v5879_v24 }
 0x2d7   : > { %v2409_v44 = vadd.f32 %v2408_v20, %v2320_v61  ;;  %v2497_v53 = vpop.f32.mrf.mxu1 }
 0x2d8   : > { %v6013_v11 = vadd.f32 %v2672_v3, %v2584_v0  ;;  %v2327_v0 = vadd.f32 %v5755_v62, %v5865_v21 }
 0x2d9   : > { %v2498_v49 = vadd.f32 %v2497_v53, %v2409_v44  ;;  %2447 = vmatmul.bf16.gmra.mxu0 %v5721_v37  ;;  %2714 = vmatmul.bf16.gmra.mxu3 %v5721_v37 }
 0x2da   : > { %2536 = vmatmul.bf16.gmra.mxu1 %v5728_v46  ;;  %2625 = vmatmul.bf16.gmra.mxu2 %v5719_v25 }
 0x2db   : > { %3133 = vst [vmem:[%s5285_s8 + $0x1c8] sm:$0xff] %v2498_v49 }
 0x2dc   : > { %v2675_v43 = vpop.f32.mrf.mxu3 }
 0x2dd   : > { %v2586_v45 = vpop.f32.mrf.mxu2 }
 0x2de   : > { %v2410_v48 = vpop.f32.mrf.mxu0  ;;  %v2587_v14 = vadd.f32 %v2586_v45, %v5879_v24 }
 0x2df   : > { %v2411_v6 = vadd.f32 %v2410_v48, %v2322_v9  ;;  %v2499_v30 = vpop.f32.mrf.mxu1 }
 0x2e0   : > { %v6021_v17 = vadd.f32 %v2675_v43, %v2587_v14 }
 0x2e1   : > { %v2500_v5 = vadd.f32 %v2499_v30, %v2411_v6 }
 0x2e3   : > { %3137 = vst [vmem:[%s5285_s8 + $0x1e8] sm:$0xff] %v2500_v5 }
 0x2e4   : > { %v2677_v1 = vpop.f32.mrf.mxu3 }
 0x2e5   : > { %v2588_v61 = vpop.f32.mrf.mxu2 }
 0x2e6   : > { %v2413_v3 = vpop.f32.mrf.mxu0  ;;  %v2589_v52 = vadd.f32 %v2588_v61, %v5879_v24  ;;  %v2332_v61 = vadd.f32 %v5767_v54, %v5865_v21 }
 0x2e7   : > { %v2414_v20 = vadd.f32 %v2413_v3, %v2325_v51  ;;  %v2502_v58 = vpop.f32.mrf.mxu1 }
 0x2e8   : > { %v6029_v53 = vadd.f32 %v2677_v1, %v2589_v52 }
 0x2e9   : > { %v2503_v44 = vadd.f32 %v2502_v58, %v2414_v20  ;;  %2728 = vmatmul.bf16.vlgmr.msra.gmra.mxu0 %v4599_v39  ;;  %2995 = vmatmul.bf16.vlgmr.msra.gmra.mxu3 %v4599_v39 }
 0x2ea   : > { %2817 = vmatmul.bf16.vlgmr.msra.gmra.mxu1 %v4587_v38  ;;  %2906 = vmatmul.bf16.vlgmr.msra.gmra.mxu2 %v4592_v32  ;;  %v2330_v38 = vadd.f32 %v5763_v42, %v5865_v21 }
 0x2eb   : > { %3141 = vst [vmem:[%s5285_s8 + $0x208] sm:$0xff] %v2503_v44 }
 0x2ec   : > { %v2680_v33 = vpop.f32.mrf.mxu3 }
 0x2ed   : > { %v2591_v43 = vpop.f32.mrf.mxu2 }
 0x2ee   : > { %v2415_v49 = vpop.f32.mrf.mxu0  ;;  %v2592_v45 = vadd.f32 %v2591_v43, %v5879_v24 }
 0x2ef   : > { %v2416_v9 = vadd.f32 %v2415_v49, %v2327_v0  ;;  %v2504_v48 = vpop.f32.mrf.mxu1 }
 0x2f0   : > { %v6037_v39 = vadd.f32 %v2680_v33, %v2592_v45 }
 0x2f1   : > { %v2505_v6 = vadd.f32 %v2504_v48, %v2416_v9 }
 0x2f3   : > { %3145 = vst [vmem:[%s5285_s8 + $0x228] sm:$0xff] %v2505_v6 }
 0x2f4   : > { %v2682_v30 = vpop.f32.mrf.mxu3 }
 0x2f5   : > { %v2593_v14 = vpop.f32.mrf.mxu2 }
 0x2f6   : > { %v2418_v32 = vpop.f32.mrf.mxu0  ;;  %v2594_v62 = vadd.f32 %v2593_v14, %v5879_v24 }
 0x2f7   : > { %v2419_v5 = vadd.f32 %v2418_v32, %v2330_v38  ;;  %v2507_v1 = vpop.f32.mrf.mxu1 }
 0x2f8   : > { %v6045_v3 = vadd.f32 %v2682_v30, %v2594_v62  ;;  %v2337_v30 = vadd.f32 %v5787_v40, %v5865_v21 }
 0x2f9   : > { %v2508_v51 = vadd.f32 %v2507_v1, %v2419_v5  ;;  %2733 = vmatmul.bf16.gmra.mxu0 %v4664_v36  ;;  %3000 = vmatmul.bf16.gmra.mxu3 %v4664_v36 }
 0x2fa   : > { %2822 = vmatmul.bf16.gmra.mxu1 %v4651_v47  ;;  %2911 = vmatmul.bf16.gmra.mxu2 %v4659_v56  ;;  %v2335_v47 = vadd.f32 %v5775_v19, %v5865_v21 }
 0x2fb   : > { %3149 = vst [vmem:[%s5285_s8 + $0x248] sm:$0xff] %v2508_v51 }
 0x2fc   : > { %v2685_v42 = vpop.f32.mrf.mxu3 }
 0x2fd   : > { %v2596_v58 = vpop.f32.mrf.mxu2 }
 0x2fe   : > { %v2420_v20 = vpop.f32.mrf.mxu0  ;;  %v2597_v33 = vadd.f32 %v2596_v58, %v5879_v24 }
 0x2ff   : > { %v2421_v52 = vadd.f32 %v2420_v20, %v2332_v61  ;;  %v2509_v44 = vpop.f32.mrf.mxu1 }
 0x300   : > { %v6053_v36 = vadd.f32 %v2685_v42, %v2597_v33 }
 0x301   : > { %v2510_v0 = vadd.f32 %v2509_v44, %v2421_v52  ;;  %v2342_v44 = vadd.f32 %v5799_v2, %v5865_v21 }
 0x303   : > { %3153 = vst [vmem:[%s5285_s8 + $0x268] sm:$0xff] %v2510_v0 }
 0x304   : > { %v2687_v49 = vpop.f32.mrf.mxu3 }
 0x305   : > { %v2598_v43 = vpop.f32.mrf.mxu2 }
 0x306   : > { %v2423_v56 = vpop.f32.mrf.mxu0  ;;  %v2599_v54 = vadd.f32 %v2598_v43, %v5879_v24 }
 0x307   : > { %v2424_v9 = vadd.f32 %v2423_v56, %v2335_v47  ;;  %v2512_v48 = vpop.f32.mrf.mxu1 }
 0x308   : > { %v6061_v6 = vadd.f32 %v2687_v49, %v2599_v54 }
 0x309   : > { %v2513_v45 = vadd.f32 %v2512_v48, %v2424_v9  ;;  %2738 = vmatmul.bf16.gmra.mxu0 %v4762_v50  ;;  %3005 = vmatmul.bf16.gmra.mxu3 %v4762_v50 }
 0x30a   : > { %2827 = vmatmul.bf16.gmra.mxu1 %v4744_v10  ;;  %2916 = vmatmul.bf16.gmra.mxu2 %v4753_v27  ;;  %v2340_v10 = vadd.f32 %v5795_v8, %v5865_v21 }
 0x30b   : > { %3157 = vst [vmem:[%s5285_s8 + $0x288] sm:$0xff] %v2513_v45 }
 0x30c   : > { %v2690_v19 = vpop.f32.mrf.mxu3 }
 0x30d   : > { %v2601_v32 = vpop.f32.mrf.mxu2 }
 0x30e   : > { %v2425_v38 = vpop.f32.mrf.mxu0  ;;  %v2602_v1 = vadd.f32 %v2601_v32, %v5879_v24  ;;  %v6534_v32 = vld [vmem:[#allocation12_spill] sm:$0xff] }
 0x30f   : > { %v2426_v14 = vadd.f32 %v2425_v38, %v2337_v30  ;;  %v2514_v5 = vpop.f32.mrf.mxu1  ;;  %v6533_v30 = vld [vmem:[#allocation14_spill] sm:$0xff] }
 0x310   : > { %v6069_v50 = vadd.f32 %v2690_v19, %v2602_v1 }
 0x311   : > { %v2515_v62 = vadd.f32 %v2514_v5, %v2426_v14  ;;  %v6535_v14 = vld [vmem:[#allocation13_spill] sm:$0xff]  ;;  %v2347_v5 = vadd.f32 %v5819_v41, %v5865_v21 }
 0x313   : > { %3161 = vst [vmem:[%s5285_s8 + $0x2a8] sm:$0xff] %v2515_v62 }
 0x314   : > { %v2692_v51 = vpop.f32.mrf.mxu3 }
 0x315   : > { %v2603_v42 = vpop.f32.mrf.mxu2 }
 0x316   : > { %v2428_v27 = vpop.f32.mrf.mxu0  ;;  %v2604_v40 = vadd.f32 %v2603_v42, %v5879_v24 }
 0x317   : > { %v2429_v61 = vadd.f32 %v2428_v27, %v2340_v10  ;;  %v2517_v20 = vpop.f32.mrf.mxu1 }
 0x318   : > { %v6077_v52 = vadd.f32 %v2692_v51, %v2604_v40  ;;  %v2350_v40 = vadd.f32 %v5827_v16, %v5865_v21 }
 0x319   : > { %v2518_v58 = vadd.f32 %v2517_v20, %v2429_v61  ;;  %2743 = vmatmul.bf16.gmra.mxu0 %v4846_v34  ;;  %3010 = vmatmul.bf16.gmra.mxu3 %v4846_v34 }
 0x31a   : > { %2832 = vmatmul.bf16.gmra.mxu1 %v4840_v31  ;;  %2921 = vmatmul.bf16.gmra.mxu2 %v4842_v12  ;;  %v2345_v31 = vadd.f32 %v5807_v4, %v5865_v21 }
 0x31b   : > { %3165 = vst [vmem:[%s5285_s8 + $0x2c8] sm:$0xff] %v2518_v58 }
 0x31c   : > { %v2695_v8 = vpop.f32.mrf.mxu3 }
 0x31d   : > { %v2606_v0 = vpop.f32.mrf.mxu2 }
 0x31e   : > { %v2430_v33 = vpop.f32.mrf.mxu0  ;;  %v2607_v56 = vadd.f32 %v2606_v0, %v5879_v24 }
 0x31f   : > { %v2431_v49 = vadd.f32 %v2430_v33, %v2342_v44  ;;  %v2519_v47 = vpop.f32.mrf.mxu1 }
 0x320   : > { %v6085_v34 = vadd.f32 %v2695_v8, %v2607_v56  ;;  %v6537_v56 = vld [vmem:[#allocation16_spill] sm:$0xff] }
 0x321   : > { %v2520_v43 = vadd.f32 %v2519_v47, %v2431_v49  ;;  %v6536_v47 = vld [vmem:[#allocation15_spill] sm:$0xff] }
 0x323   : > { %3169 = vst [vmem:[%s5285_s8 + $0x2e8] sm:$0xff] %v2520_v43  ;;  %v6538_v43 = vld [vmem:[#allocation46_spill] sm:$0xff] }
 0x324   : > { %v2697_v9 = vpop.f32.mrf.mxu3 }
 0x325   : > { %v2608_v48 = vpop.f32.mrf.mxu2 }
 0x326   : > { %v2433_v12 = vpop.f32.mrf.mxu0  ;;  %v2609_v2 = vadd.f32 %v2608_v48, %v5879_v24 }
 0x327   : > { %v2434_v54 = vadd.f32 %v2433_v12, %v2345_v31  ;;  %v2522_v45 = vpop.f32.mrf.mxu1 }
 0x328   : > { %v6093_v38 = vadd.f32 %v2697_v9, %v2609_v2  ;;  %v2352_v9 = vadd.f32 %v6538_v43, %v5865_v21 }
 0x329   : > { %v2523_v19 = vadd.f32 %v2522_v45, %v2434_v54  ;;  %2748 = vmatmul.bf16.gmra.mxu0 %v6533_v30  ;;  %3015 = vmatmul.bf16.gmra.mxu3 %v6533_v30  ;;  %v6539_v30 = vld [vmem:[#allocation47_spill] sm:$0xff] }
 0x32a   : > { %2837 = vmatmul.bf16.gmra.mxu1 %v6534_v32  ;;  %2926 = vmatmul.bf16.gmra.mxu2 %v6535_v14  ;;  %v2355_v32 = vadd.f32 %v6539_v30, %v5865_v21  ;;  %v6545_v30 = vld [vmem:[#allocation22_spill] sm:$0xff] }
 0x32b   : > { %3173 = vst [vmem:[%s5285_s8 + $0x308] sm:$0xff] %v2523_v19 }
 0x32c   : > { %v2700_v4 = vpop.f32.mrf.mxu3 }
 0x32d   : > { %v2611_v62 = vpop.f32.mrf.mxu2 }
 0x32e   : > { %v2435_v1 = vpop.f32.mrf.mxu0  ;;  %v2612_v27 = vadd.f32 %v2611_v62, %v5879_v24 }
 0x32f   : > { %v2436_v51 = vadd.f32 %v2435_v1, %v2347_v5  ;;  %v2524_v10 = vpop.f32.mrf.mxu1 }
 0x330   : > { %v6101_v61 = vadd.f32 %v2700_v4, %v2612_v27 }
 0x331   : > { %v2525_v42 = vadd.f32 %v2524_v10, %v2436_v51  ;;  %v6540_v10 = vld [vmem:[#allocation19_spill] sm:$0xff] }
 0x333   : > { %3177 = vst [vmem:[%s5285_s8 + $0x328] sm:$0xff] %v2525_v42  ;;  %v6541_v42 = vld [vmem:[#allocation17_spill] sm:$0xff] }
 0x334   : > { %v2702_v20 = vpop.f32.mrf.mxu3 }
 0x335   : > { %v2613_v8 = vpop.f32.mrf.mxu2 }
 0x336   : > { %v2438_v58 = vpop.f32.mrf.mxu0  ;;  %v2614_v41 = vadd.f32 %v2613_v8, %v5879_v24 }
 0x337   : > { %v2439_v44 = vadd.f32 %v2438_v58, %v2350_v40  ;;  %v2527_v33 = vpop.f32.mrf.mxu1  ;;  %v6543_v58 = vld [vmem:[#allocation48_spill] sm:$0xff] }
 0x338   : > { %v6109_v49 = vadd.f32 %v2702_v20, %v2614_v41  ;;  %v6542_v20 = vld [vmem:[#allocation18_spill] sm:$0xff]  ;;  %v2357_v8 = vadd.f32 %v6543_v58, %v5865_v21 }
 0x339   : > { %v2528_v0 = vadd.f32 %v2527_v33, %v2439_v44  ;;  %2753 = vmatmul.bf16.gmra.mxu0 %v5022_v23  ;;  %3020 = vmatmul.bf16.gmra.mxu3 %v5022_v23 }
 0x33a   : > { %2842 = vmatmul.bf16.gmra.mxu1 %v6536_v47  ;;  %2931 = vmatmul.bf16.gmra.mxu2 %v6537_v56 }
 0x33b   : > { %3181 = vst [vmem:[%s5285_s8 + $0x348] sm:$0xff] %v2528_v0 }
 0x33c   : > { %v2705_v16 = vpop.f32.mrf.mxu3 }
 0x33d   : > { %v2616_v12 = vpop.f32.mrf.mxu2 }
 0x33e   : > { %v2440_v31 = vpop.f32.mrf.mxu0  ;;  %v2617_v45 = vadd.f32 %v2616_v12, %v5879_v24 }
 0x33f   : > { %v2441_v48 = vadd.f32 %v2440_v31, %v2352_v9  ;;  %v2529_v54 = vpop.f32.mrf.mxu1  ;;  %v6544_v9 = vld [vmem:[#allocation49_spill] sm:$0xff] }
 0x340   : > { %v6117_v23 = vadd.f32 %v2705_v16, %v2617_v45  ;;  %v2360_v31 = vadd.f32 %v6544_v9, %v5865_v21 }
 0x341   : > { %v2530_v2 = vadd.f32 %v2529_v54, %v2441_v48 }
 0x343   : > { %3185 = vst [vmem:[%s5285_s8 + $0x368] sm:$0xff] %v2530_v2 }
 0x344   : > { %v2707_v19 = vpop.f32.mrf.mxu3 }
 0x345   : > { %v2618_v4 = vpop.f32.mrf.mxu2 }
 0x346   : > { %v2443_v14 = vpop.f32.mrf.mxu0  ;;  %v2619_v62 = vadd.f32 %v2618_v4, %v5879_v24  ;;  %v6547_v4 = vld [vmem:[#allocation21_spill] sm:$0xff] }
 0x347   : > { %v2444_v5 = vadd.f32 %v2443_v14, %v2355_v32  ;;  %v2532_v1 = vpop.f32.mrf.mxu1  ;;  %v6546_v14 = vld [vmem:[#allocation20_spill] sm:$0xff] }
 0x348   : > { %v6125_v27 = vadd.f32 %v2707_v19, %v2619_v62 }
 0x349   : > { %v2533_v51 = vadd.f32 %v2532_v1, %v2444_v5  ;;  %2758 = vmatmul.bf16.gmra.mxu0 %v6540_v10  ;;  %3025 = vmatmul.bf16.gmra.mxu3 %v6540_v10  ;;  %v6548_v1 = vld [vmem:[#allocation51_spill] sm:$0xff] }
 0x34a   : > { %2847 = vmatmul.bf16.gmra.mxu1 %v6541_v42  ;;  %2936 = vmatmul.bf16.gmra.mxu2 %v6542_v20  ;;  %v2362_v62 = vadd.f32 %v6548_v1, %v5865_v21  ;;  %v6550_v21 = vld [vmem:[#allocation25_spill] sm:$0xff] }
 0x34b   : > { %3189 = vst [vmem:[%s5285_s8 + $0x388] sm:$0xff] %v2533_v51 }
 0x34c   : > { %v2710_v40 = vpop.f32.mrf.mxu3 }
 0x34d   : > { %v2621_v33 = vpop.f32.mrf.mxu2 }
 0x34e   : > { %v2445_v44 = vpop.f32.mrf.mxu0  ;;  %v2622_v47 = vadd.f32 %v2621_v33, %v5879_v24 }
 0x34f   : > { %v2446_v41 = vadd.f32 %v2445_v44, %v2357_v8  ;;  %v2534_v0 = vpop.f32.mrf.mxu1 }
 0x350   : > { %v6133_v16 = vadd.f32 %v2710_v40, %v2622_v47 }
 0x351   : > { %v2535_v56 = vadd.f32 %v2534_v0, %v2446_v41  ;;  %v6549_v0 = vld [vmem:[#allocation26_spill] sm:$0xff] }
 0x353   : > { %3193 = vst [vmem:[%s5285_s8 + $0x3a8] sm:$0xff] %v2535_v56 }
 0x354   : > { %v2712_v43 = vpop.f32.mrf.mxu3 }
 0x355   : > { %v2623_v48 = vpop.f32.mrf.mxu2 }
 0x356   : > { %v2448_v12 = vpop.f32.mrf.mxu0  ;;  %v2624_v2 = vadd.f32 %v2623_v48, %v5879_v24  ;;  %v6552_v48 = vld [vmem:[#allocation23_spill] sm:$0xff] }
 0x357   : > { %v2449_v54 = vadd.f32 %v2448_v12, %v2360_v31  ;;  %v2537_v45 = vpop.f32.mrf.mxu1  ;;  %v6551_v31 = vld [vmem:[#allocation50_spill] sm:$0xff] }
 0x358   : > { %v6141_v32 = vadd.f32 %v2712_v43, %v2624_v2  ;;  %v6160_v12 = vperm.slane %v6551_v31, 3 }
 0x359   : > { %v2538_v19 = vadd.f32 %v2537_v45, %v2449_v54  ;;  %2763 = vmatmul.bf16.gmra.mxu0 %v6545_v30  ;;  %3030 = vmatmul.bf16.gmra.mxu3 %v6545_v30  ;;  %v6553_v54 = vld [vmem:[#allocation24_spill] sm:$0xff]  ;;  %v6554_v30 = vld [vmem:[#allocation27_spill] sm:$0xff] }
 0x35a   : > { %2852 = vmatmul.bf16.gmra.mxu1 %v6546_v14  ;;  %2941 = vmatmul.bf16.gmra.mxu2 %v6547_v4 }
 0x35b   : > { %3197 = vst [vmem:[%s5285_s8 + $0x3c8] sm:$0xff] %v2538_v19 }
 0x35c   : > { %v2715_v5 = vpop.f32.mrf.mxu3 }
 0x35d   : > { %v2626_v10 = vpop.f32.mrf.mxu2 }
 0x35e   : > { %v2450_v51 = vpop.f32.mrf.mxu0  ;;  %v2627_v40 = vadd.f32 %v2626_v10, %v5879_v24 }
 0x35f   : > { %v2451_v42 = vadd.f32 %v2450_v51, %v2362_v62  ;;  %v2539_v20 = vpop.f32.mrf.mxu1 }
 0x360   : > { %v6149_v8 = vadd.f32 %v2715_v5, %v2627_v40 }
 0x361   : > { %v2540_v58 = vadd.f32 %v2539_v20, %v2451_v42  ;;  %v6555_v20 = vld [vmem:[#allocation31_spill] sm:$0xff] }
 0x363   : > { %3201 = vst [vmem:[%s5285_s8 + $0x3e8] sm:$0xff] %v2540_v58 }
 0x364   : > { %v2717_v44 = vpop.f32.mrf.mxu3 }
 0x365   : > { %v2628_v41 = vpop.f32.mrf.mxu2 }
 0x366   : > { %v2729_v33 = vpop.f32.mrf.mxu0  ;;  %v2629_v43 = vadd.f32 %v2628_v41, %v5879_v24 }
 0x367   : > { %v2730_v47 = vadd.f32 %v2729_v33, %v6549_v0  ;;  %v2818_v56 = vpop.f32.mrf.mxu1  ;;  %v6556_v33 = vld [vmem:[#allocation30_spill] sm:$0xff]  ;;  %v6557_v0 = vld [vmem:[#allocation28_spill] sm:$0xff] }
 0x368   : > { %v6157_v9 = vadd.f32 %v2717_v44, %v2629_v43  ;;  %v2819_v2 = vadd.f32 %v2818_v56, %v6160_v12 }
 0x369   : > { %3078 = vst [vmem:[%s5285_s8 + $0x10] sm:$0xff] %v2730_v47  ;;  %2768 = vmatmul.bf16.gmra.mxu0 %v6550_v21  ;;  %3035 = vmatmul.bf16.gmra.mxu3 %v6550_v21  ;;  %v6558_v47 = vld [vmem:[#allocation29_spill] sm:$0xff] }
 0x36a   : > { %2857 = vmatmul.bf16.gmra.mxu1 %v6552_v48  ;;  %2946 = vmatmul.bf16.gmra.mxu2 %v6553_v54  ;;  %v6559_v48 = vld [vmem:[#allocation32_spill] sm:$0xff] }
 0x36c   : > { %v2996_v45 = vpop.f32.mrf.mxu3 }
 0x36d   : > { %v2907_v19 = vpop.f32.mrf.mxu2 }
 0x36e   : > { %v2731_v24 = vpop.f32.mrf.mxu0  ;;  %v2908_v5 = vadd.f32 %v2907_v19, %v2819_v2 }
 0x36f   : > { %v2732_v14 = vadd.f32 %v2731_v24, %v6554_v30  ;;  %v2820_v4 = vpop.f32.mrf.mxu1 }
 0x370   : > { %v2997_v1 = vadd.f32 %v2996_v45, %v2908_v5  ;;  %v2821_v51 = vadd.f32 %v2820_v4, %v6160_v12 }
 0x371   : > { %3082 = vst [vmem:[%s5285_s8 + $0x30] sm:$0xff] %v2732_v14 }
 0x372   : > { %3079 = vst [vmem:[%s5285_s8 + $0x18] sm:$0xff] %v2997_v1 }
 0x374   : > { %v2998_v62 = vpop.f32.mrf.mxu3 }
 0x375   : > { %v2909_v42 = vpop.f32.mrf.mxu2 }
 0x376   : > { %v2734_v10 = vpop.f32.mrf.mxu0  ;;  %v2910_v44 = vadd.f32 %v2909_v42, %v2821_v51  ;;  %v6560_v51 = vld [vmem:[#allocation35_spill] sm:$0xff]  ;;  %v6561_v42 = vld [vmem:[#allocation33_spill] sm:$0xff] }
 0x377   : > { %v2735_v40 = vadd.f32 %v2734_v10, %v6555_v20  ;;  %v2823_v58 = vpop.f32.mrf.mxu1  ;;  %v6562_v20 = vld [vmem:[#allocation34_spill] sm:$0xff] }
 0x378   : > { %v2999_v41 = vadd.f32 %v2998_v62, %v2910_v44  ;;  %v2824_v43 = vadd.f32 %v2823_v58, %v6160_v12 }
 0x379   : > { %3086 = vst [vmem:[%s5285_s8 + $0x50] sm:$0xff] %v2735_v40  ;;  %2773 = vmatmul.bf16.gmra.mxu0 %v6556_v33  ;;  %3040 = vmatmul.bf16.gmra.mxu3 %v6556_v33 }
 0x37a   : > { %2862 = vmatmul.bf16.gmra.mxu1 %v6557_v0  ;;  %3083 = vst [vmem:[%s5285_s8 + $0x38] sm:$0xff] %v2999_v41  ;;  %2951 = vmatmul.bf16.gmra.mxu2 %v6558_v47 }
 0x37c   : > { %v3001_v56 = vpop.f32.mrf.mxu3 }
 0x37d   : > { %v2912_v31 = vpop.f32.mrf.mxu2 }
 0x37e   : > { %v2736_v21 = vpop.f32.mrf.mxu0  ;;  %v2913_v2 = vadd.f32 %v2912_v31, %v2824_v43 }
 0x37f   : > { %v2737_v54 = vadd.f32 %v2736_v21, %v6559_v48  ;;  %v2825_v45 = vpop.f32.mrf.mxu1 }
 0x380   : > { %v3002_v24 = vadd.f32 %v3001_v56, %v2913_v2  ;;  %v2826_v30 = vadd.f32 %v2825_v45, %v6160_v12  ;;  %v6563_v2 = vld [vmem:[#allocation40_spill] sm:$0xff] }
 0x381   : > { %3090 = vst [vmem:[%s5285_s8 + $0x70] sm:$0xff] %v2737_v54 }
 0x382   : > { %3087 = vst [vmem:[%s5285_s8 + $0x58] sm:$0xff] %v3002_v24  ;;  %v6564_v24 = vld [vmem:[#allocation38_spill] sm:$0xff] }
 0x384   : > { %v3003_v19 = vpop.f32.mrf.mxu3 }
 0x385   : > { %v2914_v4 = vpop.f32.mrf.mxu2 }
 0x386   : > { %v2739_v14 = vpop.f32.mrf.mxu0  ;;  %v2915_v62 = vadd.f32 %v2914_v4, %v2826_v30 }
 0x387   : > { %v2740_v5 = vadd.f32 %v2739_v14, %v5929_v60  ;;  %v2828_v1 = vpop.f32.mrf.mxu1 }
 0x388   : > { %v3004_v10 = vadd.f32 %v3003_v19, %v2915_v62  ;;  %v2829_v58 = vadd.f32 %v2828_v1, %v6160_v12  ;;  %v6565_v19 = vld [vmem:[#allocation39_spill] sm:$0xff] }
 0x389   : > { %3094 = vst [vmem:[%s5285_s8 + $0x90] sm:$0xff] %v2740_v5  ;;  %2778 = vmatmul.bf16.gmra.mxu0 %v6560_v51  ;;  %3045 = vmatmul.bf16.gmra.mxu3 %v6560_v51  ;;  %v6566_v5 = vld [vmem:[#allocation36_spill] sm:$0xff] }
 0x38a   : > { %2867 = vmatmul.bf16.gmra.mxu1 %v6561_v42  ;;  %3091 = vst [vmem:[%s5285_s8 + $0x78] sm:$0xff] %v3004_v10  ;;  %2956 = vmatmul.bf16.gmra.mxu2 %v6562_v20 }
 0x38c   : > { %v3006_v40 = vpop.f32.mrf.mxu3 }
 0x38d   : > { %v2917_v44 = vpop.f32.mrf.mxu2 }
 0x38e   : > { %v2741_v60 = vpop.f32.mrf.mxu0  ;;  %v2918_v0 = vadd.f32 %v2917_v44, %v2829_v58 }
 0x38f   : > { %v2742_v33 = vadd.f32 %v2741_v60, %v5941_v28  ;;  %v2830_v41 = vpop.f32.mrf.mxu1 }
 0x390   : > { %v3007_v47 = vadd.f32 %v3006_v40, %v2918_v0  ;;  %v2831_v43 = vadd.f32 %v2830_v41, %v6160_v12  ;;  %v6567_v41 = vld [vmem:[#allocation44_spill] sm:$0xff] }
 0x391   : > { %3098 = vst [vmem:[%s5285_s8 + $0xb0] sm:$0xff] %v2742_v33 }
 0x392   : > { %3095 = vst [vmem:[%s5285_s8 + $0x98] sm:$0xff] %v3007_v47  ;;  %v6568_v47 = vld [vmem:[#allocation42_spill] sm:$0xff] }
 0x394   : > { %v3008_v56 = vpop.f32.mrf.mxu3 }
 0x395   : > { %v2919_v31 = vpop.f32.mrf.mxu2 }
 0x396   : > { %v2744_v21 = vpop.f32.mrf.mxu0  ;;  %v2920_v45 = vadd.f32 %v2919_v31, %v2831_v43 }
 0x397   : > { %v2745_v48 = vadd.f32 %v2744_v21, %v5949_v7  ;;  %v2833_v54 = vpop.f32.mrf.mxu1 }
 0x398   : > { %v3009_v28 = vadd.f32 %v3008_v56, %v2920_v45  ;;  %v2834_v14 = vadd.f32 %v2833_v54, %v6160_v12  ;;  %v6569_v56 = vld [vmem:[#allocation43_spill] sm:$0xff] }
 0x399   : > { %3102 = vst [vmem:[%s5285_s8 + $0xd0] sm:$0xff] %v2745_v48  ;;  %2783 = vmatmul.bf16.gmra.mxu0 %v6563_v2  ;;  %3050 = vmatmul.bf16.gmra.mxu3 %v6563_v2 }
 0x39a   : > { %2872 = vmatmul.bf16.gmra.mxu1 %v6564_v24  ;;  %3099 = vst [vmem:[%s5285_s8 + $0xb8] sm:$0xff] %v3009_v28  ;;  %2961 = vmatmul.bf16.gmra.mxu2 %v6565_v19 }
 0x39c   : > { %v3011_v30 = vpop.f32.mrf.mxu3 }
 0x39d   : > { %v2922_v4 = vpop.f32.mrf.mxu2 }
 0x39e   : > { %v2746_v7 = vpop.f32.mrf.mxu0  ;;  %v2923_v51 = vadd.f32 %v2922_v4, %v2834_v14 }
 0x39f   : > { %v2747_v1 = vadd.f32 %v2746_v7, %v6566_v5  ;;  %v2835_v62 = vpop.f32.mrf.mxu1 }
 0x3a0   : > { %v3012_v10 = vadd.f32 %v3011_v30, %v2923_v51  ;;  %v2836_v20 = vadd.f32 %v2835_v62, %v6160_v12 }
 0x3a1   : > { %3106 = vst [vmem:[%s5285_s8 + $0xf0] sm:$0xff] %v2747_v1 }
 0x3a2   : > { %3103 = vst [vmem:[%s5285_s8 + $0xd8] sm:$0xff] %v3012_v10 }
 0x3a4   : > { %v3013_v42 = vpop.f32.mrf.mxu3 }
 0x3a5   : > { %v2924_v58 = vpop.f32.mrf.mxu2 }
 0x3a6   : > { %v2749_v40 = vpop.f32.mrf.mxu0  ;;  %v2925_v33 = vadd.f32 %v2924_v58, %v2836_v20 }
 0x3a7   : > { %v2750_v60 = vadd.f32 %v2749_v40, %v5969_v59  ;;  %v2838_v44 = vpop.f32.mrf.mxu1 }
 0x3a8   : > { %v3014_v0 = vadd.f32 %v3013_v42, %v2925_v33  ;;  %v2839_v21 = vadd.f32 %v2838_v44, %v6160_v12 }
 0x3a9   : > { %3110 = vst [vmem:[%s5285_s8 + $0x110] sm:$0xff] %v2750_v60  ;;  %2788 = vmatmul.bf16.gmra.mxu0 %v6567_v41  ;;  %3055 = vmatmul.bf16.gmra.mxu3 %v6567_v41 }
 0x3aa   : > { %2877 = vmatmul.bf16.gmra.mxu1 %v6568_v47  ;;  %3107 = vst [vmem:[%s5285_s8 + $0xf8] sm:$0xff] %v3014_v0  ;;  %2966 = vmatmul.bf16.gmra.mxu2 %v6569_v56 }
 0x3ac   : > { %v3016_v43 = vpop.f32.mrf.mxu3 }
 0x3ad   : > { %v2927_v31 = vpop.f32.mrf.mxu2 }
 0x3ae   : > { %v2751_v59 = vpop.f32.mrf.mxu0  ;;  %v2928_v45 = vadd.f32 %v2927_v31, %v2839_v21 }
 0x3af   : > { %v2752_v48 = vadd.f32 %v2751_v59, %v5981_v63  ;;  %v2840_v54 = vpop.f32.mrf.mxu1 }
 0x3b0   : > { %v3017_v2 = vadd.f32 %v3016_v43, %v2928_v45  ;;  %v2841_v24 = vadd.f32 %v2840_v54, %v6160_v12 }
 0x3b1   : > { %3114 = vst [vmem:[%s5285_s8 + $0x130] sm:$0xff] %v2752_v48 }
 0x3b2   : > { %3111 = vst [vmem:[%s5285_s8 + $0x118] sm:$0xff] %v3017_v2 }
 0x3b4   : > { %v3018_v28 = vpop.f32.mrf.mxu3 }
 0x3b5   : > { %v2929_v30 = vpop.f32.mrf.mxu2 }
 0x3b6   : > { %v2754_v19 = vpop.f32.mrf.mxu0  ;;  %v2930_v4 = vadd.f32 %v2929_v30, %v2841_v24 }
 0x3b7   : > { %v2755_v14 = vadd.f32 %v2754_v19, %v5989_v35  ;;  %v2843_v7 = vpop.f32.mrf.mxu1 }
 0x3b8   : > { %v3019_v63 = vadd.f32 %v3018_v28, %v2930_v4  ;;  %v2844_v1 = vadd.f32 %v2843_v7, %v6160_v12 }
 0x3b9   : > { %3118 = vst [vmem:[%s5285_s8 + $0x150] sm:$0xff] %v2755_v14  ;;  %2793 = vmatmul.bf16.gmra.mxu0 %v5634_v22  ;;  %3060 = vmatmul.bf16.gmra.mxu3 %v5634_v22 }
 0x3ba   : > { %2882 = vmatmul.bf16.gmra.mxu1 %v5617_v57  ;;  %3115 = vst [vmem:[%s5285_s8 + $0x138] sm:$0xff] %v3019_v63  ;;  %2971 = vmatmul.bf16.gmra.mxu2 %v5621_v26 }
 0x3bc   : > { %v3021_v5 = vpop.f32.mrf.mxu3 }
 0x3bd   : > { %v2932_v62 = vpop.f32.mrf.mxu2 }
 0x3be   : > { %v2756_v35 = vpop.f32.mrf.mxu0  ;;  %v2933_v42 = vadd.f32 %v2932_v62, %v2844_v1 }
 0x3bf   : > { %v2757_v51 = vadd.f32 %v2756_v35, %v5997_v18  ;;  %v2845_v10 = vpop.f32.mrf.mxu1 }
 0x3c0   : > { %v3022_v20 = vadd.f32 %v3021_v5, %v2933_v42  ;;  %v2846_v57 = vadd.f32 %v2845_v10, %v6160_v12 }
 0x3c1   : > { %3122 = vst [vmem:[%s5285_s8 + $0x170] sm:$0xff] %v2757_v51 }
 0x3c2   : > { %3119 = vst [vmem:[%s5285_s8 + $0x158] sm:$0xff] %v3022_v20 }
 0x3c4   : > { %v3023_v22 = vpop.f32.mrf.mxu3 }
 0x3c5   : > { %v2934_v58 = vpop.f32.mrf.mxu2 }
 0x3c6   : > { %v2759_v40 = vpop.f32.mrf.mxu0  ;;  %v2935_v44 = vadd.f32 %v2934_v58, %v2846_v57 }
 0x3c7   : > { %v2760_v26 = vadd.f32 %v2759_v40, %v6005_v29  ;;  %v2848_v60 = vpop.f32.mrf.mxu1 }
 0x3c8   : > { %v3024_v18 = vadd.f32 %v3023_v22, %v2935_v44  ;;  %v2849_v41 = vadd.f32 %v2848_v60, %v6160_v12 }
 0x3c9   : > { %3126 = vst [vmem:[%s5285_s8 + $0x190] sm:$0xff] %v2760_v26  ;;  %2798 = vmatmul.bf16.gmra.mxu0 %v5678_v15  ;;  %3065 = vmatmul.bf16.gmra.mxu3 %v5678_v15 }
 0x3ca   : > { %2887 = vmatmul.bf16.gmra.mxu1 %v5666_v13  ;;  %3123 = vst [vmem:[%s5285_s8 + $0x178] sm:$0xff] %v3024_v18  ;;  %2976 = vmatmul.bf16.gmra.mxu2 %v5668_v55 }
 0x3cc   : > { %v3026_v33 = vpop.f32.mrf.mxu3 }
 0x3cd   : > { %v2937_v0 = vpop.f32.mrf.mxu2 }
 0x3ce   : > { %v2761_v29 = vpop.f32.mrf.mxu0  ;;  %v2938_v43 = vadd.f32 %v2937_v0, %v2849_v41 }
 0x3cf   : > { %v2762_v47 = vadd.f32 %v2761_v29, %v6013_v11  ;;  %v2850_v56 = vpop.f32.mrf.mxu1 }
 0x3d0   : > { %v3027_v21 = vadd.f32 %v3026_v33, %v2938_v43  ;;  %v2851_v13 = vadd.f32 %v2850_v56, %v6160_v12 }
 0x3d1   : > { %3130 = vst [vmem:[%s5285_s8 + $0x1b0] sm:$0xff] %v2762_v47 }
 0x3d2   : > { %3127 = vst [vmem:[%s5285_s8 + $0x198] sm:$0xff] %v3027_v21 }
 0x3d4   : > { %v3028_v15 = vpop.f32.mrf.mxu3 }
 0x3d5   : > { %v2939_v31 = vpop.f32.mrf.mxu2 }
 0x3d6   : > { %v2764_v59 = vpop.f32.mrf.mxu0  ;;  %v2940_v54 = vadd.f32 %v2939_v31, %v2851_v13 }
 0x3d7   : > { %v2765_v55 = vadd.f32 %v2764_v59, %v6021_v17  ;;  %v2853_v48 = vpop.f32.mrf.mxu1 }
 0x3d8   : > { %v3029_v11 = vadd.f32 %v3028_v15, %v2940_v54  ;;  %v2854_v2 = vadd.f32 %v2853_v48, %v6160_v12 }
 0x3d9   : > { %3134 = vst [vmem:[%s5285_s8 + $0x1d0] sm:$0xff] %v2765_v55  ;;  %2803 = vmatmul.bf16.gmra.mxu0 %v5728_v46  ;;  %3070 = vmatmul.bf16.gmra.mxu3 %v5728_v46 }
 0x3da   : > { %2892 = vmatmul.bf16.gmra.mxu1 %v5719_v25  ;;  %3131 = vst [vmem:[%s5285_s8 + $0x1b8] sm:$0xff] %v3029_v11  ;;  %2981 = vmatmul.bf16.gmra.mxu2 %v5721_v37 }
 0x3dc   : > { %v3031_v45 = vpop.f32.mrf.mxu3 }
 0x3dd   : > { %v2942_v28 = vpop.f32.mrf.mxu2 }
 0x3de   : > { %v2766_v17 = vpop.f32.mrf.mxu0  ;;  %v2943_v30 = vadd.f32 %v2942_v28, %v2854_v2 }
 0x3df   : > { %v2767_v24 = vadd.f32 %v2766_v17, %v6029_v53  ;;  %v2855_v19 = vpop.f32.mrf.mxu1 }
 0x3e0   : > { %v3032_v14 = vadd.f32 %v3031_v45, %v2943_v30  ;;  %v2856_v25 = vadd.f32 %v2855_v19, %v6160_v12 }
 0x3e1   : > { %3138 = vst [vmem:[%s5285_s8 + $0x1f0] sm:$0xff] %v2767_v24 }
 0x3e2   : > { %3135 = vst [vmem:[%s5285_s8 + $0x1d8] sm:$0xff] %v3032_v14 }
 0x3e4   : > { %v3033_v46 = vpop.f32.mrf.mxu3 }
 0x3e5   : > { %v2944_v37 = vpop.f32.mrf.mxu2 }
 0x3e6   : > { %v2769_v7 = vpop.f32.mrf.mxu0  ;;  %v2945_v5 = vadd.f32 %v2944_v37, %v2856_v25 }
 0x3e7   : > { %v2770_v4 = vadd.f32 %v2769_v7, %v6037_v39  ;;  %v2858_v63 = vpop.f32.mrf.mxu1 }
 0x3e8   : > { %v3034_v1 = vadd.f32 %v3033_v46, %v2945_v5  ;;  %v2859_v35 = vadd.f32 %v2858_v63, %v6160_v12 }
 0x3e9   : > { %3142 = vst [vmem:[%s5285_s8 + $0x210] sm:$0xff] %v2770_v4 }
 0x3ea   : > { %3139 = vst [vmem:[%s5285_s8 + $0x1f8] sm:$0xff] %v3034_v1 }
 0x3ec   : > { %v3036_v53 = vpop.f32.mrf.mxu3 }
 0x3ed   : > { %v2947_v51 = vpop.f32.mrf.mxu2 }
 0x3ee   : > { %v2771_v62 = vpop.f32.mrf.mxu0  ;;  %v2948_v20 = vadd.f32 %v2947_v51, %v2859_v35 }
 0x3ef   : > { %v2772_v10 = vadd.f32 %v2771_v62, %v6045_v3  ;;  %v2860_v42 = vpop.f32.mrf.mxu1 }
 0x3f0   : > { %v3037_v22 = vadd.f32 %v3036_v53, %v2948_v20  ;;  %v2861_v57 = vadd.f32 %v2860_v42, %v6160_v12 }
 0x3f1   : > { %3146 = vst [vmem:[%s5285_s8 + $0x230] sm:$0xff] %v2772_v10 }
 0x3f2   : > { %3143 = vst [vmem:[%s5285_s8 + $0x218] sm:$0xff] %v3037_v22 }
 0x3f4   : > { %v3038_v39 = vpop.f32.mrf.mxu3 }
 0x3f5   : > { %v2949_v58 = vpop.f32.mrf.mxu2 }
 0x3f6   : > { %v2774_v40 = vpop.f32.mrf.mxu0  ;;  %v2950_v44 = vadd.f32 %v2949_v58, %v2861_v57 }
 0x3f7   : > { %v2775_v26 = vadd.f32 %v2774_v40, %v6053_v36  ;;  %v2863_v60 = vpop.f32.mrf.mxu1 }
 0x3f8   : > { %v3039_v18 = vadd.f32 %v3038_v39, %v2950_v44  ;;  %v2864_v33 = vadd.f32 %v2863_v60, %v6160_v12 }
 0x3f9   : > { %3150 = vst [vmem:[%s5285_s8 + $0x250] sm:$0xff] %v2775_v26 }
 0x3fa   : > { %3147 = vst [vmem:[%s5285_s8 + $0x238] sm:$0xff] %v3039_v18 }
 0x3fc   : > { %v3041_v3 = vpop.f32.mrf.mxu3 }
 0x3fd   : > { %v2952_v29 = vpop.f32.mrf.mxu2 }
 0x3fe   : > { %v2776_v41 = vpop.f32.mrf.mxu0  ;;  %v2953_v56 = vadd.f32 %v2952_v29, %v2864_v33 }
 0x3ff   : > { %v2777_v0 = vadd.f32 %v2776_v41, %v6061_v6  ;;  %v2865_v47 = vpop.f32.mrf.mxu1 }
 0x400   : > { %v3042_v43 = vadd.f32 %v3041_v3, %v2953_v56  ;;  %v2866_v21 = vadd.f32 %v2865_v47, %v6160_v12 }
 0x401   : > { %3154 = vst [vmem:[%s5285_s8 + $0x270] sm:$0xff] %v2777_v0 }
 0x402   : > { %3151 = vst [vmem:[%s5285_s8 + $0x258] sm:$0xff] %v3042_v43 }
 0x404   : > { %v3043_v36 = vpop.f32.mrf.mxu3 }
 0x405   : > { %v2954_v13 = vpop.f32.mrf.mxu2 }
 0x406   : > { %v2779_v15 = vpop.f32.mrf.mxu0  ;;  %v2955_v55 = vadd.f32 %v2954_v13, %v2866_v21 }
 0x407   : > { %v2780_v59 = vadd.f32 %v2779_v15, %v6069_v50  ;;  %v2868_v31 = vpop.f32.mrf.mxu1 }
 0x408   : > { %v3044_v48 = vadd.f32 %v3043_v36, %v2955_v55  ;;  %v2869_v54 = vadd.f32 %v2868_v31, %v6160_v12 }
 0x409   : > { %3158 = vst [vmem:[%s5285_s8 + $0x290] sm:$0xff] %v2780_v59 }
 0x40a   : > { %3155 = vst [vmem:[%s5285_s8 + $0x278] sm:$0xff] %v3044_v48 }
 0x40c   : > { %v3046_v6 = vpop.f32.mrf.mxu3 }
 0x40d   : > { %v2957_v45 = vpop.f32.mrf.mxu2 }
 0x40e   : > { %v2781_v11 = vpop.f32.mrf.mxu0  ;;  %v2958_v28 = vadd.f32 %v2957_v45, %v2869_v54 }
 0x40f   : > { %v2782_v2 = vadd.f32 %v2781_v11, %v6077_v52  ;;  %v2870_v17 = vpop.f32.mrf.mxu1 }
 0x410   : > { %v3047_v24 = vadd.f32 %v3046_v6, %v2958_v28  ;;  %v2871_v19 = vadd.f32 %v2870_v17, %v6160_v12 }
 0x411   : > { %3162 = vst [vmem:[%s5285_s8 + $0x2b0] sm:$0xff] %v2782_v2 }
 0x412   : > { %3159 = vst [vmem:[%s5285_s8 + $0x298] sm:$0xff] %v3047_v24 }
 0x414   : > { %v3048_v50 = vpop.f32.mrf.mxu3 }
 0x415   : > { %v2959_v14 = vpop.f32.mrf.mxu2 }
 0x416   : > { %v2784_v30 = vpop.f32.mrf.mxu0  ;;  %v2960_v7 = vadd.f32 %v2959_v14, %v2871_v19 }
 0x417   : > { %v2785_v46 = vadd.f32 %v2784_v30, %v6085_v34  ;;  %v2873_v25 = vpop.f32.mrf.mxu1 }
 0x418   : > { %v3049_v37 = vadd.f32 %v3048_v50, %v2960_v7  ;;  %v2874_v4 = vadd.f32 %v2873_v25, %v6160_v12 }
 0x419   : > { %3166 = vst [vmem:[%s5285_s8 + $0x2d0] sm:$0xff] %v2785_v46 }
 0x41a   : > { %3163 = vst [vmem:[%s5285_s8 + $0x2b8] sm:$0xff] %v3049_v37 }
 0x41c   : > { %v3051_v52 = vpop.f32.mrf.mxu3 }
 0x41d   : > { %v2962_v5 = vpop.f32.mrf.mxu2 }
 0x41e   : > { %v2786_v63 = vpop.f32.mrf.mxu0  ;;  %v2963_v35 = vadd.f32 %v2962_v5, %v2874_v4 }
 0x41f   : > { %v2787_v1 = vadd.f32 %v2786_v63, %v6093_v38  ;;  %v2875_v53 = vpop.f32.mrf.mxu1 }
 0x420   : > { %v3052_v62 = vadd.f32 %v3051_v52, %v2963_v35  ;;  %v2876_v51 = vadd.f32 %v2875_v53, %v6160_v12 }
 0x421   : > { %3170 = vst [vmem:[%s5285_s8 + $0x2f0] sm:$0xff] %v2787_v1 }
 0x422   : > { %3167 = vst [vmem:[%s5285_s8 + $0x2d8] sm:$0xff] %v3052_v62 }
 0x424   : > { %v3053_v34 = vpop.f32.mrf.mxu3 }
 0x425   : > { %v2964_v42 = vpop.f32.mrf.mxu2 }
 0x426   : > { %v2789_v10 = vpop.f32.mrf.mxu0  ;;  %v2965_v39 = vadd.f32 %v2964_v42, %v2876_v51 }
 0x427   : > { %v2790_v20 = vadd.f32 %v2789_v10, %v6101_v61  ;;  %v2878_v22 = vpop.f32.mrf.mxu1 }
 0x428   : > { %v3054_v57 = vadd.f32 %v3053_v34, %v2965_v39  ;;  %v2879_v40 = vadd.f32 %v2878_v22, %v6160_v12 }
 0x429   : > { %3174 = vst [vmem:[%s5285_s8 + $0x310] sm:$0xff] %v2790_v20 }
 0x42a   : > { %3171 = vst [vmem:[%s5285_s8 + $0x2f8] sm:$0xff] %v3054_v57 }
 0x42c   : > { %v3056_v38 = vpop.f32.mrf.mxu3 }
 0x42d   : > { %v2967_v26 = vpop.f32.mrf.mxu2 }
 0x42e   : > { %v2791_v58 = vpop.f32.mrf.mxu0  ;;  %v2968_v18 = vadd.f32 %v2967_v26, %v2879_v40 }
 0x42f   : > { %v2792_v60 = vadd.f32 %v2791_v58, %v6109_v49  ;;  %v2880_v44 = vpop.f32.mrf.mxu1 }
 0x430   : > { %v3057_v3 = vadd.f32 %v3056_v38, %v2968_v18  ;;  %v2881_v33 = vadd.f32 %v2880_v44, %v6160_v12 }
 0x431   : > { %3178 = vst [vmem:[%s5285_s8 + $0x330] sm:$0xff] %v2792_v60 }
 0x432   : > { %3175 = vst [vmem:[%s5285_s8 + $0x318] sm:$0xff] %v3057_v3 }
 0x434   : > { %v3058_v61 = vpop.f32.mrf.mxu3 }
 0x435   : > { %v2969_v29 = vpop.f32.mrf.mxu2 }
 0x436   : > { %v2794_v41 = vpop.f32.mrf.mxu0  ;;  %v2970_v56 = vadd.f32 %v2969_v29, %v2881_v33 }
 0x437   : > { %v2795_v0 = vadd.f32 %v2794_v41, %v6117_v23  ;;  %v2883_v47 = vpop.f32.mrf.mxu1 }
 0x438   : > { %v3059_v43 = vadd.f32 %v3058_v61, %v2970_v56  ;;  %v2884_v36 = vadd.f32 %v2883_v47, %v6160_v12 }
 0x439   : > { %3182 = vst [vmem:[%s5285_s8 + $0x350] sm:$0xff] %v2795_v0 }
 0x43a   : > { %3179 = vst [vmem:[%s5285_s8 + $0x338] sm:$0xff] %v3059_v43 }
 0x43c   : > { %v3061_v49 = vpop.f32.mrf.mxu3 }
 0x43d   : > { %v2972_v15 = vpop.f32.mrf.mxu2 }
 0x43e   : > { %v2796_v21 = vpop.f32.mrf.mxu0  ;;  %v2973_v31 = vadd.f32 %v2972_v15, %v2884_v36 }
 0x43f   : > { %v2797_v13 = vadd.f32 %v2796_v21, %v6125_v27  ;;  %v2885_v59 = vpop.f32.mrf.mxu1 }
 0x440   : > { %v3062_v55 = vadd.f32 %v3061_v49, %v2973_v31  ;;  %v2886_v48 = vadd.f32 %v2885_v59, %v6160_v12 }
 0x441   : > { %3186 = vst [vmem:[%s5285_s8 + $0x370] sm:$0xff] %v2797_v13 }
 0x442   : > { %3183 = vst [vmem:[%s5285_s8 + $0x358] sm:$0xff] %v3062_v55 }
 0x444   : > { %v3063_v23 = vpop.f32.mrf.mxu3 }
 0x445   : > { %v2974_v54 = vpop.f32.mrf.mxu2 }
 0x446   : > { %v2799_v6 = vpop.f32.mrf.mxu0  ;;  %v2975_v2 = vadd.f32 %v2974_v54, %v2886_v48 }
 0x447   : > { %v2800_v11 = vadd.f32 %v2799_v6, %v6133_v16  ;;  %v2888_v45 = vpop.f32.mrf.mxu1 }
 0x448   : > { %v3064_v17 = vadd.f32 %v3063_v23, %v2975_v2  ;;  %v2889_v28 = vadd.f32 %v2888_v45, %v6160_v12 }
 0x449   : > { %3190 = vst [vmem:[%s5285_s8 + $0x390] sm:$0xff] %v2800_v11 }
 0x44a   : > { %3187 = vst [vmem:[%s5285_s8 + $0x378] sm:$0xff] %v3064_v17 }
 0x44c   : > { %v3066_v27 = vpop.f32.mrf.mxu3 }
 0x44d   : > { %v2977_v50 = vpop.f32.mrf.mxu2 }
 0x44e   : > { %v2801_v24 = vpop.f32.mrf.mxu0  ;;  %v2978_v14 = vadd.f32 %v2977_v50, %v2889_v28 }
 0x44f   : > { %v2802_v19 = vadd.f32 %v2801_v24, %v6141_v32  ;;  %v2890_v30 = vpop.f32.mrf.mxu1 }
 0x450   : > { %v3067_v46 = vadd.f32 %v3066_v27, %v2978_v14  ;;  %v2891_v25 = vadd.f32 %v2890_v30, %v6160_v12 }
 0x451   : > { %3194 = vst [vmem:[%s5285_s8 + $0x3b0] sm:$0xff] %v2802_v19 }
 0x452   : > { %3191 = vst [vmem:[%s5285_s8 + $0x398] sm:$0xff] %v3067_v46 }
 0x454   : > { %v3068_v16 = vpop.f32.mrf.mxu3 }
 0x455   : > { %v2979_v37 = vpop.f32.mrf.mxu2 }
 0x456   : > { %v2804_v7 = vpop.f32.mrf.mxu0  ;;  %v2980_v4 = vadd.f32 %v2979_v37, %v2891_v25 }
 0x457   : > { %v2805_v52 = vadd.f32 %v2804_v7, %v6149_v8  ;;  %v2893_v63 = vpop.f32.mrf.mxu1 }
 0x458   : > { %v3069_v32 = vadd.f32 %v3068_v16, %v2980_v4  ;;  %v2894_v5 = vadd.f32 %v2893_v63, %v6160_v12 }
 0x459   : > { %3198 = vst [vmem:[%s5285_s8 + $0x3d0] sm:$0xff] %v2805_v52 }
 0x45a   : > { %3195 = vst [vmem:[%s5285_s8 + $0x3b8] sm:$0xff] %v3069_v32 }
 0x45c   : > { %v3071_v35 = vpop.f32.mrf.mxu3 }
 0x45d   : > { %v2982_v53 = vpop.f32.mrf.mxu2 }
 0x45e   : > { %v2806_v1 = vpop.f32.mrf.mxu0  ;;  %v2983_v34 = vadd.f32 %v2982_v53, %v2894_v5 }
 0x45f   : > { %v2807_v62 = vadd.f32 %v2806_v1, %v6157_v9  ;;  %v2895_v51 = vpop.f32.mrf.mxu1 }
 0x460   : > { %v3072_v8 = vadd.f32 %v3071_v35, %v2983_v34  ;;  %v2896_v10 = vadd.f32 %v2895_v51, %v6160_v12 }
 0x461   : > { %3202 = vst [vmem:[%s5285_s8 + $0x3f0] sm:$0xff] %v2807_v62 }
 0x462   : > { %3199 = vst [vmem:[%s5285_s8 + $0x3d8] sm:$0xff] %v3072_v8 }
 0x464   : > { %v3073_v9 = vpop.f32.mrf.mxu3 }
 0x465   : > { %v2984_v42 = vpop.f32.mrf.mxu2 }
 0x466   : > { %v2985_v20 = vadd.f32 %v2984_v42, %v2896_v10 }
 0x468   : > { %v3074_v22 = vadd.f32 %v3073_v9, %v2985_v20 }
 0x46a   : > { %3203 = vst [vmem:[%s5285_s8 + $0x3f8] sm:$0xff] %v3074_v22 }
 0x46b   : > { %4173 = shalt.err (!%p4170_p3)
}
 0x46c   : > { %s4225_s1 = smov 512   ;;  %s4226_s27 = smov 1536  }
 0x46d   : > { %s4227_s7 = smov 32  }
 0x46e   : > { %3834 = dma.vmem_to_hbm [thread:$0]  (%p4330_p9), %s3218_s28, 16384, %s3220_s29, %s3205_s22, %s4225_s1, %s4226_s27, %s4227_s7  }
 0x46f PF: > { %p3854_p4 = scmp.ge.s32.totalorder %s4216_s15, 2  ;;  %s3234_s4 = sand.u32 1, %s4204_s12  }
 0x470   : > { %s3235_s24 = scalar_lea.sflag [#allocation4], %s3234_s4 }
 0x471   : > { %p3848_p6 = pnand %p3854_p4, %p4334_p10 }
 0x473   : > { %p3849_p11 = pneg %p3848_p6 }
 0x475   : > { %4199 = dma.done.wait (%p3849_p11), %s3235_s24, 16384  }
 0x476   : > { %4201 = vsyncadd (%p3849_p11), %s3235_s24, 4294950912  ;;  %p17_p0 = scmp.ge.s32.totalorder %s4269_s16, 5   ;;  %s6570_s12 = smov %s4208_s13 }
 0x477   : > { %s6571_s13 = smov %s4212_s14  ;;  %s6572_s14 = smov %s4279_s19 }
 0x478   : > { %s6573_s15 = smov %s4269_s16  ;;  %19 = sbr.rel (!%p17_p0) target bundleno = 9 (0x9), region = 93 }
 0x47d   :  { %3241 = vsyncpa [#allocation3], 1 }
 0x47e   :  { %3243 = vsyncpa [#allocation3 + $0x1], 1 }
 0x47f   :  { %3244 = vsyncpa [#allocation6], 1 }
 0x480   :  { %3246 = vsyncpa [#allocation6 + $0x1], 1 }
 0x481   :  { %3247 = vsyncpa [#allocation4], 1 }
 0x482   :  { %3249 = vsyncpa [#allocation4 + $0x1], 1 }

</bundles_post_ra>
